<compile_context>
chip_gen: v7x
topology: tpu7x:2x2x1
jax: 0.10.0
libtpu: 0.0.40
codegen_flags: <defaults>
</compile_context>

<pallas_src>
import functools

import numpy as np
import jax
import jax.numpy as jnp
from jax import lax
from jax.experimental import pallas as pl
from jax.experimental.pallas import tpu as pltpu

_SQRT_HALF = 0.7071067811865476


def _erf(x):
    # Abramowitz & Stegun 7.1.26 polynomial erf, |err| < 1.5e-7
    # (float32-accurate match for torch.nn.GELU()'s exact erf).
    a1, a2, a3, a4, a5 = 0.254829592, -0.284496736, 1.421413741, -1.453152027, 1.061405429
    p = 0.3275911
    s = jnp.where(x >= 0.0, 1.0, -1.0)
    ax = jnp.abs(x)
    t = 1.0 / (1.0 + p * ax)
    poly = ((((a5 * t + a4) * t + a3) * t + a2) * t + a1) * t
    return s * (1.0 - poly * jnp.exp(-ax * ax))


def _gelu(x):
    # Exact (erf-based) GELU, matching torch.nn.GELU() default.
    return 0.5 * x * (1.0 + _erf(x * _SQRT_HALF))


def _bilinear_matrix_np(n_in, scale):
    """(scale*n_in, n_in) 1-D bilinear interp matrix, align_corners=False (PyTorch)."""
    n_out = n_in * scale
    m = np.zeros((n_out, n_in), dtype=np.float32)
    for o in range(n_out):
        src = (o + 0.5) / scale - 0.5
        src = max(src, 0.0)
        i0 = min(int(np.floor(src)), n_in - 1)
        i1 = min(i0 + 1, n_in - 1)
        frac = src - i0
        m[o, i0] += 1.0 - frac
        m[o, i1] += frac
    return m


# --------------------------------------------------------------------------
# Kernel A: mlp1 -> dsconv_3x3 (depthwise + pointwise + BN + ReLU) -> mlp2
# --------------------------------------------------------------------------
def _features_kernel(H, W, C,
                     x_ref,
                     w1a_ref, b1a_ref, w1b_ref, b1b_ref,
                     dw_ref, dwb_ref, pw_ref, pwb_ref,
                     bns_ref, bnb_ref,
                     w2a_ref, b2a_ref, w2b_ref, b2b_ref,
                     z_ref,
                     pad_ref):
    HW = H * W
    xm = x_ref[0]                                                 # (HW, C) NHWC rows

    # ---- mlp1: 1x1 conv -> GELU -> 1x1 conv (dropout p=0 is identity) ----
    h1 = _gelu(jnp.dot(xm, w1a_ref[...], preferred_element_type=jnp.float32)
               + b1a_ref[...])
    x1 = jnp.dot(h1, w1b_ref[...], preferred_element_type=jnp.float32) + b1b_ref[...]

    # ---- depthwise 3x3 conv, padding=1, groups=C (stencil on zero-padded scratch) ----
    pad_ref[...] = jnp.zeros_like(pad_ref)
    pad_ref[1:H + 1, 1:W + 1, :] = x1.reshape(H, W, C)            # safe sublane split (W % 8 == 0)
    taps = dw_ref[...]                                            # (9, C), row = ki*3 + kj
    acc = jnp.zeros((H, W, C), jnp.float32)
    for ki in range(3):
        for kj in range(3):
            k3 = ki * 3 + kj
            t = taps[k3:k3 + 1, :].reshape(1, 1, C)
            acc = acc + pad_ref[ki:ki + H, kj:kj + W, :] * t
    acc = acc + dwb_ref[...].reshape(1, 1, C)

    # ---- pointwise 1x1 conv + BatchNorm (eval mode, folded) + ReLU ----
    # TODO(synk): BatchNorm is inference-mode (running stats folded); training-mode
    # batch statistics would need a cross-batch reduction.
    pwv = jnp.dot(acc.reshape(HW, C), pw_ref[...],
                  preferred_element_type=jnp.float32) + pwb_ref[...]
    x_d = jnp.maximum(pwv * bns_ref[...] + bnb_ref[...], 0.0)     # (HW, C)

    # ---- mlp2 on (x1 + x_d): 1x1 conv -> GELU -> 1x1 conv (C -> 2) ----
    y = x1 + x_d
    h2 = _gelu(jnp.dot(y, w2a_ref[...], preferred_element_type=jnp.float32)
               + b2a_ref[...])
    z_ref[0] = jnp.dot(h2, w2b_ref[...], preferred_element_type=jnp.float32) + b2b_ref[...]


# --------------------------------------------------------------------------
# Kernel B: separable bilinear x4 upsample (align_corners=False), per channel
# --------------------------------------------------------------------------
def _upsample_kernel(z_ref, wwt_ref, wh_ref, o_ref):
    zc = z_ref[0, 0]                                              # (H, W), W on lanes
    t = jnp.dot(zc, wwt_ref[...], preferred_element_type=jnp.float32)   # (H, 4W)
    o_ref[0, 0] = jnp.dot(wh_ref[...], t, preferred_element_type=jnp.float32)  # (4H, 4W)


def _full_spec(shape):
    n = len(shape)
    return pl.BlockSpec(shape, lambda b, n=n: (0,) * n)


def _padded_block_bytes(shape, itemsize=4):
    d = list(shape)
    d[-1] = -(-d[-1] // 128) * 128
    if len(d) >= 2:
        d[-2] = -(-d[-2] // 8) * 8
    return int(np.prod(d)) * itemsize


def changedetector_forward(x_nchw, p):
    N, C, H, W = x_nchw.shape
    assert W % 8 == 0, "W must be a multiple of 8 (lane/sublane-safe reshapes)"
    HW = H * W

    # NCHW -> NHWC rows (done by XLA; every 1x1 conv becomes a (HW, C) @ (C, C) matmul).
    x = jnp.transpose(x_nchw, (0, 2, 3, 1)).reshape(N, HW, C).astype(jnp.float32)

    # ---------------- kernel A: per-batch feature / change-map computation ----------------
    in_shapes = [(1, HW, C),
                 (C, C), (1, C), (C, C), (1, C),
                 (9, C), (1, C), (C, C), (1, C),
                 (1, C), (1, C),
                 (C, C), (1, C), (C, 2), (1, 2)]
    z_block = (1, HW, 2)
    scratch_shape = (H + 2, W + 2, C)

    vmem_a = 2 * sum(_padded_block_bytes(s) for s in in_shapes + [z_block])
    vmem_a += _padded_block_bytes(scratch_shape)
    vmem_a = int(min(max(vmem_a + (4 << 20), 32 << 20), 100 << 20))

    in_specs = [pl.BlockSpec((1, HW, C), lambda b: (b, 0, 0))]
    in_specs += [_full_spec(s) for s in in_shapes[1:]]

    z = pl.pallas_call(
        functools.partial(_features_kernel, H, W, C),
        out_shape=jax.ShapeDtypeStruct((N, HW, 2), jnp.float32),
        grid_spec=pltpu.PrefetchScalarGridSpec(
            num_scalar_prefetch=0,
            grid=(N,),
            in_specs=in_specs,
            out_specs=pl.BlockSpec(z_block, lambda b: (b, 0, 0)),
            scratch_shapes=[pltpu.VMEM(scratch_shape, jnp.float32)],
        ),
        compiler_params=pltpu.CompilerParams(
            dimension_semantics=("parallel",),
            vmem_limit_bytes=vmem_a,
        ),
    )(x,
      p['w1a'], p['b1a'], p['w1b'], p['b1b'],
      p['dw'], p['dwb'], p['pw'], p['pwb'],
      p['bns'], p['bnb'],
      p['w2a'], p['b2a'], p['w2b'], p['b2b'])

    # Tiny (N*HW*2 floats) sublane<->lane relayout done by XLA between the two
    # kernels, so both Pallas kernels only ever see layout-safe views.
    zt = jnp.transpose(z.reshape(N, H, W, 2), (0, 3, 1, 2))       # (N, 2, H, W)

    # ---------------- kernel B: separable bilinear x4 upsample ----------------
    wh = jnp.asarray(_bilinear_matrix_np(H, 4))                   # (4H, H)
    wwt = jnp.asarray(_bilinear_matrix_np(W, 4).T)                # (W, 4W)

    up_in_shapes = [(1, 1, H, W), (W, 4 * W), (4 * H, H)]
    up_out_block = (1, 1, 4 * H, 4 * W)
    vmem_b = 2 * sum(_padded_block_bytes(s) for s in up_in_shapes + [up_out_block])
    vmem_b = int(min(max(vmem_b + (4 << 20), 32 << 20), 100 << 20))

    out = pl.pallas_call(
        _upsample_kernel,
        out_shape=jax.ShapeDtypeStruct((N, 2, 4 * H, 4 * W), jnp.float32),
        grid_spec=pltpu.PrefetchScalarGridSpec(
            num_scalar_prefetch=0,
            grid=(N, 2),
            in_specs=[pl.BlockSpec((1, 1, H, W), lambda n, c: (n, c, 0, 0)),
                      pl.BlockSpec((W, 4 * W), lambda n, c: (0, 0)),
                      pl.BlockSpec((4 * H, H), lambda n, c: (0, 0))],
            out_specs=pl.BlockSpec(up_out_block, lambda n, c: (n, c, 0, 0)),
        ),
        compiler_params=pltpu.CompilerParams(
            dimension_semantics=("parallel", "parallel"),
            vmem_limit_bytes=vmem_b,
        ),
    )(zt, wwt, wh)
    return out                                                    # NCHW (N, 2, 4H, 4W)


def init_params(key, C):
    ks = jax.random.split(key, 12)

    def w(k, shape, scale=0.1):
        return scale * jax.random.normal(k, shape, jnp.float32)

    p = dict(
        w1a=w(ks[0], (C, C)), b1a=w(ks[1], (1, C)),
        w1b=w(ks[2], (C, C)), b1b=w(ks[3], (1, C)),
        dw=w(ks[4], (9, C)), dwb=w(ks[5], (1, C)),   # depthwise 3x3 taps, row = ki*3+kj
        pw=w(ks[6], (C, C)), pwb=w(ks[7], (1, C)),
        w2a=w(ks[8], (C, C)), b2a=w(ks[9], (1, C)),
        w2b=w(ks[10], (C, 2)), b2b=w(ks[11], (1, 2)),
    )
    # eval-mode BatchNorm2d folded: scale = gamma / sqrt(var + eps); bias = beta - mean*scale
    gamma = 1.0 + 0.05 * jnp.arange(C, dtype=jnp.float32)
    beta = 0.02 * jnp.arange(C, dtype=jnp.float32)
    mean = 0.01 * jnp.arange(C, dtype=jnp.float32)
    var = 1.0 + 0.03 * jnp.arange(C, dtype=jnp.float32)
    s = gamma * lax.rsqrt(var + 1e-5)
    p['bns'] = s.reshape(1, C)
    p['bnb'] = (beta - mean * s).reshape(1, C)
    return p


def reference_forward(x_nchw, p):
    """Pure-JAX reference with identical math (same default precision mode)."""
    N, C, H, W = x_nchw.shape
    x = jnp.transpose(x_nchw, (0, 2, 3, 1)).astype(jnp.float32)

    def lin(v, wm, b):
        return jnp.einsum('nhwc,cd->nhwd', v, wm) + b[0]

    x1 = lin(_gelu(lin(x, p['w1a'], p['b1a'])), p['w1b'], p['b1b'])
    xp = jnp.pad(x1, ((0, 0), (1, 1), (1, 1), (0, 0)))
    dwk = p['dw'].reshape(3, 3, C)
    acc = jnp.zeros_like(x1)
    for ki in range(3):
        for kj in range(3):
            acc = acc + xp[:, ki:ki + H, kj:kj + W, :] * dwk[ki, kj]
    acc = acc + p['dwb'][0]
    pw = lin(acc, p['pw'], p['pwb'])
    x_d = jnp.maximum(pw * p['bns'][0] + p['bnb'][0], 0.0)
    y = x1 + x_d
    z = lin(_gelu(lin(y, p['w2a'], p['b2a'])), p['w2b'], p['b2b'])      # (N,H,W,2)
    wh = jnp.asarray(_bilinear_matrix_np(H, 4))
    ww = jnp.asarray(_bilinear_matrix_np(W, 4))
    return jnp.einsum('oh,pw,nhwc->ncop', wh, ww, z)                    # (N,2,4H,4W)


if __name__ == "__main__":
    N, C, H, W = 2, 8, 16, 16
    key = jax.random.PRNGKey(0)
    kx, kp = jax.random.split(key)
    x_nchw = jax.random.normal(kx, (N, C, H, W), dtype=jnp.float32)
    params = init_params(kp, C)

    out = changedetector_forward(x_nchw, params)
    out = jax.block_until_ready(out)

    assert out.shape == (N, 2, 4 * H, 4 * W), out.shape
    ref = reference_forward(x_nchw, params)
    diff = float(np.max(np.abs(np.asarray(out) - np.asarray(ref))))
    if not np.allclose(np.asarray(out), np.asarray(ref), atol=5e-3, rtol=5e-3):
        raise AssertionError(f"kernel vs reference mismatch, max abs diff = {diff}")
    print("KERNEL_OK")
</pallas_src>

<mosaic_0001>
module attributes {stable_mosaic.version = 11 : i64} {
  func.func @_features_kernel(%arg0: i32, %arg1: memref<1x256x8xf32, #tpu.memory_space<vmem>>, %arg2: memref<8x8xf32, #tpu.memory_space<vmem>>, %arg3: memref<1x8xf32, #tpu.memory_space<vmem>>, %arg4: memref<8x8xf32, #tpu.memory_space<vmem>>, %arg5: memref<1x8xf32, #tpu.memory_space<vmem>>, %arg6: memref<9x8xf32, #tpu.memory_space<vmem>>, %arg7: memref<1x8xf32, #tpu.memory_space<vmem>>, %arg8: memref<8x8xf32, #tpu.memory_space<vmem>>, %arg9: memref<1x8xf32, #tpu.memory_space<vmem>>, %arg10: memref<1x8xf32, #tpu.memory_space<vmem>>, %arg11: memref<1x8xf32, #tpu.memory_space<vmem>>, %arg12: memref<8x8xf32, #tpu.memory_space<vmem>>, %arg13: memref<1x8xf32, #tpu.memory_space<vmem>>, %arg14: memref<8x2xf32, #tpu.memory_space<vmem>>, %arg15: memref<1x2xf32, #tpu.memory_space<vmem>>, %arg16: memref<1x256x2xf32, #tpu.memory_space<vmem>>, %arg17: memref<18x18x8xf32, #tpu.memory_space<vmem>>) attributes {dimension_semantics = [#tpu.dimension_semantics<parallel>], iteration_bounds = array<i64: 2>, scalar_prefetch = 0 : i64, scratch_operands = 1 : i64, tpu.core_type = #tpu.core_type<tc>, window_params = [{transform_indices = @transform_0, window_bounds = array<i64: 1, 256, 8>}, {pipeline_mode = #tpu.pipeline_mode<synchronous>, transform_indices = @transform_1, window_bounds = array<i64: 8, 8>}, {pipeline_mode = #tpu.pipeline_mode<synchronous>, transform_indices = @transform_2, window_bounds = array<i64: 1, 8>}, {pipeline_mode = #tpu.pipeline_mode<synchronous>, transform_indices = @transform_3, window_bounds = array<i64: 8, 8>}, {pipeline_mode = #tpu.pipeline_mode<synchronous>, transform_indices = @transform_4, window_bounds = array<i64: 1, 8>}, {pipeline_mode = #tpu.pipeline_mode<synchronous>, transform_indices = @transform_5, window_bounds = array<i64: 9, 8>}, {pipeline_mode = #tpu.pipeline_mode<synchronous>, transform_indices = @transform_6, window_bounds = array<i64: 1, 8>}, {pipeline_mode = #tpu.pipeline_mode<synchronous>, transform_indices = @transform_7, window_bounds = array<i64: 8, 8>}, {pipeline_mode = #tpu.pipeline_mode<synchronous>, transform_indices = @transform_8, window_bounds = array<i64: 1, 8>}, {pipeline_mode = #tpu.pipeline_mode<synchronous>, transform_indices = @transform_9, window_bounds = array<i64: 1, 8>}, {pipeline_mode = #tpu.pipeline_mode<synchronous>, transform_indices = @transform_10, window_bounds = array<i64: 1, 8>}, {pipeline_mode = #tpu.pipeline_mode<synchronous>, transform_indices = @transform_11, window_bounds = array<i64: 8, 8>}, {pipeline_mode = #tpu.pipeline_mode<synchronous>, transform_indices = @transform_12, window_bounds = array<i64: 1, 8>}, {pipeline_mode = #tpu.pipeline_mode<synchronous>, transform_indices = @transform_13, window_bounds = array<i64: 8, 2>}, {pipeline_mode = #tpu.pipeline_mode<synchronous>, transform_indices = @transform_14, window_bounds = array<i64: 1, 2>}, {transform_indices = @transform_15, window_bounds = array<i64: 1, 256, 2>}]} {
    %c0 = arith.constant 0 : index
    %c0_0 = arith.constant 0 : index
    %c0_1 = arith.constant 0 : index
    %0 = vector.load %arg1[%c0, %c0_0, %c0_1] : memref<1x256x8xf32, #tpu.memory_space<vmem>>, vector<1x256x8xf32>
    %1 = vector.shape_cast %0 : vector<1x256x8xf32> to vector<256x8xf32>
    %c0_2 = arith.constant 0 : index
    %c0_3 = arith.constant 0 : index
    %2 = vector.load %arg2[%c0_2, %c0_3] : memref<8x8xf32, #tpu.memory_space<vmem>>, vector<8x8xf32>
    %cst = arith.constant dense<0.000000e+00> : vector<256x8xf32>
    %3 = tpu.matmul %1, %2, %cst {dimension_numbers = #tpu.dot_dimension_numbers<[1], [0], [0], [1], [0, 0, 1, 1], [], []>} : vector<256x8xf32>, vector<8x8xf32>, vector<256x8xf32> -> vector<256x8xf32>
    %c0_4 = arith.constant 0 : index
    %c0_5 = arith.constant 0 : index
    %4 = vector.load %arg3[%c0_4, %c0_5] : memref<1x8xf32, #tpu.memory_space<vmem>>, vector<1x8xf32>
    %5 = vector.broadcast %4 : vector<1x8xf32> to vector<256x8xf32>
    %6 = arith.addf %3, %5 : vector<256x8xf32>
    %cst_6 = arith.constant 5.000000e-01 : f32
    %7 = vector.broadcast %cst_6 : f32 to vector<256x8xf32>
    %8 = arith.mulf %7, %6 : vector<256x8xf32>
    %cst_7 = arith.constant 0.707106769 : f32
    %9 = vector.broadcast %cst_7 : f32 to vector<256x8xf32>
    %10 = arith.mulf %6, %9 : vector<256x8xf32>
    %cst_8 = arith.constant 0.000000e+00 : f32
    %11 = vector.broadcast %cst_8 : f32 to vector<256x8xf32>
    %12 = arith.cmpf oge, %10, %11 : vector<256x8xf32>
    %cst_9 = arith.constant 1.000000e+00 : f32
    %cst_10 = arith.constant -1.000000e+00 : f32
    %13 = vector.broadcast %cst_9 : f32 to vector<256x8xf32>
    %14 = vector.broadcast %cst_10 : f32 to vector<256x8xf32>
    %15 = arith.select %12, %13, %14 : vector<256x8xi1>, vector<256x8xf32>
    %16 = math.absf %10 : vector<256x8xf32>
    %cst_11 = arith.constant 0.327591091 : f32
    %17 = vector.broadcast %cst_11 : f32 to vector<256x8xf32>
    %18 = arith.mulf %17, %16 : vector<256x8xf32>
    %cst_12 = arith.constant 1.000000e+00 : f32
    %19 = vector.broadcast %cst_12 : f32 to vector<256x8xf32>
    %20 = arith.addf %19, %18 : vector<256x8xf32>
    %cst_13 = arith.constant 1.000000e+00 : f32
    %21 = vector.broadcast %cst_13 : f32 to vector<256x8xf32>
    %22 = arith.divf %21, %20 : vector<256x8xf32>
    %cst_14 = arith.constant 1.06140542 : f32
    %23 = vector.broadcast %cst_14 : f32 to vector<256x8xf32>
    %24 = arith.mulf %23, %22 : vector<256x8xf32>
    %cst_15 = arith.constant -1.45315206 : f32
    %25 = vector.broadcast %cst_15 : f32 to vector<256x8xf32>
    %26 = arith.addf %24, %25 : vector<256x8xf32>
    %27 = arith.mulf %26, %22 : vector<256x8xf32>
    %cst_16 = arith.constant 1.42141378 : f32
    %28 = vector.broadcast %cst_16 : f32 to vector<256x8xf32>
    %29 = arith.addf %27, %28 : vector<256x8xf32>
    %30 = arith.mulf %29, %22 : vector<256x8xf32>
    %cst_17 = arith.constant -0.284496725 : f32
    %31 = vector.broadcast %cst_17 : f32 to vector<256x8xf32>
    %32 = arith.addf %30, %31 : vector<256x8xf32>
    %33 = arith.mulf %32, %22 : vector<256x8xf32>
    %cst_18 = arith.constant 0.254829586 : f32
    %34 = vector.broadcast %cst_18 : f32 to vector<256x8xf32>
    %35 = arith.addf %33, %34 : vector<256x8xf32>
    %36 = arith.mulf %35, %22 : vector<256x8xf32>
    %cst_19 = arith.constant 0.000000e+00 : f32
    %37 = vector.broadcast %cst_19 : f32 to vector<256x8xf32>
    %38 = arith.subf %37, %16 : vector<256x8xf32>
    %39 = arith.mulf %38, %16 : vector<256x8xf32>
    %40 = math.exp %39 : vector<256x8xf32>
    %41 = arith.mulf %36, %40 : vector<256x8xf32>
    %cst_20 = arith.constant 1.000000e+00 : f32
    %42 = vector.broadcast %cst_20 : f32 to vector<256x8xf32>
    %43 = arith.subf %42, %41 : vector<256x8xf32>
    %44 = arith.mulf %15, %43 : vector<256x8xf32>
    %cst_21 = arith.constant 1.000000e+00 : f32
    %45 = vector.broadcast %cst_21 : f32 to vector<256x8xf32>
    %46 = arith.addf %45, %44 : vector<256x8xf32>
    %47 = arith.mulf %8, %46 : vector<256x8xf32>
    %c0_22 = arith.constant 0 : index
    %c0_23 = arith.constant 0 : index
    %48 = vector.load %arg4[%c0_22, %c0_23] : memref<8x8xf32, #tpu.memory_space<vmem>>, vector<8x8xf32>
    %cst_24 = arith.constant dense<0.000000e+00> : vector<256x8xf32>
    %49 = tpu.matmul %47, %48, %cst_24 {dimension_numbers = #tpu.dot_dimension_numbers<[1], [0], [0], [1], [0, 0, 1, 1], [], []>} : vector<256x8xf32>, vector<8x8xf32>, vector<256x8xf32> -> vector<256x8xf32>
    %c0_25 = arith.constant 0 : index
    %c0_26 = arith.constant 0 : index
    %50 = vector.load %arg5[%c0_25, %c0_26] : memref<1x8xf32, #tpu.memory_space<vmem>>, vector<1x8xf32>
    %51 = vector.broadcast %50 : vector<1x8xf32> to vector<256x8xf32>
    %52 = arith.addf %49, %51 : vector<256x8xf32>
    %cst_27 = arith.constant 0.000000e+00 : f32
    %53 = vector.broadcast %cst_27 : f32 to vector<18x18x8xf32>
    %c0_28 = arith.constant 0 : index
    %c0_29 = arith.constant 0 : index
    %c0_30 = arith.constant 0 : index
    %54 = vector.load %arg17[%c0_28, %c0_29, %c0_30] : memref<18x18x8xf32, #tpu.memory_space<vmem>>, vector<18x18x8xf32>
    tpu.vector_store %arg17[%c0_28, %c0_29, %c0_30], %53 {strides = array<i32>} : memref<18x18x8xf32, #tpu.memory_space<vmem>>, vector<18x18x8xf32>,
    %55 = vector.shape_cast %52 : vector<256x8xf32> to vector<16x16x8xf32>
    %c1 = arith.constant 1 : index
    %c1_31 = arith.constant 1 : index
    %c0_32 = arith.constant 0 : index
    %56 = vector.load %arg17[%c1, %c1_31, %c0_32] : memref<18x18x8xf32, #tpu.memory_space<vmem>>, vector<16x16x8xf32>
    tpu.vector_store %arg17[%c1, %c1_31, %c0_32], %55 {strides = array<i32>} : memref<18x18x8xf32, #tpu.memory_space<vmem>>, vector<16x16x8xf32>,
    %c0_33 = arith.constant 0 : index
    %c0_34 = arith.constant 0 : index
    %57 = vector.load %arg6[%c0_33, %c0_34] : memref<9x8xf32, #tpu.memory_space<vmem>>, vector<9x8xf32>
    %cst_35 = arith.constant 0.000000e+00 : f32
    %58 = vector.broadcast %cst_35 : f32 to vector<16x16x8xf32>
    %59 = vector.extract_strided_slice %57 {offsets = [0, 0], sizes = [1, 8], strides = [1, 1]} : vector<9x8xf32> to vector<1x8xf32>
    %60 = vector.shape_cast %59 : vector<1x8xf32> to vector<1x1x8xf32>
    %c0_36 = arith.constant 0 : index
    %c0_37 = arith.constant 0 : index
    %c0_38 = arith.constant 0 : index
    %61 = vector.load %arg17[%c0_36, %c0_37, %c0_38] : memref<18x18x8xf32, #tpu.memory_space<vmem>>, vector<16x16x8xf32>
    %62 = vector.broadcast %60 : vector<1x1x8xf32> to vector<16x16x8xf32>
    %63 = arith.mulf %61, %62 : vector<16x16x8xf32>
    %64 = arith.addf %58, %63 : vector<16x16x8xf32>
    %65 = vector.extract_strided_slice %57 {offsets = [1, 0], sizes = [1, 8], strides = [1, 1]} : vector<9x8xf32> to vector<1x8xf32>
    %66 = vector.shape_cast %65 : vector<1x8xf32> to vector<1x1x8xf32>
    %c0_39 = arith.constant 0 : index
    %c1_40 = arith.constant 1 : index
    %c0_41 = arith.constant 0 : index
    %67 = vector.load %arg17[%c0_39, %c1_40, %c0_41] : memref<18x18x8xf32, #tpu.memory_space<vmem>>, vector<16x16x8xf32>
    %68 = vector.broadcast %66 : vector<1x1x8xf32> to vector<16x16x8xf32>
    %69 = arith.mulf %67, %68 : vector<16x16x8xf32>
    %70 = arith.addf %64, %69 : vector<16x16x8xf32>
    %71 = vector.extract_strided_slice %57 {offsets = [2, 0], sizes = [1, 8], strides = [1, 1]} : vector<9x8xf32> to vector<1x8xf32>
    %72 = vector.shape_cast %71 : vector<1x8xf32> to vector<1x1x8xf32>
    %c0_42 = arith.constant 0 : index
    %c2 = arith.constant 2 : index
    %c0_43 = arith.constant 0 : index
    %73 = vector.load %arg17[%c0_42, %c2, %c0_43] : memref<18x18x8xf32, #tpu.memory_space<vmem>>, vector<16x16x8xf32>
    %74 = vector.broadcast %72 : vector<1x1x8xf32> to vector<16x16x8xf32>
    %75 = arith.mulf %73, %74 : vector<16x16x8xf32>
    %76 = arith.addf %70, %75 : vector<16x16x8xf32>
    %77 = vector.extract_strided_slice %57 {offsets = [3, 0], sizes = [1, 8], strides = [1, 1]} : vector<9x8xf32> to vector<1x8xf32>
    %78 = vector.shape_cast %77 : vector<1x8xf32> to vector<1x1x8xf32>
    %c1_44 = arith.constant 1 : index
    %c0_45 = arith.constant 0 : index
    %c0_46 = arith.constant 0 : index
    %79 = vector.load %arg17[%c1_44, %c0_45, %c0_46] : memref<18x18x8xf32, #tpu.memory_space<vmem>>, vector<16x16x8xf32>
    %80 = vector.broadcast %78 : vector<1x1x8xf32> to vector<16x16x8xf32>
    %81 = arith.mulf %79, %80 : vector<16x16x8xf32>
    %82 = arith.addf %76, %81 : vector<16x16x8xf32>
    %83 = vector.extract_strided_slice %57 {offsets = [4, 0], sizes = [1, 8], strides = [1, 1]} : vector<9x8xf32> to vector<1x8xf32>
    %84 = vector.shape_cast %83 : vector<1x8xf32> to vector<1x1x8xf32>
    %c1_47 = arith.constant 1 : index
    %c1_48 = arith.constant 1 : index
    %c0_49 = arith.constant 0 : index
    %85 = vector.load %arg17[%c1_47, %c1_48, %c0_49] : memref<18x18x8xf32, #tpu.memory_space<vmem>>, vector<16x16x8xf32>
    %86 = vector.broadcast %84 : vector<1x1x8xf32> to vector<16x16x8xf32>
    %87 = arith.mulf %85, %86 : vector<16x16x8xf32>
    %88 = arith.addf %82, %87 : vector<16x16x8xf32>
    %89 = vector.extract_strided_slice %57 {offsets = [5, 0], sizes = [1, 8], strides = [1, 1]} : vector<9x8xf32> to vector<1x8xf32>
    %90 = vector.shape_cast %89 : vector<1x8xf32> to vector<1x1x8xf32>
    %c1_50 = arith.constant 1 : index
    %c2_51 = arith.constant 2 : index
    %c0_52 = arith.constant 0 : index
    %91 = vector.load %arg17[%c1_50, %c2_51, %c0_52] : memref<18x18x8xf32, #tpu.memory_space<vmem>>, vector<16x16x8xf32>
    %92 = vector.broadcast %90 : vector<1x1x8xf32> to vector<16x16x8xf32>
    %93 = arith.mulf %91, %92 : vector<16x16x8xf32>
    %94 = arith.addf %88, %93 : vector<16x16x8xf32>
    %95 = vector.extract_strided_slice %57 {offsets = [6, 0], sizes = [1, 8], strides = [1, 1]} : vector<9x8xf32> to vector<1x8xf32>
    %96 = vector.shape_cast %95 : vector<1x8xf32> to vector<1x1x8xf32>
    %c2_53 = arith.constant 2 : index
    %c0_54 = arith.constant 0 : index
    %c0_55 = arith.constant 0 : index
    %97 = vector.load %arg17[%c2_53, %c0_54, %c0_55] : memref<18x18x8xf32, #tpu.memory_space<vmem>>, vector<16x16x8xf32>
    %98 = vector.broadcast %96 : vector<1x1x8xf32> to vector<16x16x8xf32>
    %99 = arith.mulf %97, %98 : vector<16x16x8xf32>
    %100 = arith.addf %94, %99 : vector<16x16x8xf32>
    %101 = vector.extract_strided_slice %57 {offsets = [7, 0], sizes = [1, 8], strides = [1, 1]} : vector<9x8xf32> to vector<1x8xf32>
    %102 = vector.shape_cast %101 : vector<1x8xf32> to vector<1x1x8xf32>
    %c2_56 = arith.constant 2 : index
    %c1_57 = arith.constant 1 : index
    %c0_58 = arith.constant 0 : index
    %103 = vector.load %arg17[%c2_56, %c1_57, %c0_58] : memref<18x18x8xf32, #tpu.memory_space<vmem>>, vector<16x16x8xf32>
    %104 = vector.broadcast %102 : vector<1x1x8xf32> to vector<16x16x8xf32>
    %105 = arith.mulf %103, %104 : vector<16x16x8xf32>
    %106 = arith.addf %100, %105 : vector<16x16x8xf32>
    %107 = vector.extract_strided_slice %57 {offsets = [8, 0], sizes = [1, 8], strides = [1, 1]} : vector<9x8xf32> to vector<1x8xf32>
    %108 = vector.shape_cast %107 : vector<1x8xf32> to vector<1x1x8xf32>
    %c2_59 = arith.constant 2 : index
    %c2_60 = arith.constant 2 : index
    %c0_61 = arith.constant 0 : index
    %109 = vector.load %arg17[%c2_59, %c2_60, %c0_61] : memref<18x18x8xf32, #tpu.memory_space<vmem>>, vector<16x16x8xf32>
    %110 = vector.broadcast %108 : vector<1x1x8xf32> to vector<16x16x8xf32>
    %111 = arith.mulf %109, %110 : vector<16x16x8xf32>
    %112 = arith.addf %106, %111 : vector<16x16x8xf32>
    %c0_62 = arith.constant 0 : index
    %c0_63 = arith.constant 0 : index
    %113 = vector.load %arg7[%c0_62, %c0_63] : memref<1x8xf32, #tpu.memory_space<vmem>>, vector<1x8xf32>
    %114 = vector.shape_cast %113 : vector<1x8xf32> to vector<1x1x8xf32>
    %115 = vector.broadcast %114 : vector<1x1x8xf32> to vector<16x16x8xf32>
    %116 = arith.addf %112, %115 : vector<16x16x8xf32>
    %117 = vector.shape_cast %116 : vector<16x16x8xf32> to vector<256x8xf32>
    %c0_64 = arith.constant 0 : index
    %c0_65 = arith.constant 0 : index
    %118 = vector.load %arg8[%c0_64, %c0_65] : memref<8x8xf32, #tpu.memory_space<vmem>>, vector<8x8xf32>
    %cst_66 = arith.constant dense<0.000000e+00> : vector<256x8xf32>
    %119 = tpu.matmul %117, %118, %cst_66 {dimension_numbers = #tpu.dot_dimension_numbers<[1], [0], [0], [1], [0, 0, 1, 1], [], []>} : vector<256x8xf32>, vector<8x8xf32>, vector<256x8xf32> -> vector<256x8xf32>
    %c0_67 = arith.constant 0 : index
    %c0_68 = arith.constant 0 : index
    %120 = vector.load %arg9[%c0_67, %c0_68] : memref<1x8xf32, #tpu.memory_space<vmem>>, vector<1x8xf32>
    %121 = vector.broadcast %120 : vector<1x8xf32> to vector<256x8xf32>
    %122 = arith.addf %119, %121 : vector<256x8xf32>
    %c0_69 = arith.constant 0 : index
    %c0_70 = arith.constant 0 : index
    %123 = vector.load %arg10[%c0_69, %c0_70] : memref<1x8xf32, #tpu.memory_space<vmem>>, vector<1x8xf32>
    %124 = vector.broadcast %123 : vector<1x8xf32> to vector<256x8xf32>
    %125 = arith.mulf %122, %124 : vector<256x8xf32>
    %c0_71 = arith.constant 0 : index
    %c0_72 = arith.constant 0 : index
    %126 = vector.load %arg11[%c0_71, %c0_72] : memref<1x8xf32, #tpu.memory_space<vmem>>, vector<1x8xf32>
    %127 = vector.broadcast %126 : vector<1x8xf32> to vector<256x8xf32>
    %128 = arith.addf %125, %127 : vector<256x8xf32>
    %cst_73 = arith.constant 0.000000e+00 : f32
    %129 = vector.broadcast %cst_73 : f32 to vector<256x8xf32>
    %130 = arith.maximumf %128, %129 : vector<256x8xf32>
    %131 = arith.addf %52, %130 : vector<256x8xf32>
    %c0_74 = arith.constant 0 : index
    %c0_75 = arith.constant 0 : index
    %132 = vector.load %arg12[%c0_74, %c0_75] : memref<8x8xf32, #tpu.memory_space<vmem>>, vector<8x8xf32>
    %cst_76 = arith.constant dense<0.000000e+00> : vector<256x8xf32>
    %133 = tpu.matmul %131, %132, %cst_76 {dimension_numbers = #tpu.dot_dimension_numbers<[1], [0], [0], [1], [0, 0, 1, 1], [], []>} : vector<256x8xf32>, vector<8x8xf32>, vector<256x8xf32> -> vector<256x8xf32>
    %c0_77 = arith.constant 0 : index
    %c0_78 = arith.constant 0 : index
    %134 = vector.load %arg13[%c0_77, %c0_78] : memref<1x8xf32, #tpu.memory_space<vmem>>, vector<1x8xf32>
    %135 = vector.broadcast %134 : vector<1x8xf32> to vector<256x8xf32>
    %136 = arith.addf %133, %135 : vector<256x8xf32>
    %cst_79 = arith.constant 5.000000e-01 : f32
    %137 = vector.broadcast %cst_79 : f32 to vector<256x8xf32>
    %138 = arith.mulf %137, %136 : vector<256x8xf32>
    %cst_80 = arith.constant 0.707106769 : f32
    %139 = vector.broadcast %cst_80 : f32 to vector<256x8xf32>
    %140 = arith.mulf %136, %139 : vector<256x8xf32>
    %cst_81 = arith.constant 0.000000e+00 : f32
    %141 = vector.broadcast %cst_81 : f32 to vector<256x8xf32>
    %142 = arith.cmpf oge, %140, %141 : vector<256x8xf32>
    %cst_82 = arith.constant 1.000000e+00 : f32
    %cst_83 = arith.constant -1.000000e+00 : f32
    %143 = vector.broadcast %cst_82 : f32 to vector<256x8xf32>
    %144 = vector.broadcast %cst_83 : f32 to vector<256x8xf32>
    %145 = arith.select %142, %143, %144 : vector<256x8xi1>, vector<256x8xf32>
    %146 = math.absf %140 : vector<256x8xf32>
    %cst_84 = arith.constant 0.327591091 : f32
    %147 = vector.broadcast %cst_84 : f32 to vector<256x8xf32>
    %148 = arith.mulf %147, %146 : vector<256x8xf32>
    %cst_85 = arith.constant 1.000000e+00 : f32
    %149 = vector.broadcast %cst_85 : f32 to vector<256x8xf32>
    %150 = arith.addf %149, %148 : vector<256x8xf32>
    %cst_86 = arith.constant 1.000000e+00 : f32
    %151 = vector.broadcast %cst_86 : f32 to vector<256x8xf32>
    %152 = arith.divf %151, %150 : vector<256x8xf32>
    %cst_87 = arith.constant 1.06140542 : f32
    %153 = vector.broadcast %cst_87 : f32 to vector<256x8xf32>
    %154 = arith.mulf %153, %152 : vector<256x8xf32>
    %cst_88 = arith.constant -1.45315206 : f32
    %155 = vector.broadcast %cst_88 : f32 to vector<256x8xf32>
    %156 = arith.addf %154, %155 : vector<256x8xf32>
    %157 = arith.mulf %156, %152 : vector<256x8xf32>
    %cst_89 = arith.constant 1.42141378 : f32
    %158 = vector.broadcast %cst_89 : f32 to vector<256x8xf32>
    %159 = arith.addf %157, %158 : vector<256x8xf32>
    %160 = arith.mulf %159, %152 : vector<256x8xf32>
    %cst_90 = arith.constant -0.284496725 : f32
    %161 = vector.broadcast %cst_90 : f32 to vector<256x8xf32>
    %162 = arith.addf %160, %161 : vector<256x8xf32>
    %163 = arith.mulf %162, %152 : vector<256x8xf32>
    %cst_91 = arith.constant 0.254829586 : f32
    %164 = vector.broadcast %cst_91 : f32 to vector<256x8xf32>
    %165 = arith.addf %163, %164 : vector<256x8xf32>
    %166 = arith.mulf %165, %152 : vector<256x8xf32>
    %cst_92 = arith.constant 0.000000e+00 : f32
    %167 = vector.broadcast %cst_92 : f32 to vector<256x8xf32>
    %168 = arith.subf %167, %146 : vector<256x8xf32>
    %169 = arith.mulf %168, %146 : vector<256x8xf32>
    %170 = math.exp %169 : vector<256x8xf32>
    %171 = arith.mulf %166, %170 : vector<256x8xf32>
    %cst_93 = arith.constant 1.000000e+00 : f32
    %172 = vector.broadcast %cst_93 : f32 to vector<256x8xf32>
    %173 = arith.subf %172, %171 : vector<256x8xf32>
    %174 = arith.mulf %145, %173 : vector<256x8xf32>
    %cst_94 = arith.constant 1.000000e+00 : f32
    %175 = vector.broadcast %cst_94 : f32 to vector<256x8xf32>
    %176 = arith.addf %175, %174 : vector<256x8xf32>
    %177 = arith.mulf %138, %176 : vector<256x8xf32>
    %c0_95 = arith.constant 0 : index
    %c0_96 = arith.constant 0 : index
    %178 = vector.load %arg14[%c0_95, %c0_96] : memref<8x2xf32, #tpu.memory_space<vmem>>, vector<8x2xf32>
    %cst_97 = arith.constant dense<0.000000e+00> : vector<256x2xf32>
    %179 = tpu.matmul %177, %178, %cst_97 {dimension_numbers = #tpu.dot_dimension_numbers<[1], [0], [0], [1], [0, 0, 1, 1], [], []>} : vector<256x8xf32>, vector<8x2xf32>, vector<256x2xf32> -> vector<256x2xf32>
    %c0_98 = arith.constant 0 : index
    %c0_99 = arith.constant 0 : index
    %180 = vector.load %arg15[%c0_98, %c0_99] : memref<1x2xf32, #tpu.memory_space<vmem>>, vector<1x2xf32>
    %181 = vector.broadcast %180 : vector<1x2xf32> to vector<256x2xf32>
    %182 = arith.addf %179, %181 : vector<256x2xf32>
    %c0_100 = arith.constant 0 : index
    %c0_101 = arith.constant 0 : index
    %c0_102 = arith.constant 0 : index
    %183 = vector.load %arg16[%c0_100, %c0_101, %c0_102] : memref<1x256x2xf32, #tpu.memory_space<vmem>>, vector<1x256x2xf32>
    %184 = vector.shape_cast %183 : vector<1x256x2xf32> to vector<256x2xf32>
    %185 = vector.shape_cast %182 : vector<256x2xf32> to vector<1x256x2xf32>
    tpu.vector_store %arg16[%c0_100, %c0_101, %c0_102], %185 {strides = array<i32>} : memref<1x256x2xf32, #tpu.memory_space<vmem>>, vector<1x256x2xf32>,
    return
  }
  func.func @transform_0(%arg0: i32) -> (i32, i32, i32) {
    %c0_i32 = arith.constant 0 : i32
    %c0_i32_0 = arith.constant 0 : i32
    %c0_i32_1 = arith.constant 0 : i32
    return %arg0, %c0_i32, %c0_i32_0 : i32, i32, i32
  }
  func.func @transform_1(%arg0: i32) -> (i32, i32) {
    %c0_i32 = arith.constant 0 : i32
    %c0_i32_0 = arith.constant 0 : i32
    %c0_i32_1 = arith.constant 0 : i32
    return %c0_i32, %c0_i32_0 : i32, i32
  }
  func.func @transform_2(%arg0: i32) -> (i32, i32) {
    %c0_i32 = arith.constant 0 : i32
    %c0_i32_0 = arith.constant 0 : i32
    %c0_i32_1 = arith.constant 0 : i32
    return %c0_i32, %c0_i32_0 : i32, i32
  }
  func.func @transform_3(%arg0: i32) -> (i32, i32) {
    %c0_i32 = arith.constant 0 : i32
    %c0_i32_0 = arith.constant 0 : i32
    %c0_i32_1 = arith.constant 0 : i32
    return %c0_i32, %c0_i32_0 : i32, i32
  }
  func.func @transform_4(%arg0: i32) -> (i32, i32) {
    %c0_i32 = arith.constant 0 : i32
    %c0_i32_0 = arith.constant 0 : i32
    %c0_i32_1 = arith.constant 0 : i32
    return %c0_i32, %c0_i32_0 : i32, i32
  }
  func.func @transform_5(%arg0: i32) -> (i32, i32) {
    %c0_i32 = arith.constant 0 : i32
    %c0_i32_0 = arith.constant 0 : i32
    %c0_i32_1 = arith.constant 0 : i32
    return %c0_i32, %c0_i32_0 : i32, i32
  }
  func.func @transform_6(%arg0: i32) -> (i32, i32) {
    %c0_i32 = arith.constant 0 : i32
    %c0_i32_0 = arith.constant 0 : i32
    %c0_i32_1 = arith.constant 0 : i32
    return %c0_i32, %c0_i32_0 : i32, i32
  }
  func.func @transform_7(%arg0: i32) -> (i32, i32) {
    %c0_i32 = arith.constant 0 : i32
    %c0_i32_0 = arith.constant 0 : i32
    %c0_i32_1 = arith.constant 0 : i32
    return %c0_i32, %c0_i32_0 : i32, i32
  }
  func.func @transform_8(%arg0: i32) -> (i32, i32) {
    %c0_i32 = arith.constant 0 : i32
    %c0_i32_0 = arith.constant 0 : i32
    %c0_i32_1 = arith.constant 0 : i32
    return %c0_i32, %c0_i32_0 : i32, i32
  }
  func.func @transform_9(%arg0: i32) -> (i32, i32) {
    %c0_i32 = arith.constant 0 : i32
    %c0_i32_0 = arith.constant 0 : i32
    %c0_i32_1 = arith.constant 0 : i32
    return %c0_i32, %c0_i32_0 : i32, i32
  }
  func.func @transform_10(%arg0: i32) -> (i32, i32) {
    %c0_i32 = arith.constant 0 : i32
    %c0_i32_0 = arith.constant 0 : i32
    %c0_i32_1 = arith.constant 0 : i32
    return %c0_i32, %c0_i32_0 : i32, i32
  }
  func.func @transform_11(%arg0: i32) -> (i32, i32) {
    %c0_i32 = arith.constant 0 : i32
    %c0_i32_0 = arith.constant 0 : i32
    %c0_i32_1 = arith.constant 0 : i32
    return %c0_i32, %c0_i32_0 : i32, i32
  }
  func.func @transform_12(%arg0: i32) -> (i32, i32) {
    %c0_i32 = arith.constant 0 : i32
    %c0_i32_0 = arith.constant 0 : i32
    %c0_i32_1 = arith.constant 0 : i32
    return %c0_i32, %c0_i32_0 : i32, i32
  }
  func.func @transform_13(%arg0: i32) -> (i32, i32) {
    %c0_i32 = arith.constant 0 : i32
    %c0_i32_0 = arith.constant 0 : i32
    %c0_i32_1 = arith.constant 0 : i32
    return %c0_i32, %c0_i32_0 : i32, i32
  }
  func.func @transform_14(%arg0: i32) -> (i32, i32) {
    %c0_i32 = arith.constant 0 : i32
    %c0_i32_0 = arith.constant 0 : i32
    %c0_i32_1 = arith.constant 0 : i32
    return %c0_i32, %c0_i32_0 : i32, i32
  }
  func.func @transform_15(%arg0: i32) -> (i32, i32, i32) {
    %c0_i32 = arith.constant 0 : i32
    %c0_i32_0 = arith.constant 0 : i32
    %c0_i32_1 = arith.constant 0 : i32
    return %arg0, %c0_i32, %c0_i32_0 : i32, i32, i32
  }
}

</mosaic_0001>

<bundles_post_ra>
// kernel: tpu_custom_call.1
= control target key start
LH: loop header
LB: loop body
LE: loop exit
PB: predicated region body
PF: predicated region fallthrough
CT: control target
= control target key end

     0   :  { %s6121_s18 = smov 0   ;;  %s8889_s0 = inlined_call_operand.vmem [shape: f32[2,256,8], index: 0, kind: input, shape index: {}]   ;;  %s8890_s1 = inlined_call_operand.vmem [shape: f32[8,8], index: 1, kind: input, shape index: {}]   ;;  %s8891_s2 = inlined_call_operand.vmem [shape: f32[1,8], index: 2, kind: input, shape index: {}]   ;;  %s8892_s3 = inlined_call_operand.vmem [shape: f32[8,8], index: 3, kind: input, shape index: {}]   ;;  %s8893_s4 = inlined_call_operand.vmem [shape: f32[1,8], index: 4, kind: input, shape index: {}]   ;;  %s8894_s5 = inlined_call_operand.vmem [shape: f32[9,8], index: 5, kind: input, shape index: {}]   ;;  %s8895_s6 = inlined_call_operand.vmem [shape: f32[1,8], index: 6, kind: input, shape index: {}]   ;;  %s8896_s7 = inlined_call_operand.vmem [shape: f32[8,8], index: 7, kind: input, shape index: {}]   ;;  %s8897_s8 = inlined_call_operand.vmem [shape: f32[1,8], index: 8, kind: input, shape index: {}]   ;;  %s8898_s9 = inlined_call_operand.vmem [shape: f32[1,8], index: 9, kind: input, shape index: {}]   ;;  %s8899_s10 = inlined_call_operand.vmem [shape: f32[1,8], index: 10, kind: input, shape index: {}]   ;;  %s8900_s11 = inlined_call_operand.vmem [shape: f32[8,8], index: 11, kind: input, shape index: {}]   ;;  %s8901_s12 = inlined_call_operand.vmem [shape: f32[1,8], index: 12, kind: input, shape index: {}]   ;;  %s8902_s13 = inlined_call_operand.vmem [shape: f32[8,2], index: 13, kind: input, shape index: {}]   ;;  %s8903_s14 = inlined_call_operand.vmem [shape: f32[1,2], index: 14, kind: input, shape index: {}]   ;;  %s8904_s15 = inlined_call_operand.vmem [shape: f32[2,256,2], index: 15, kind: output, shape index: {}]  }
   0x1 LB: > { %s5161_s19 = sadd.s32 4294967295, %s6037_s18   ;;  %p5165_p0 = scmp.ge.s32.totalorder %s6037_s18, 1  ;;  %s6037_s18 = sphi %s6121_s18, %s25_s18  }
   0x2   : > { %p437_p1 = scmp.lt.s32.totalorder %s6037_s18, 3 }
   0x4   : > { %p438_p2 = pnand %p5165_p0, %p437_p1 }
   0x6   : > { %441 = sbr.rel (%p438_p2) target bundleno = 1519 (0x5ef), region = 80 }
   0xd   : > { %v527_v0 = vld [vmem:[%s8890_s1] sm:$0xff]  ;;  %p485_p3 = scmp.lt.s32.totalorder %s5161_s19, 1  ;;  %vm535_vm0 = vcmask 64512  }
   0xe   : > { %5508 = vmatprep.subr.mxu0 %v527_v0  ;;  %5758 = vmatprep.subr.mxu1 %v527_v0  ;;  %v6209_v33 = vld [vmem:[%s8891_s2] ss:$0 sm:$0xff] }
   0xf   : > { %5509 = vmatpush3.msra.mxu0 %v527_v0  ;;  %5759 = vmatpush3.msra.mxu1 %v527_v0  ;;  %s9012_s19 = smov (!%p485_p3, %s5161_s19), 1 }
  0x10   : > { %s5341_s22 = sshll.u32 %s9012_s19, 8 }
  0x11   : > { %s6140_s25 = scalar_lea.vmem %s8889_s0, %s5341_s22  ;;  %s8745_s30 = scalar_lea.vmem %s8904_s15, %s5341_s22 }
  0x12   : > { %v495_v1 = vld [vmem:[%s6140_s25] sm:$0xff]  ;;  %v496_v3 = vld [vmem:[%s6140_s25 + $0x8] sm:$0xff]  ;;  %v497_v5 = vld [vmem:[%s6140_s25 + $0x10] sm:$0xff] }
  0x13   : > { %v511_v2 = vld [vmem:[%s6140_s25 + $0x80] sm:$0xff]  ;;  %5510 = vmatprep.mubr.msk.f32.mxu0 %vm535_vm0, %v495_v1  ;;  %v512_v4 = vld [vmem:[%s6140_s25 + $0x88] sm:$0xff]  ;;  %v513_v6 = vld [vmem:[%s6140_s25 + $0x90] sm:$0xff] }
  0x14   : > { %5534 = vmatprep.mubr.msk.f32.mxu1 %vm535_vm0, %v511_v2  ;;  %5511 = vmatmul.mubr.msk.f32.vlgmr.msra.gmra.mrb[0].mxu0 %vm535_vm0, %v496_v3  ;;  %v498_v7 = vld [vmem:[%s6140_s25 + $0x18] sm:$0xff]  ;;  %v499_v9 = vld [vmem:[%s6140_s25 + $0x20] sm:$0xff]  ;;  %v500_v11 = vld [vmem:[%s6140_s25 + $0x28] sm:$0xff] }
  0x15   : > { %5535 = vmatmul.mubr.msk.f32.vlgmr.msra.gmra.mrb[0].mxu1 %vm535_vm0, %v512_v4  ;;  %5513 = vmatprep.mubr.msk.f32.mxu0 %vm535_vm0, %v497_v5  ;;  %v514_v8 = vld [vmem:[%s6140_s25 + $0x98] sm:$0xff]  ;;  %v515_v10 = vld [vmem:[%s6140_s25 + $0xa0] sm:$0xff]  ;;  %v516_v12 = vld [vmem:[%s6140_s25 + $0xa8] sm:$0xff] }
  0x16   : > { %5537 = vmatprep.mubr.msk.f32.mxu1 %vm535_vm0, %v513_v6  ;;  %v501_v13 = vld [vmem:[%s6140_s25 + $0x30] sm:$0xff]  ;;  %v502_v15 = vld [vmem:[%s6140_s25 + $0x38] sm:$0xff]  ;;  %v503_v17 = vld [vmem:[%s6140_s25 + $0x40] sm:$0xff] }
  0x17   : > { %v517_v14 = vld [vmem:[%s6140_s25 + $0xb0] sm:$0xff]  ;;  %v518_v16 = vld [vmem:[%s6140_s25 + $0xb8] sm:$0xff]  ;;  %v519_v18 = vld [vmem:[%s6140_s25 + $0xc0] sm:$0xff] }
  0x18   : > { %5514 = vmatmul.mubr.msk.f32.gmra.mrb[2].mxu0 %vm535_vm0, %v498_v7  ;;  %v504_v19 = vld [vmem:[%s6140_s25 + $0x48] sm:$0xff]  ;;  %v505_v21 = vld [vmem:[%s6140_s25 + $0x50] sm:$0xff]  ;;  %v506_v23 = vld [vmem:[%s6140_s25 + $0x58] sm:$0xff] }
  0x19   : > { %5538 = vmatmul.mubr.msk.f32.gmra.mrb[2].mxu1 %vm535_vm0, %v514_v8  ;;  %5516 = vmatprep.mubr.msk.f32.mxu0 %vm535_vm0, %v499_v9  ;;  %v520_v20 = vld [vmem:[%s6140_s25 + $0xc8] sm:$0xff]  ;;  %v521_v22 = vld [vmem:[%s6140_s25 + $0xd0] sm:$0xff]  ;;  %v522_v24 = vld [vmem:[%s6140_s25 + $0xd8] sm:$0xff] }
  0x1a   : > { %5540 = vmatprep.mubr.msk.f32.mxu1 %vm535_vm0, %v515_v10  ;;  %v507_v25 = vld [vmem:[%s6140_s25 + $0x60] sm:$0xff]  ;;  %v508_v27 = vld [vmem:[%s6140_s25 + $0x68] sm:$0xff]  ;;  %v509_v29 = vld [vmem:[%s6140_s25 + $0x70] sm:$0xff] }
  0x1b   : > { %v523_v26 = vld [vmem:[%s6140_s25 + $0xe0] sm:$0xff]  ;;  %v524_v28 = vld [vmem:[%s6140_s25 + $0xe8] sm:$0xff]  ;;  %v525_v30 = vld [vmem:[%s6140_s25 + $0xf0] sm:$0xff] }
  0x1c   : > { %5517 = vmatmul.mubr.msk.f32.gmra.mrb[4].mxu0 %vm535_vm0, %v500_v11  ;;  %v510_v31 = vld [vmem:[%s6140_s25 + $0x78] sm:$0xff]  ;;  %v1721_v8 = vld [vmem:[%s8892_s3] sm:$0xff] }
  0x1d   : > { %5541 = vmatmul.mubr.msk.f32.gmra.mrb[4].mxu1 %vm535_vm0, %v516_v12  ;;  %5519 = vmatprep.mubr.msk.f32.mxu0 %vm535_vm0, %v501_v13  ;;  %v526_v32 = vld [vmem:[%s6140_s25 + $0xf8] sm:$0xff] }
  0x1e   : > { %5543 = vmatprep.mubr.msk.f32.mxu1 %vm535_vm0, %v517_v14  ;;  %5558 = vmatprep.subr.mxu1 %v1721_v8 }
  0x1f   : > { %5559 = vmatpush3.msra.mxu1 %v1721_v8 }
  0x20   : > { %5520 = vmatmul.mubr.msk.f32.gmra.mrb[6].mxu0 %vm535_vm0, %v502_v15 }
  0x21   : > { %5544 = vmatmul.mubr.msk.f32.gmra.mrb[6].mxu1 %vm535_vm0, %v518_v16  ;;  %5522 = vmatprep.mubr.msk.f32.mxu0 %vm535_vm0, %v503_v17 }
  0x22   : > { %5546 = vmatprep.mubr.msk.f32.mxu1 %vm535_vm0, %v519_v18 }
  0x24   : > { %5523 = vmatmul.mubr.msk.f32.gmra.mrb[8].mxu0 %vm535_vm0, %v504_v19 }
  0x25   : > { %5547 = vmatmul.mubr.msk.f32.gmra.mrb[8].mxu1 %vm535_vm0, %v520_v20  ;;  %5525 = vmatprep.mubr.msk.f32.mxu0 %vm535_vm0, %v505_v21 }
  0x26   : > { %5549 = vmatprep.mubr.msk.f32.mxu1 %vm535_vm0, %v521_v22 }
  0x28   : > { %5526 = vmatmul.mubr.msk.f32.gmra.mrb[10].mxu0 %vm535_vm0, %v506_v23 }
  0x29   : > { %5550 = vmatmul.mubr.msk.f32.gmra.mrb[10].mxu1 %vm535_vm0, %v522_v24  ;;  %5528 = vmatprep.mubr.msk.f32.mxu0 %vm535_vm0, %v507_v25 }
  0x2a   : > { %5552 = vmatprep.mubr.msk.f32.mxu1 %vm535_vm0, %v523_v26 }
  0x2c   : > { %5529 = vmatmul.mubr.msk.f32.gmra.mrb[12].mxu0 %vm535_vm0, %v508_v27 }
  0x2d   : > { %5553 = vmatmul.mubr.msk.f32.gmra.mrb[12].mxu1 %vm535_vm0, %v524_v28  ;;  %5531 = vmatprep.mubr.msk.f32.mxu0 %vm535_vm0, %v509_v29 }
  0x2e   : > { %5555 = vmatprep.mubr.msk.f32.mxu1 %vm535_vm0, %v525_v30 }
  0x30   : > { %5532 = vmatmul.mubr.msk.f32.gmra.mrb[14].mxu0 %vm535_vm0, %v510_v31 }
  0x31   : > { %5556 = vmatmul.mubr.msk.f32.gmra.mrb[14].mxu1 %vm535_vm0, %v526_v32 }
  0xe7   : > { %v5512_v34 = vpop.f32.mrb[0].mxu0 }
  0xe8   : > { %v6211_v35 = vpop.f32.mrb[0].mxu1  ;;  %v6214_v36 = vadd.f32 %v5512_v34, %v6209_v33  ;;  %v698_v37 = vpop.f32.mrb[1].mxu0 }
  0xe9   : > { %v6216_v38 = vpop.f32.mrb[1].mxu1  ;;  %v6219_v39 = vadd.f32 %v6209_v33, %v698_v37 }
  0xea   : > { %v6222_v40 = vmul.f32 0.70710677, %v6214_v36 }
  0xeb   : > { %v6225_v41 = vmul.f32 0.70710677, %v6219_v39  ;;  %v5515_v44 = vpop.f32.mrb[2].mxu0 }
  0xec   : > { %v986_v42 = vand.u32 2147483647, %v6222_v40  ;;  %v6229_v47 = vpop.f32.mrb[2].mxu1  ;;  %v708_v49 = vpop.f32.mrb[3].mxu0  ;;  %v6236_v54 = vadd.f32 %v5515_v44, %v6209_v33  ;;  %vm922_vm1 = vcmp.ge.f32.partialorder %v6222_v40, 0.0 }
  0xed   : > { %v985_v43 = vand.u32 2147483647, %v6225_v41  ;;  %v6231_v50 = vpop.f32.mrb[3].mxu1  ;;  %v6252_v61 = vadd.f32 %v6209_v33, %v708_v49  ;;  %vm921_vm2 = vcmp.ge.f32.partialorder %v6225_v41, 0.0  ;;  %v6308_v41 = vadd.f32 %v6211_v35, %v6209_v33 }
  0xee   : > { %v1018_v45 = vmul.f32 0.3275911, %v986_v42  ;;  %v6245_v58 = vmul.f32 0.70710677, %v6236_v54  ;;  %v1434_v1 = vsub.f32 0.0, %v986_v42 }
  0xef   : > { %v1017_v46 = vmul.f32 0.3275911, %v985_v43  ;;  %v5518_v51 = vpop.f32.mrb[4].mxu0  ;;  %v6264_v5 = vmul.f32 0.70710677, %v6252_v61  ;;  %v1433_v12 = vsub.f32 0.0, %v985_v43 }
  0xf0   : > { %v1050_v48 = vadd.f32 1.0, %v1018_v45  ;;  %v6233_v52 = vpop.f32.mrb[4].mxu1  ;;  %v6238_v55 = vpop.f32.mrb[5].mxu0  ;;  %v988_v63 = vand.u32 2147483647, %v6245_v58  ;;  %v1466_v11 = vmul.f32 %v1434_v1, %v986_v42  ;;  %v6287_v42 = vadd.f32 %v5518_v51, %v6209_v33 }
  0xf1   : > { %v1049_v53 = vadd.f32 1.0, %v1017_v46  ;;  %v6240_v56 = vpop.f32.mrb[5].mxu1  ;;  %v987_v9 = vand.u32 2147483647, %v6264_v5  ;;  %v1465_v24 = vmul.f32 %v1433_v12, %v985_v43  ;;  %vm924_vm3 = vcmp.ge.f32.partialorder %v6245_v58, 0.0 }
  0xf2   : > { %5770 = vrcp.f32 %v1050_v48  ;;  %v1020_v2 = vmul.f32 0.3275911, %v988_v63  ;;  %v1499_v23 = vmul.f32 1.442695, %v1466_v11  ;;  %v1436_v29 = vsub.f32 0.0, %v988_v63 }
  0xf3   : > { %v6242_v57 = vpop.f32.mrb[6].mxu0  ;;  %5772 = vrcp.f32 %v1049_v53  ;;  %v1019_v16 = vmul.f32 0.3275911, %v987_v9  ;;  %v1497_v32 = vmul.f32 1.442695, %v1465_v24  ;;  %v1435_v53 = vsub.f32 0.0, %v987_v9 }
  0xf4   : > { %v6247_v59 = vpop.f32.mrb[6].mxu1  ;;  %v6249_v60 = vpop.f32.mrb[7].mxu0  ;;  %v1052_v7 = vadd.f32 1.0, %v1020_v2  ;;  %v1468_v45 = vmul.f32 %v1436_v29, %v988_v63  ;;  %v6292_v8 = vmul.f32 0.70710677, %v6287_v42  ;;  %vm923_vm4 = vcmp.ge.f32.partialorder %v6264_v5, 0.0 }
  0xf5   : > { %v6254_v62 = vpop.f32.mrb[7].mxu1  ;;  %v1051_v20 = vadd.f32 1.0, %v1019_v16 }
  0xf6   : > { %5774 = vrcp.f32 %v1052_v7  ;;  %v1503_v11 = vmul.f32 1.442695, %v1468_v45  ;;  %v6295_v24 = vand.u32 2147483647, %v6292_v8  ;;  %vm926_vm5 = vcmp.ge.f32.partialorder %v6292_v8, 0.0 }
  0xf7   : > { %v6257_v0 = vpop.f32.mrb[8].mxu0  ;;  %5776 = vrcp.f32 %v1051_v20 }
  0xf8   : > { %v6259_v3 = vpop.f32.mrb[8].mxu1  ;;  %v6261_v4 = vpop.f32.mrb[9].mxu0  ;;  %5778 = vpow2.f32 %v1499_v23 }
  0xf9   : > { %v6266_v6 = vpop.f32.mrb[9].mxu1  ;;  %5780 = vpow2.f32 %v1497_v32 }
  0xfa   : > { %5782 = vpow2.f32 %v1503_v11 }
  0xfb   : > { %v6272_v13 = vpop.f32.mrb[10].mxu0 }
  0xfc   : > { %v5771_v10 = vpop.eup %5770  ;;  %v6274_v14 = vpop.f32.mrb[10].mxu1 }
  0xfd   : > { %8935 = vst [vmem:[#allocation3_spill] sm:$0xff] %v6274_v14  ;;  %v1146_v15 = vmul.f32 1.0614054, %v5771_v10  ;;  %v6276_v17 = vpop.f32.mrb[11].mxu0  ;;  %v6278_v18 = vpop.f32.mrb[11].mxu1 }
  0xfe   : > { %8936 = vst [vmem:[#allocation4_spill] sm:$0xff] %v6278_v18  ;;  %v5773_v22 = vpop.eup %5772 }
  0xff   : > { %v1178_v19 = vadd.f32 -1.4531521, %v1146_v15  ;;  %v6280_v21 = vpop.f32.mrb[12].mxu0  ;;  %v1145_v27 = vmul.f32 1.0614054, %v5773_v22 }
 0x100   : > { %v6282_v25 = vpop.f32.mrb[12].mxu1  ;;  %v6284_v28 = vpop.f32.mrb[13].mxu0 }
 0x101   : > { %8937 = vst [vmem:[#allocation5_spill] sm:$0xff] %v6282_v25  ;;  %v1210_v26 = vmul.f32 %v5771_v10, %v1178_v19  ;;  %v1177_v31 = vadd.f32 -1.4531521, %v1145_v27  ;;  %v5775_v44 = vpop.eup %5774  ;;  %v6289_v43 = vpop.f32.mrb[13].mxu1  ;;  %v1467_v19 = vmul.f32 %v1435_v53, %v987_v9  ;;  %v1022_v9 = vmul.f32 0.3275911, %v6295_v24 }
 0x102   : > { %8938 = vst [vmem:[#allocation6_spill] sm:$0xff] %v6289_v43  ;;  %v1148_v49 = vmul.f32 1.0614054, %v5775_v44  ;;  %v5777_v16 = vpop.eup %5776  ;;  %v8943_v43 = vmov -1.0  }
 0x103   : > { %v1242_v30 = vadd.f32 1.4214138, %v1210_v26  ;;  %v1209_v37 = vmul.f32 %v5773_v22, %v1177_v31  ;;  %v5779_v26 = vpop.eup %5778  ;;  %v1147_v27 = vmul.f32 1.0614054, %v5777_v16 }
 0x104   : > { %v1180_v7 = vadd.f32 -1.4531521, %v1148_v49  ;;  %v8905_v49 = vmov -1.0  }
 0x105   : > { %v1274_v34 = vmul.f32 %v5771_v10, %v1242_v30  ;;  %v1241_v48 = vadd.f32 1.4214138, %v1209_v37  ;;  %v1179_v32 = vadd.f32 -1.4531521, %v1147_v27  ;;  %v954_v53 = vsel %vm922_vm1, 1.0, %v8905_v49 }
 0x106   : > { %v1212_v51 = vmul.f32 %v5775_v44, %v1180_v7  ;;  %v6301_v7 = vpop.f32.mrb[14].mxu0 }
 0x107   : > { %v1306_v46 = vadd.f32 -0.28449672, %v1274_v34  ;;  %v1273_v2 = vmul.f32 %v5773_v22, %v1241_v48  ;;  %v1501_v34 = vmul.f32 1.442695, %v1467_v19  ;;  %v1211_v48 = vmul.f32 %v5777_v16, %v1179_v32  ;;  %8939 = vst [vmem:[#allocation7_spill] sm:$0xff] %v6301_v7 }
 0x108   : > { %v1244_v23 = vadd.f32 1.4214138, %v1212_v51  ;;  %v953_v51 = vsel %vm921_vm2, 1.0, %v8905_v49 }
 0x109   : > { %v1338_v1 = vmul.f32 %v5771_v10, %v1306_v46  ;;  %v1305_v15 = vadd.f32 -0.28449672, %v1273_v2  ;;  %v1243_v40 = vadd.f32 1.4214138, %v1211_v48  ;;  %5784 = vpow2.f32 %v1501_v34 }
 0x10a   : > { %v1276_v31 = vmul.f32 %v5775_v44, %v1244_v23  ;;  %v858_v34 = vmul.f32 0.5, %v6214_v36 }
 0x10b   : > { %v1370_v12 = vadd.f32 0.2548296, %v1338_v1  ;;  %v1337_v20 = vmul.f32 %v5773_v22, %v1305_v15  ;;  %v1275_v19 = vmul.f32 %v5777_v16, %v1243_v40 }
 0x10c   : > { %v1308_v46 = vadd.f32 -0.28449672, %v1276_v31 }
 0x10d   : > { %v1402_v63 = vmul.f32 %v5771_v10, %v1370_v12  ;;  %v1369_v30 = vadd.f32 0.2548296, %v1337_v20  ;;  %v5781_v10 = vpop.eup %5780 }
 0x10e   : > { %v1340_v2 = vmul.f32 %v5775_v44, %v1308_v46  ;;  %v6314_v46 = vadd.f32 %v6209_v33, %v6216_v38 }
 0x10f   : > { %v1562_v29 = vmul.f32 %v5779_v26, %v1402_v63  ;;  %v1401_v45 = vmul.f32 %v5773_v22, %v1369_v30  ;;  %v1054_v22 = vadd.f32 1.0, %v1022_v9  ;;  %v6304_v63 = vpop.f32.mrb[14].mxu1  ;;  %v5783_v26 = vpop.eup %5782  ;;  %v857_v30 = vmul.f32 0.5, %v6219_v39 }
 0x110   : > { %v1372_v15 = vadd.f32 0.2548296, %v1340_v2  ;;  %8940 = vst [vmem:[#allocation8_spill] sm:$0xff] %v6304_v63  ;;  %v6321_v9 = vmul.f32 0.70710677, %v6308_v41  ;;  %v956_v2 = vsel %vm924_vm3, 1.0, %v8905_v49 }
 0x111   : > { %v1594_v37 = vsub.f32 1.0, %v1562_v29  ;;  %v1561_v1 = vmul.f32 %v5781_v10, %v1401_v45  ;;  %v1307_v29 = vadd.f32 -0.28449672, %v1275_v19  ;;  %5786 = vrcp.f32 %v1054_v22  ;;  %v6323_v10 = vpop.f32.mrb[15].mxu0 }
 0x112   : > { %v1404_v23 = vmul.f32 %v5775_v44, %v1372_v15  ;;  %v6318_v44 = vadd.f32 %v6209_v33, %v6238_v55  ;;  %8941 = vst [vmem:[#allocation9_spill] sm:$0xff] %v6323_v10  ;;  %v955_v22 = vsel %vm923_vm4, 1.0, %v8905_v49  ;;  %vm938_vm9 = vcmp.ge.f32.partialorder %v6321_v9, 0.0 }
 0x113   : > { %v1626_v11 = vmul.f32 %v1594_v37, %v954_v53  ;;  %v1593_v12 = vsub.f32 1.0, %v1561_v1  ;;  %v1339_v37 = vmul.f32 %v5777_v16, %v1307_v29  ;;  %v5785_v38 = vpop.eup %5784  ;;  %v6329_v53 = vmul.f32 0.70710677, %v6314_v46 }
 0x114   : > { %v1564_v32 = vmul.f32 %v5783_v26, %v1404_v23  ;;  %v6332_v55 = vmul.f32 0.70710677, %v6318_v44  ;;  %v6335_v1 = vand.u32 2147483647, %v6321_v9 }
 0x115   : > { %v1625_v20 = vmul.f32 %v1593_v12, %v953_v51  ;;  %v1658_v27 = vadd.f32 1.0, %v1626_v11  ;;  %v1371_v39 = vadd.f32 0.2548296, %v1339_v37  ;;  %v6343_v12 = vpop.f32.mrb[15].mxu1  ;;  %v860_v37 = vmul.f32 0.5, %v6236_v54 }
 0x116   : > { %v1596_v36 = vsub.f32 1.0, %v1564_v32  ;;  %8942 = vst [vmem:[#allocation10_spill] sm:$0xff] %v6343_v12  ;;  %v989_v51 = vand.u32 2147483647, %v6332_v55  ;;  %v1034_v19 = vmul.f32 0.3275911, %v6335_v1 }
 0x117   : > { %v1657_v31 = vadd.f32 1.0, %v1625_v20  ;;  %v1690_v35 = vmul.f32 %v1658_v27, %v858_v34  ;;  %v1403_v48 = vmul.f32 %v5777_v16, %v1371_v39  ;;  %v6341_v16 = vadd.f32 %v6229_v47, %v6209_v33 }
 0x118   : > { %v1628_v11 = vmul.f32 %v1596_v36, %v956_v2  ;;  %v6351_v20 = vand.u32 2147483647, %v6329_v53  ;;  %v859_v27 = vmul.f32 0.5, %v6252_v61  ;;  %v1021_v29 = vmul.f32 0.3275911, %v989_v51 }
 0x119   : > { %v1689_v45 = vmul.f32 %v1657_v31, %v857_v30  ;;  %v1563_v58 = vmul.f32 %v5785_v38, %v1403_v48  ;;  %v6355_v47 = vmul.f32 0.70710677, %v6341_v16  ;;  %v6360_v31 = vadd.f32 %v6209_v33, %v6231_v50 }
 0x11a   : > { %v1660_v26 = vadd.f32 1.0, %v1628_v11  ;;  %v1438_v34 = vsub.f32 0.0, %v6295_v24  ;;  %v1033_v39 = vmul.f32 0.3275911, %v6351_v20  ;;  %v1066_v48 = vadd.f32 1.0, %v1034_v19 }
 0x11b   : > { %5560 = vmatprep.mubr.msk.f32.mxu1 %vm535_vm0, %v1689_v45  ;;  %v1595_v40 = vsub.f32 1.0, %v1563_v58  ;;  %v6345_v15 = vpop.eup %5786  ;;  %v1053_v45 = vadd.f32 1.0, %v1021_v29  ;;  %v6371_v50 = vand.u32 2147483647, %v6355_v47  ;;  %v6374_v2 = vmul.f32 0.70710677, %v6360_v31 }
 0x11c   : > { %5561 = vmatmul.mubr.msk.f32.vlgmr.msra.gmra.mrb[16].mxu1 %vm535_vm0, %v1690_v35  ;;  %v1150_v23 = vmul.f32 1.0614054, %v6345_v15  ;;  %v6366_v35 = vadd.f32 %v6242_v57, %v6209_v33  ;;  %v1692_v38 = vmul.f32 %v1660_v26, %v860_v37  ;;  %v1470_v58 = vmul.f32 %v1438_v34, %v6295_v24 }
 0x11d   : > { %v1627_v5 = vmul.f32 %v1595_v40, %v955_v22  ;;  %5788 = vrcp.f32 %v1053_v45  ;;  %v1065_v11 = vadd.f32 1.0, %v1033_v39  ;;  %v1036_v22 = vmul.f32 0.3275911, %v6371_v50 }
 0x11e   : > { %v1182_v32 = vadd.f32 -1.4531521, %v1150_v23  ;;  %v6378_v57 = vmul.f32 0.70710677, %v6366_v35  ;;  %5790 = vrcp.f32 %v1066_v48  ;;  %v1507_v23 = vmul.f32 1.442695, %v1470_v58 }
 0x11f   : > { %v1659_v30 = vadd.f32 1.0, %v1627_v5  ;;  %v6386_v5 = vand.u32 2147483647, %v6374_v2  ;;  %v1437_v26 = vsub.f32 0.0, %v989_v51  ;;  %v6390_v29 = vadd.f32 %v6209_v33, %v6249_v60 }
 0x120   : > { %v1214_v61 = vmul.f32 %v6345_v15, %v1182_v32  ;;  %v992_v19 = vand.u32 2147483647, %v6378_v57  ;;  %5792 = vrcp.f32 %v1065_v11  ;;  %vm925_vm6 = vcmp.ge.f32.partialorder %v6332_v55, 0.0 }
 0x121   : > { %v1691_v36 = vmul.f32 %v1659_v30, %v859_v27  ;;  %v1068_v30 = vadd.f32 1.0, %v1036_v22  ;;  %v1035_v34 = vmul.f32 0.3275911, %v6386_v5  ;;  %5794 = vpow2.f32 %v1507_v23 }
 0x122   : > { %v1246_v54 = vadd.f32 1.4214138, %v1214_v61  ;;  %v1024_v27 = vmul.f32 0.3275911, %v992_v19  ;;  %v1469_v39 = vmul.f32 %v1437_v26, %v989_v51  ;;  %v6402_v23 = vadd.f32 %v6257_v0, %v6209_v33 }
 0x123   : > { %5563 = vmatprep.mubr.msk.f32.mxu1 %vm535_vm0, %v1691_v36  ;;  %v6395_v36 = vmul.f32 0.70710677, %v6390_v29  ;;  %v1067_v48 = vadd.f32 1.0, %v1035_v34  ;;  %v957_v14 = vsel %vm925_vm6, 1.0, %v8943_v43  ;;  %vm928_vm7 = vcmp.ge.f32.partialorder %v6378_v57, 0.0 }
 0x124   : > { %5564 = vmatmul.mubr.msk.f32.gmra.mrb[18].mxu1 %vm535_vm0, %v1692_v38  ;;  %v1278_v40 = vmul.f32 %v6345_v15, %v1246_v54  ;;  %v1056_v32 = vadd.f32 1.0, %v1024_v27  ;;  %v1505_v54 = vmul.f32 1.442695, %v1469_v39  ;;  %v6411_v0 = vmul.f32 0.70710677, %v6402_v23 }
 0x125   : > { %v991_v58 = vand.u32 2147483647, %v6395_v36  ;;  %vm927_vm8 = vcmp.ge.f32.partialorder %v6395_v36, 0.0  ;;  %v6509_v36 = vadd.f32 %v6247_v59, %v6209_v33  ;;  %vm937_vm10 = vcmp.ge.f32.partialorder %v6329_v53, 0.0 }
 0x126   : > { %v1310_v24 = vadd.f32 -0.28449672, %v1278_v40  ;;  %5796 = vrcp.f32 %v1056_v32  ;;  %v6421_v63 = vand.u32 2147483647, %v6411_v0  ;;  %vm940_vm11 = vcmp.ge.f32.partialorder %v6355_v47, 0.0 }
 0x127   : > { %v5789_v37 = vpop.eup %5788  ;;  %5798 = vrcp.f32 %v1068_v30  ;;  %v1023_v22 = vmul.f32 0.3275911, %v991_v58  ;;  %vm939_vm12 = vcmp.ge.f32.partialorder %v6374_v2, 0.0  ;;  %vm930_vm14 = vcmp.ge.f32.partialorder %v6411_v0, 0.0 }
 0x128   : > { %v1342_v45 = vmul.f32 %v6345_v15, %v1310_v24  ;;  %v1149_v61 = vmul.f32 1.0614054, %v5789_v37  ;;  %v6398_v11 = vpop.eup %5790  ;;  %v1450_v24 = vsub.f32 0.0, %v6335_v1  ;;  %5800 = vrcp.f32 %v1067_v48 }
 0x129   : > { %v1162_v27 = vmul.f32 1.0614054, %v6398_v11  ;;  %5802 = vpow2.f32 %v1505_v54  ;;  %v1055_v32 = vadd.f32 1.0, %v1023_v22  ;;  %v1449_v54 = vsub.f32 0.0, %v6351_v20 }
 0x12a   : > { %v1181_v38 = vadd.f32 -1.4531521, %v1149_v61  ;;  %v1374_v60 = vadd.f32 0.2548296, %v1342_v45  ;;  %v6404_v51 = vpop.eup %5792  ;;  %v1440_v45 = vsub.f32 0.0, %v992_v19  ;;  %v1482_v48 = vmul.f32 %v1450_v24, %v6335_v1 }
 0x12b   : > { %v5795_v39 = vpop.eup %5794  ;;  %v1161_v61 = vmul.f32 1.0614054, %v6404_v51  ;;  %5804 = vrcp.f32 %v1055_v32  ;;  %v1194_v12 = vadd.f32 -1.4531521, %v1162_v27  ;;  %v1026_v8 = vmul.f32 0.3275911, %v6421_v63 }
 0x12c   : > { %v1213_v40 = vmul.f32 %v5789_v37, %v1181_v38  ;;  %v1406_v30 = vmul.f32 %v6345_v15, %v1374_v60  ;;  %v6423_v25 = vmul.f32 1.442695, %v1482_v48  ;;  %vm2052_vm6 = vcmask 58368  }
 0x12d   : > { %v1193_v10 = vadd.f32 -1.4531521, %v1161_v61 }
 0x12e   : > { %v1245_v26 = vadd.f32 1.4214138, %v1213_v40  ;;  %v1566_v15 = vmul.f32 %v5795_v39, %v1406_v30 }
 0x12f   : > { %v1225_v48 = vmul.f32 %v6404_v51, %v1193_v10  ;;  %v1058_v10 = vadd.f32 1.0, %v1026_v8 }
 0x130   : > { %v1277_v34 = vmul.f32 %v5789_v37, %v1245_v26  ;;  %v6413_v38 = vpop.eup %5796  ;;  %v1472_v26 = vmul.f32 %v1440_v45, %v992_v19  ;;  %v1598_v27 = vsub.f32 1.0, %v1566_v15  ;;  %v1481_v19 = vmul.f32 %v1449_v54, %v6351_v20 }
 0x131   : > { %v6416_v49 = vpop.eup %5798  ;;  %v1152_v60 = vmul.f32 1.0614054, %v6413_v38  ;;  %v1257_v55 = vadd.f32 1.4214138, %v1225_v48  ;;  %v862_v48 = vmul.f32 0.5, %v6287_v42 }
 0x132   : > { %v1309_v40 = vadd.f32 -0.28449672, %v1277_v34  ;;  %v1164_v1 = vmul.f32 1.0614054, %v6416_v49  ;;  %v1226_v34 = vmul.f32 %v6398_v11, %v1194_v12  ;;  %v6429_v39 = vpop.eup %5800  ;;  %v1511_v61 = vmul.f32 1.442695, %v1472_v26 }
 0x133   : > { %v1184_v32 = vadd.f32 -1.4531521, %v1152_v60  ;;  %v5803_v60 = vpop.eup %5802 }
 0x134   : > { %v1341_v22 = vmul.f32 %v5789_v37, %v1309_v40  ;;  %v1439_v40 = vsub.f32 0.0, %v991_v58  ;;  %v1196_v15 = vadd.f32 -1.4531521, %v1164_v1  ;;  %5806 = vpow2.f32 %v1511_v61 }
 0x135   : > { %v1216_v30 = vmul.f32 %v6413_v38, %v1184_v32  ;;  %v958_v32 = vsel %vm926_vm5, 1.0, %v8943_v43  ;;  %v6440_v20 = vpop.eup %5804  ;;  %5808 = vrcp.f32 %v1058_v10 }
 0x136   : > { %v1373_v24 = vadd.f32 0.2548296, %v1341_v22  ;;  %v6435_v22 = vadd.f32 %v6233_v52, %v6209_v33  ;;  %v1630_v54 = vmul.f32 %v1598_v27, %v958_v32  ;;  %v1151_v18 = vmul.f32 1.0614054, %v6440_v20 }
 0x137   : > { %v1248_v12 = vadd.f32 1.4214138, %v1216_v30  ;;  %v1471_v30 = vmul.f32 %v1439_v40, %v991_v58  ;;  %v861_v40 = vmul.f32 0.5, %v6318_v44 }
 0x138   : > { %v1405_v45 = vmul.f32 %v5789_v37, %v1373_v24  ;;  %v1258_v37 = vadd.f32 1.4214138, %v1226_v34  ;;  %v1163_v24 = vmul.f32 1.0614054, %v6429_v39  ;;  %v6448_v34 = vmul.f32 0.70710677, %v6435_v22 }
 0x139   : > { %v1280_v26 = vmul.f32 %v6413_v38, %v1248_v12  ;;  %v1662_v12 = vadd.f32 1.0, %v1630_v54  ;;  %v1183_v61 = vadd.f32 -1.4531521, %v1151_v18  ;;  %v1509_v32 = vmul.f32 1.442695, %v1471_v30 }
 0x13a   : > { %v1565_v7 = vmul.f32 %v5803_v60, %v1405_v45  ;;  %v1228_v45 = vmul.f32 %v6416_v49, %v1196_v15  ;;  %v1452_v60 = vsub.f32 0.0, %v6371_v50  ;;  %v1195_v58 = vadd.f32 -1.4531521, %v1163_v24 }
 0x13b   : > { %v1312_v1 = vadd.f32 -0.28449672, %v1280_v26  ;;  %v1290_v26 = vmul.f32 %v6398_v11, %v1258_v37  ;;  %v1215_v10 = vmul.f32 %v6440_v20, %v1183_v61  ;;  %v6458_v54 = vand.u32 2147483647, %v6448_v34 }
 0x13c   : > { %v1597_v52 = vsub.f32 1.0, %v1565_v7  ;;  %v1484_v18 = vmul.f32 %v1452_v60, %v6371_v50  ;;  %v1694_v24 = vmul.f32 %v1662_v12, %v862_v48  ;;  %v1227_v30 = vmul.f32 %v6429_v39, %v1195_v58 }
 0x13d   : > { %v1344_v7 = vmul.f32 %v6413_v38, %v1312_v1  ;;  %v1247_v44 = vadd.f32 1.4214138, %v1215_v10  ;;  %5810 = vpow2.f32 %v1509_v32  ;;  %v1322_v42 = vadd.f32 -0.28449672, %v1290_v26 }
 0x13e   : > { %v1629_v27 = vmul.f32 %v1597_v52, %v957_v14  ;;  %v1289_v14 = vmul.f32 %v6404_v51, %v1257_v55  ;;  %v1260_v52 = vadd.f32 1.4214138, %v1228_v45  ;;  %v5807_v45 = vpop.eup %5806  ;;  %5812 = vpow2.f32 %v6423_v25 }
 0x13f   : > { %v1376_v15 = vadd.f32 0.2548296, %v1344_v7  ;;  %v1279_v55 = vmul.f32 %v6440_v20, %v1247_v44  ;;  %v1038_v60 = vmul.f32 0.3275911, %v6458_v54  ;;  %v6469_v12 = vpop.eup %5808  ;;  %v1451_v61 = vsub.f32 0.0, %v6386_v5 }
 0x140   : > { %v1661_v8 = vadd.f32 1.0, %v1629_v27  ;;  %v1529_v27 = vmul.f32 1.442695, %v1481_v19  ;;  %v1321_v7 = vadd.f32 -0.28449672, %v1289_v14  ;;  %v1292_v50 = vmul.f32 %v6416_v49, %v1260_v52 }
 0x141   : > { %v1408_v37 = vmul.f32 %v6413_v38, %v1376_v15  ;;  %v1535_v38 = vmul.f32 1.442695, %v1484_v18  ;;  %v1311_v58 = vadd.f32 -0.28449672, %v1279_v55  ;;  %v6474_v19 = vadd.f32 %v6209_v33, %v6261_v4 }
 0x142   : > { %v1693_v1 = vmul.f32 %v1661_v8, %v861_v40  ;;  %v1259_v40 = vadd.f32 1.4214138, %v1227_v30  ;;  %v6478_v8 = vadd.f32 %v6209_v33, %v6240_v56  ;;  %v1154_v32 = vmul.f32 1.0614054, %v6469_v12 }
 0x143   : > { %v1568_v25 = vmul.f32 %v5807_v45, %v1408_v37  ;;  %v1354_v26 = vmul.f32 %v6398_v11, %v1322_v42  ;;  %5814 = vpow2.f32 %v1529_v27  ;;  %v1343_v48 = vmul.f32 %v6440_v20, %v1311_v58 }
 0x144   : > { %5566 = vmatprep.mubr.msk.f32.mxu1 %vm535_vm0, %v1693_v1  ;;  %v1353_v15 = vmul.f32 %v6404_v51, %v1321_v7  ;;  %v1324_v10 = vadd.f32 -0.28449672, %v1292_v50  ;;  %v1070_v14 = vadd.f32 1.0, %v1038_v60  ;;  %v1186_v52 = vadd.f32 -1.4531521, %v1154_v32 }
 0x145   : > { %5567 = vmatmul.mubr.msk.f32.gmra.mrb[20].mxu1 %vm535_vm0, %v1694_v24  ;;  %5816 = vpow2.f32 %v1535_v38  ;;  %v1483_v4 = vmul.f32 %v1451_v61, %v6386_v5  ;;  %v1375_v1 = vadd.f32 0.2548296, %v1343_v48  ;;  %v6486_v56 = vmul.f32 0.70710677, %v6474_v19 }
 0x146   : > { %v1291_v18 = vmul.f32 %v6429_v39, %v1259_v40  ;;  %v6490_v24 = vmul.f32 0.70710677, %v6478_v8  ;;  %v1600_v44 = vsub.f32 1.0, %v1568_v25  ;;  %v1386_v30 = vadd.f32 0.2548296, %v1354_v26 }
 0x147   : > { %v1407_v37 = vmul.f32 %v6440_v20, %v1375_v1  ;;  %v1218_v42 = vmul.f32 %v6469_v12, %v1186_v52  ;;  %v6496_v27 = vand.u32 2147483647, %v6486_v56  ;;  %v5811_v5 = vpop.eup %5810  ;;  %v1385_v55 = vadd.f32 0.2548296, %v1353_v15 }
 0x148   : > { %v1356_v45 = vmul.f32 %v6416_v49, %v1324_v10  ;;  %5818 = vrcp.f32 %v1070_v14  ;;  %v960_v7 = vsel %vm928_vm7, 1.0, %v8943_v43  ;;  %v5813_v60 = vpop.eup %5812  ;;  %v1323_v38 = vadd.f32 -0.28449672, %v1291_v18 }
 0x149   : > { %v1567_v50 = vmul.f32 %v5811_v5, %v1407_v37  ;;  %v1025_v57 = vmul.f32 0.3275911, %v6496_v27  ;;  %v1533_v20 = vmul.f32 1.442695, %v1483_v4  ;;  %v6503_v61 = vand.u32 2147483647, %v6490_v24 }
 0x14a   : > { %v1632_v58 = vmul.f32 %v1600_v44, %v960_v7  ;;  %v1418_v40 = vmul.f32 %v6398_v11, %v1386_v30  ;;  %v1250_v32 = vadd.f32 1.4214138, %v1218_v42  ;;  %v1417_v48 = vmul.f32 %v6404_v51, %v1385_v55 }
 0x14b   : > { %v1599_v25 = vsub.f32 1.0, %v1567_v50  ;;  %v1057_v26 = vadd.f32 1.0, %v1025_v57  ;;  %v959_v15 = vsel %vm927_vm8, 1.0, %v8943_v43  ;;  %v1442_v10 = vsub.f32 0.0, %v6421_v63 }
 0x14c   : > { %v1388_v52 = vadd.f32 0.2548296, %v1356_v45  ;;  %v6515_v11 = vadd.f32 %v6272_v13, %v6209_v33  ;;  %v1355_v1 = vmul.f32 %v6429_v39, %v1323_v38  ;;  %v1037_v51 = vmul.f32 0.3275911, %v6503_v61 }
 0x14d   : > { %v5815_v14 = vpop.eup %5814  ;;  %v1631_v4 = vmul.f32 %v1599_v25, %v959_v15  ;;  %5820 = vrcp.f32 %v1057_v26  ;;  %v1664_v18 = vadd.f32 1.0, %v1632_v58  ;;  %v863_v44 = vmul.f32 0.5, %v6390_v29 }
 0x14e   : > { %5822 = vpow2.f32 %v1533_v20  ;;  %v1282_v37 = vmul.f32 %v6469_v12, %v1250_v32  ;;  %v1578_v42 = vmul.f32 %v5813_v60, %v1418_v40  ;;  %v864_v5 = vmul.f32 0.5, %v6366_v35 }
 0x14f   : > { %v5817_v59 = vpop.eup %5816  ;;  %v1663_v30 = vadd.f32 1.0, %v1631_v4  ;;  %v6523_v55 = vmul.f32 0.70710677, %v6509_v36  ;;  %v1474_v13 = vmul.f32 %v1442_v10, %v6421_v63  ;;  %v1577_v45 = vmul.f32 %v5815_v14, %v1417_v48 }
 0x150   : > { %v1420_v7 = vmul.f32 %v6416_v49, %v1388_v52  ;;  %v6528_v57 = vmul.f32 0.70710677, %v6515_v11  ;;  %v1387_v29 = vadd.f32 0.2548296, %v1355_v1  ;;  %v1069_v60 = vadd.f32 1.0, %v1037_v51 }
 0x151   : > { %v1695_v50 = vmul.f32 %v1663_v30, %v863_v44  ;;  %v1696_v20 = vmul.f32 %v1664_v18, %v864_v5  ;;  %v1314_v35 = vadd.f32 -0.28449672, %v1282_v37  ;;  %v1441_v58 = vsub.f32 0.0, %v6496_v27 }
 0x152   : > { %v6530_v38 = vpop.eup %5818  ;;  %v6536_v63 = vand.u32 2147483647, %v6528_v57  ;;  %v874_v49 = vmul.f32 0.5, %v6308_v41  ;;  %v1610_v40 = vsub.f32 1.0, %v1578_v42  ;;  %v6541_v25 = vand.u32 2147483647, %v6523_v55 }
 0x153   : > { %5569 = vmatprep.mubr.msk.f32.mxu1 %vm535_vm0, %v1695_v50  ;;  %v1515_v9 = vmul.f32 1.442695, %v1474_v13  ;;  %v970_v32 = vsel %vm938_vm9, 1.0, %v8943_v43  ;;  %v1609_v53 = vsub.f32 1.0, %v1577_v45  ;;  %v1580_v26 = vmul.f32 %v5817_v59, %v1420_v7 }
 0x154   : > { %5570 = vmatmul.mubr.msk.f32.gmra.mrb[22].mxu1 %vm535_vm0, %v1696_v20  ;;  %v1028_v48 = vmul.f32 0.3275911, %v6536_v63  ;;  %v969_v15 = vsel %vm937_vm10, 1.0, %v8943_v43  ;;  %v1419_v10 = vmul.f32 %v6429_v39, %v1387_v29  ;;  %v1166_v14 = vmul.f32 1.0614054, %v6530_v38 }
 0x155   : > { %5824 = vrcp.f32 %v1069_v60  ;;  %v1346_v52 = vmul.f32 %v6469_v12, %v1314_v35  ;;  %v1473_v4 = vmul.f32 %v1441_v58, %v6496_v27  ;;  %v6555_v51 = vadd.f32 %v6209_v33, %v6276_v17 }
 0x156   : > { %v1060_v1 = vadd.f32 1.0, %v1028_v48  ;;  %v1642_v59 = vmul.f32 %v1610_v40, %v970_v32  ;;  %v1040_v44 = vmul.f32 0.3275911, %v6541_v25  ;;  %5826 = vpow2.f32 %v1515_v9 }
 0x157   : > { %v6549_v41 = vpop.eup %5820  ;;  %v1641_v30 = vmul.f32 %v1609_v53, %v969_v15  ;;  %v1612_v37 = vsub.f32 1.0, %v1580_v26  ;;  %v873_v42 = vmul.f32 0.5, %v6314_v46  ;;  %v1198_v27 = vadd.f32 -1.4531521, %v1166_v14 }
 0x158   : > { %v5823_v18 = vpop.eup %5822  ;;  %v1153_v39 = vmul.f32 1.0614054, %v6549_v41  ;;  %5828 = vrcp.f32 %v1060_v1  ;;  %v1378_v13 = vadd.f32 0.2548296, %v1346_v52  ;;  %v1513_v45 = vmul.f32 1.442695, %v1473_v4 }
 0x159   : > { %v1579_v17 = vmul.f32 %v5823_v18, %v1419_v10  ;;  %v6563_v7 = vmul.f32 0.70710677, %v6555_v51  ;;  %v1674_v50 = vadd.f32 1.0, %v1642_v59  ;;  %v972_v29 = vsel %vm940_vm11, 1.0, %v8943_v43 }
 0x15a   : > { %v1185_v5 = vadd.f32 -1.4531521, %v1153_v39  ;;  %v1072_v60 = vadd.f32 1.0, %v1040_v44  ;;  %v1673_v20 = vadd.f32 1.0, %v1641_v30  ;;  %v876_v35 = vmul.f32 0.5, %v6341_v16 }
 0x15b   : > { %v1644_v46 = vmul.f32 %v1612_v37, %v972_v29  ;;  %v1454_v58 = vsub.f32 0.0, %v6458_v54  ;;  %v6570_v40 = vmul.f32 0.5, %v6360_v31  ;;  %v971_v9 = vsel %vm939_vm12, 1.0, %v8943_v43 }
 0x15c   : > { %v1217_v47 = vmul.f32 %v6549_v41, %v1185_v5  ;;  %v6576_v53 = vand.u32 2147483647, %v6563_v7  ;;  %v1611_v26 = vsub.f32 1.0, %v1579_v17  ;;  %v1230_v48 = vmul.f32 %v6530_v38, %v1198_v27 }
 0x15d   : > { %v1410_v15 = vmul.f32 %v6469_v12, %v1378_v13  ;;  %5830 = vpow2.f32 %v1513_v45  ;;  %v6582_v10 = vmul.f32 %v1674_v50, %v874_v49  ;;  %v6586_v14 = vmul.f32 %v1673_v20, %v873_v42 }
 0x15e   : > { %v1249_v32 = vadd.f32 1.4214138, %v1217_v47  ;;  %5832 = vrcp.f32 %v1072_v60  ;;  %v1027_v2 = vmul.f32 0.3275911, %v6576_v53  ;;  %v1676_v52 = vadd.f32 1.0, %v1644_v46 }
 0x15f   : > { %v6580_v16 = vpop.eup %5824  ;;  %v6589_v4 = vmul.f32 0.5, %v6435_v22  ;;  %v1486_v1 = vmul.f32 %v1454_v58, %v6458_v54  ;;  %vm942_vm13 = vcmp.ge.f32.partialorder %v6448_v34, 0.0  ;;  %v1444_v49 = vsub.f32 0.0, %v6536_v63  ;;  %v3080_v34 = vld [vmem:[%s8896_s7] sm:$0xff] }
 0x160   : > { %v1281_v31 = vmul.f32 %v6549_v41, %v1249_v32  ;;  %v5827_v18 = vpop.eup %5826  ;;  %v1059_v59 = vadd.f32 1.0, %v1027_v2  ;;  %v1643_v39 = vmul.f32 %v1611_v26, %v971_v9  ;;  %v1262_v30 = vadd.f32 1.4214138, %v1230_v48  ;;  %5608 = vmatprep.subr.mxu0 %v3080_v34 }
 0x161   : > { %v1570_v37 = vmul.f32 %v5827_v18, %v1410_v15  ;;  %v6598_v42 = vadd.f32 %v6280_v21, %v6209_v33  ;;  %v1165_v22 = vmul.f32 1.0614054, %v6580_v16  ;;  %v6606_v5 = vmul.f32 %v1676_v52, %v876_v35  ;;  %5609 = vmatpush3.msra.mxu0 %v3080_v34 }
 0x162   : > { %v1313_v12 = vadd.f32 -0.28449672, %v1281_v31  ;;  %v6594_v44 = vpop.eup %5828  ;;  %5834 = vrcp.f32 %v1059_v59  ;;  %v6609_v17 = vsel %vm942_vm13, 1.0, %v8943_v43  ;;  %v6611_v13 = vmul.f32 1.442695, %v1486_v1 }
 0x163   : > { %v1156_v27 = vmul.f32 1.0614054, %v6594_v44  ;;  %8944 = vst [vmem:[#allocation11_spill] sm:$0xff] %v6606_v5  ;;  %v6615_v21 = vadd.f32 %v6209_v33, %v6254_v62  ;;  %v1476_v29 = vmul.f32 %v1444_v49, %v6536_v63  ;;  %v6619_v60 = vadd.f32 1.0, %v1643_v39 }
 0x164   : > { %v1345_v54 = vmul.f32 %v6549_v41, %v1313_v12  ;;  %v1453_v47 = vsub.f32 0.0, %v6503_v61  ;;  %v1602_v20 = vsub.f32 1.0, %v1570_v37  ;;  %v6623_v35 = vmul.f32 0.70710677, %v6598_v42 }
 0x165   : > { %v1188_v50 = vadd.f32 -1.4531521, %v1156_v27  ;;  %v1294_v46 = vmul.f32 %v6530_v38, %v1262_v30  ;;  %v1197_v33 = vadd.f32 -1.4531521, %v1165_v22  ;;  %v6629_v9 = vmul.f32 0.70710677, %v6615_v21 }
 0x166   : > { %v1377_v45 = vadd.f32 0.2548296, %v1345_v54  ;;  %v962_v63 = vsel %vm930_vm14, 1.0, %v8943_v43  ;;  %vm929_vm15 = vcmp.ge.f32.partialorder %v6486_v56, 0.0  ;;  %v6634_v32 = vand.u32 2147483647, %v6623_v35 }
 0x167   : > { %v1220_v0 = vmul.f32 %v6594_v44, %v1188_v50  ;;  %v5831_v58 = vpop.eup %5830  ;;  %v1519_v31 = vmul.f32 1.442695, %v1476_v29  ;;  %v1485_v2 = vmul.f32 %v1453_v47, %v6503_v61  ;;  %v1456_v52 = vsub.f32 0.0, %v6541_v25  ;;  %v6657_v29 = vld [vmem:[%s8891_s2] ss:$0 sm:$0xff] }
 0x168   : > { %v1409_v62 = vmul.f32 %v6549_v41, %v1377_v45  ;;  %v6636_v26 = vpop.eup %5832  ;;  %v1443_v41 = vsub.f32 0.0, %v6576_v53  ;;  %v1634_v1 = vmul.f32 %v1602_v20, %v962_v63  ;;  %v1030_v18 = vmul.f32 0.3275911, %v6634_v32 }
 0x169   : > { %v1252_v15 = vadd.f32 1.4214138, %v1220_v0  ;;  %v1326_v12 = vadd.f32 -0.28449672, %v1294_v46  ;;  %v1229_v49 = vmul.f32 %v6580_v16, %v1197_v33  ;;  %v1168_v30 = vmul.f32 1.0614054, %v6636_v26 }
 0x16a   : > { %v1569_v48 = vmul.f32 %v5831_v58, %v1409_v62  ;;  %v6646_v37 = vand.u32 2147483647, %v6629_v9  ;;  %v961_v61 = vsel %vm929_vm15, 1.0, %v8943_v43  ;;  %v1062_v22 = vadd.f32 1.0, %v1030_v18 }
 0x16b   : > { %v1284_v39 = vmul.f32 %v6594_v44, %v1252_v15  ;;  %5836 = vpow2.f32 %v1519_v31  ;;  %v1475_v45 = vmul.f32 %v1443_v41, %v6576_v53  ;;  %v1666_v50 = vadd.f32 1.0, %v1634_v1 }
 0x16c   : > { %v1601_v59 = vsub.f32 1.0, %v1569_v48  ;;  %v6651_v54 = vpop.eup %5834  ;;  %v6661_v47 = vadd.f32 %v6657_v29, %v6259_v3  ;;  %5838 = vrcp.f32 %v1062_v22  ;;  %v1261_v20 = vadd.f32 1.4214138, %v1229_v49 }
 0x16d   : > { %v1316_v34 = vadd.f32 -0.28449672, %v1284_v39  ;;  %v1155_v56 = vmul.f32 1.0614054, %v6651_v54  ;;  %v865_v46 = vmul.f32 0.5, %v6474_v19  ;;  %v1488_v53 = vmul.f32 %v1456_v52, %v6541_v25 }
 0x16e   : > { %v1633_v27 = vmul.f32 %v1601_v59, %v961_v61  ;;  %8945 = vst [vmem:[#allocation12_spill] sm:$0xff] %v6661_v47  ;;  %v866_v0 = vmul.f32 0.5, %v6402_v23  ;;  %v6670_v63 = vadd.f32 %v6657_v29, %v6284_v28  ;;  %v1039_v3 = vmul.f32 0.3275911, %v6646_v37 }
 0x16f   : > { %v1348_v62 = vmul.f32 %v6594_v44, %v1316_v34  ;;  %v1187_v58 = vadd.f32 -1.4531521, %v1155_v56  ;;  %v1517_v31 = vmul.f32 1.442695, %v1475_v45  ;;  %v1200_v41 = vadd.f32 -1.4531521, %v1168_v30 }
 0x170   : > { %v1665_v33 = vadd.f32 1.0, %v1633_v27  ;;  %v1698_v1 = vmul.f32 %v1666_v50, %v866_v0  ;;  %v6674_v19 = vmul.f32 0.70710677, %v6661_v47  ;;  %v1358_v25 = vmul.f32 %v6530_v38, %v1326_v12 }
 0x171   : > { %v1380_v15 = vadd.f32 0.2548296, %v1348_v62  ;;  %v1219_v18 = vmul.f32 %v6651_v54, %v1187_v58  ;;  %v1293_v23 = vmul.f32 %v6580_v16, %v1261_v20  ;;  %v1537_v52 = vmul.f32 1.442695, %v1485_v2 }
 0x172   : > { %v1697_v48 = vmul.f32 %v1665_v33, %v865_v46  ;;  %v6681_v28 = vadd.f32 %v6657_v29, %v6266_v6  ;;  %5840 = vpow2.f32 %v6611_v13  ;;  %v1543_v49 = vmul.f32 1.442695, %v1488_v53 }
 0x173   : > { %v1251_v59 = vadd.f32 1.4214138, %v1219_v18  ;;  %v6686_v39 = vmul.f32 0.70710677, %v6670_v63  ;;  %v6690_v12 = vmul.f32 0.5, %v6478_v8  ;;  %v1071_v30 = vadd.f32 1.0, %v1039_v3 }
 0x174   : > { %8946 = vst [vmem:[#allocation13_spill] sm:$0xff] %v6681_v28  ;;  %5572 = vmatprep.mubr.msk.f32.mxu1 %vm535_vm0, %v1697_v48  ;;  %v1412_v2 = vmul.f32 %v6594_v44, %v1380_v15  ;;  %5842 = vpow2.f32 %v1517_v31  ;;  %vm941_vm1 = vcmp.ge.f32.partialorder %v6490_v24, 0.0  ;;  %v1232_v6 = vmul.f32 %v6636_v26, %v1200_v41 }
 0x175   : > { %5573 = vmatmul.mubr.msk.f32.gmra.mrb[24].mxu1 %vm535_vm0, %v1698_v1  ;;  %v6696_v13 = vand.u32 2147483647, %v6674_v19  ;;  %v1283_v61 = vmul.f32 %v6651_v54, %v1251_v59  ;;  %v5837_v22 = vpop.eup %5836  ;;  %v1390_v27 = vadd.f32 0.2548296, %v1358_v25  ;;  %v1325_v34 = vadd.f32 -0.28449672, %v1293_v23 }
 0x176   : > { %5844 = vpow2.f32 %v1537_v52  ;;  %v6700_v8 = vmul.f32 0.70710677, %v6681_v28  ;;  %v6702_v45 = vpop.eup %5838  ;;  %v6706_v44 = vmul.f32 %v6619_v60, %v6570_v40  ;;  %v6709_v50 = vand.u32 2147483647, %v6686_v39  ;;  %v8947_v1 = vld [vmem:[#allocation4_spill] sm:$0xff] }
 0x177   : > { %5846 = vpow2.f32 %v1543_v49  ;;  %v1315_v24 = vadd.f32 -0.28449672, %v1283_v61  ;;  %v6712_v56 = vsel %vm941_vm1, 1.0, %v8943_v43  ;;  %v1572_v20 = vmul.f32 %v5837_v22, %v1412_v2  ;;  %v8949_v61 = vld [vmem:[#allocation3_spill] sm:$0xff] }
 0x178   : > { %5848 = vrcp.f32 %v1071_v30  ;;  %v1158_v46 = vmul.f32 1.0614054, %v6702_v45  ;;  %v1264_v33 = vadd.f32 1.4214138, %v1232_v6  ;;  %v1042_v62 = vmul.f32 0.3275911, %v6696_v13 }
 0x179   : > { %v1347_v53 = vmul.f32 %v6651_v54, %v1315_v24  ;;  %v1029_v40 = vmul.f32 0.3275911, %v6709_v50  ;;  %v6719_v60 = vmul.f32 %v6530_v38, %v1390_v27  ;;  %v1357_v0 = vmul.f32 %v6580_v16, %v1325_v34 }
 0x17a   : > { %v6723_v58 = vand.u32 2147483647, %v6700_v8  ;;  %v1190_v3 = vadd.f32 -1.4531521, %v1158_v46  ;;  %v1455_v48 = vsub.f32 0.0, %v6646_v37  ;;  %vm932_vm2 = vcmp.ge.f32.partialorder %v6528_v57, 0.0 }
 0x17b   : > { %v1379_v15 = vadd.f32 0.2548296, %v1347_v53  ;;  %v1061_v31 = vadd.f32 1.0, %v1029_v40  ;;  %v1604_v41 = vsub.f32 1.0, %v1572_v20  ;;  %v6729_v18 = vadd.f32 %v6657_v29, %v8947_v1  ;;  %v8951_v20 = vld [vmem:[#allocation7_spill] sm:$0xff] }
 0x17c   : > { %v1222_v38 = vmul.f32 %v6702_v45, %v1190_v3  ;;  %v1446_v25 = vsub.f32 0.0, %v6634_v32  ;;  %v6733_v23 = vpop.eup %5840  ;;  %v1296_v52 = vmul.f32 %v6636_v26, %v1264_v33  ;;  %v1074_v49 = vadd.f32 1.0, %v1042_v62 }
 0x17d   : > { %8948 = vst [vmem:[#allocation4_spill] sm:$0xff] %v6729_v18  ;;  %v1411_v59 = vmul.f32 %v6651_v54, %v1379_v15  ;;  %5850 = vrcp.f32 %v1061_v31  ;;  %v1389_v2 = vadd.f32 0.2548296, %v1357_v0  ;;  %v1041_v6 = vmul.f32 0.3275911, %v6723_v58 }
 0x17e   : > { %v5843_v30 = vpop.eup %5842  ;;  %v6740_v22 = vadd.f32 %v6657_v29, %v8949_v61  ;;  %v1254_v27 = vadd.f32 1.4214138, %v1222_v38  ;;  %v964_v34 = vsel %vm932_vm2, 1.0, %v8943_v43  ;;  %vm931_vm3 = vcmp.ge.f32.partialorder %v6563_v7, 0.0 }
 0x17f   : > { %v1571_v24 = vmul.f32 %v5843_v30, %v1411_v59  ;;  %v6748_v54 = vadd.f32 %v6657_v29, %v8951_v20  ;;  %v1636_v33 = vmul.f32 %v1604_v41, %v964_v34  ;;  %v6751_v62 = vmul.f32 0.70710677, %v6729_v18  ;;  %v8955_v20 = vld [vmem:[#allocation5_spill] sm:$0xff] }
 0x180   : > { %8950 = vst [vmem:[#allocation3_spill] sm:$0xff] %v6740_v22  ;;  %v5845_v46 = vpop.eup %5844  ;;  %v1286_v53 = vmul.f32 %v6702_v45, %v1254_v27  ;;  %v1478_v40 = vmul.f32 %v1446_v25, %v6634_v32  ;;  %v1328_v57 = vadd.f32 -0.28449672, %v1296_v52  ;;  %v1487_v3 = vmul.f32 %v1455_v48, %v6646_v37  ;;  %v8953_v52 = vld [vmem:[#allocation6_spill] sm:$0xff] }
 0x181   : > { %v6755_v0 = vpop.eup %5846  ;;  %5852 = vrcp.f32 %v1074_v49  ;;  %v1603_v7 = vsub.f32 1.0, %v1571_v24  ;;  %v1073_v31 = vadd.f32 1.0, %v1041_v6  ;;  %v963_v1 = vsel %vm931_vm3, 1.0, %v8943_v43 }
 0x182   : > { %v6758_v15 = vpop.eup %5848  ;;  %v1445_v41 = vsub.f32 0.0, %v6709_v50  ;;  %v6763_v38 = vmul.f32 0.70710677, %v6748_v54  ;;  %v6766_v59 = vmul.f32 0.70710677, %v6740_v22  ;;  %v6770_v37 = vadd.f32 %v6657_v29, %v8953_v52 }
 0x183   : > { %v1635_v32 = vmul.f32 %v1603_v7, %v963_v1  ;;  %v1318_v25 = vadd.f32 -0.28449672, %v1286_v53  ;;  %v1421_v48 = vmul.f32 %v6580_v16, %v1389_v2  ;;  %v1668_v49 = vadd.f32 1.0, %v1636_v33 }
 0x184   : > { %8952 = vst [vmem:[#allocation7_spill] sm:$0xff] %v6766_v59  ;;  %8954 = vst [vmem:[#allocation6_spill] sm:$0xff] %v6770_v37  ;;  %v6774_v30 = vand.u32 2147483647, %v6751_v62  ;;  %v1523_v6 = vmul.f32 1.442695, %v1478_v40  ;;  %5854 = vrcp.f32 %v1073_v31  ;;  %v6781_v53 = vadd.f32 %v6657_v29, %v8955_v20 }
 0x185   : > { %v1167_v61 = vmul.f32 1.0614054, %v6758_v15  ;;  %v868_v27 = vmul.f32 0.5, %v6515_v11  ;;  %v867_v34 = vmul.f32 0.5, %v6555_v51  ;;  %v1667_v24 = vadd.f32 1.0, %v1635_v32 }
 0x186   : > { %8956 = vst [vmem:[#allocation5_spill] sm:$0xff] %v6781_v53  ;;  %v1477_v7 = vmul.f32 %v1445_v41, %v6709_v50  ;;  %v6785_v16 = vand.u32 2147483647, %v6763_v38  ;;  %v6790_v33 = vand.u32 2147483647, %v6766_v59  ;;  %v1350_v11 = vmul.f32 %v6702_v45, %v1318_v25 }
 0x187   : > { %v6787_v2 = vpop.eup %5850  ;;  %v1699_v40 = vmul.f32 %v1667_v24, %v867_v34  ;;  %v6794_v51 = vmul.f32 0.70710677, %v6770_v37  ;;  %v1700_v31 = vmul.f32 %v1668_v49, %v868_v27  ;;  %v1043_v1 = vmul.f32 0.3275911, %v6774_v30  ;;  %v8959_v37 = vld [vmem:[#allocation8_spill] sm:$0xff] }
 0x188   : > { %5856 = vpow2.f32 %v1523_v6  ;;  %v1157_v50 = vmul.f32 1.0614054, %v6787_v2  ;;  %v1581_v41 = vmul.f32 %v5845_v46, %v1421_v48  ;;  %v1360_v32 = vmul.f32 %v6636_v26, %v1328_v57 }
 0x189   : > { %8957 = vst [vmem:[#allocation14_spill] sm:$0xff] %v6794_v51  ;;  %v1199_v52 = vadd.f32 -1.4531521, %v1167_v61  ;;  %v1032_v20 = vmul.f32 0.3275911, %v6785_v16  ;;  %5575 = vmatprep.mubr.msk.f32.mxu1 %vm535_vm0, %v1699_v40  ;;  %v6806_v49 = vadd.f32 %v6657_v29, %v8959_v37  ;;  %v6813_v46 = vmul.f32 %v6733_v23, %v6719_v60 }
 0x18a   : > { %v6802_v34 = vmul.f32 0.70710677, %v6781_v53  ;;  %v1189_v25 = vadd.f32 -1.4531521, %v1157_v50  ;;  %v1521_v24 = vmul.f32 1.442695, %v1477_v7  ;;  %5576 = vmatmul.mubr.msk.f32.gmra.mrb[26].mxu1 %vm535_vm0, %v1700_v31 }
 0x18b   : > { %8960 = vst [vmem:[#allocation8_spill] sm:$0xff] %v6806_v49  ;;  %v6809_v6 = vpop.eup %5852  ;;  %v1382_v57 = vadd.f32 0.2548296, %v1350_v11  ;;  %v6816_v48 = vand.u32 2147483647, %v6794_v51  ;;  %v1064_v61 = vadd.f32 1.0, %v1032_v20  ;;  %v1231_v31 = vmul.f32 %v6758_v15, %v1199_v52 }
 0x18c   : > { %8958 = vst [vmem:[#allocation15_spill] sm:$0xff] %v6802_v34  ;;  %v1541_v27 = vmul.f32 1.442695, %v1487_v3  ;;  %v1044_v7 = vmul.f32 0.3275911, %v6790_v33  ;;  %v1075_v40 = vadd.f32 1.0, %v1043_v1  ;;  %v1221_v37 = vmul.f32 %v6787_v2, %v1189_v25 }
 0x18d   : > { %v1613_v50 = vsub.f32 1.0, %v1581_v41  ;;  %v6820_v53 = vadd.f32 0.2548296, %v1360_v32  ;;  %5858 = vrcp.f32 %v1064_v61  ;;  %v6824_v60 = vand.u32 2147483647, %v6802_v34  ;;  %v8962_v20 = vld [vmem:[#allocation9_spill] sm:$0xff] }
 0x18e   : > { %v1253_v23 = vadd.f32 1.4214138, %v1221_v37  ;;  %v6827_v11 = vmul.f32 0.70710677, %v6806_v49  ;;  %v6831_v3 = vadd.f32 %v6657_v29, %v8962_v20  ;;  %v1414_v1 = vmul.f32 %v6702_v45, %v1382_v57  ;;  %v8963_v32 = vld [vmem:[#allocation10_spill] sm:$0xff]  ;;  %v6839_v25 = vpop.eup %5854 }
 0x18f   : > { %5860 = vpow2.f32 %v1521_v24  ;;  %v1045_v41 = vmul.f32 0.3275911, %v6816_v48  ;;  %v6837_v52 = vadd.f32 %v6657_v29, %v8963_v32  ;;  %v1170_v61 = vmul.f32 1.0614054, %v6809_v6 }
 0x190   : > { %8961 = vst [vmem:[#allocation16_spill] sm:$0xff] %v6827_v11  ;;  %v1076_v37 = vadd.f32 1.0, %v1044_v7  ;;  %5862 = vrcp.f32 %v1075_v40  ;;  %v1285_v49 = vmul.f32 %v6787_v2, %v1253_v23  ;;  %v1263_v22 = vadd.f32 1.4214138, %v1231_v31 }
 0x191   : > { %8964 = vst [vmem:[#allocation9_spill] sm:$0xff] %v6837_v52  ;;  %v6846_v24 = vmul.f32 0.70710677, %v6831_v3  ;;  %5864 = vpow2.f32 %v1541_v27  ;;  %v1046_v29 = vmul.f32 0.3275911, %v6824_v60  ;;  %v1077_v40 = vadd.f32 1.0, %v1045_v41 }
 0x192   : > { %v5857_v57 = vpop.eup %5856  ;;  %v1317_v32 = vadd.f32 -0.28449672, %v1285_v49  ;;  %v6850_v18 = vand.u32 2147483647, %v6827_v11  ;;  %v6856_v31 = vmul.f32 0.70710677, %v6837_v52  ;;  %v6859_v20 = vmul.f32 %v1613_v50, %v6712_v56 }
 0x193   : > { %v1574_v7 = vmul.f32 %v5857_v57, %v1414_v1  ;;  %v6853_v23 = vand.u32 2147483647, %v6846_v24  ;;  %v1202_v45 = vadd.f32 -1.4531521, %v1170_v61  ;;  %5866 = vrcp.f32 %v1076_v37 }
 0x194   : > { %8965 = vst [vmem:[#allocation10_spill] sm:$0xff] %v6856_v31  ;;  %v1349_v27 = vmul.f32 %v6787_v2, %v1317_v32  ;;  %v6863_v49 = vmul.f32 %v6758_v15, %v1263_v22  ;;  %v1169_v11 = vmul.f32 1.0614054, %v6839_v25  ;;  %v6868_v41 = vand.u32 2147483647, %v6856_v31 }
 0x195   : > { %v1031_v1 = vmul.f32 0.3275911, %v6853_v23  ;;  %vm934_vm4 = vcmp.ge.f32.partialorder %v6623_v35, 0.0  ;;  %v1078_v57 = vadd.f32 1.0, %v1046_v29  ;;  %v1048_v56 = vmul.f32 0.3275911, %v6850_v18 }
 0x196   : > { %v1381_v52 = vadd.f32 0.2548296, %v1349_v27  ;;  %v1606_v61 = vsub.f32 1.0, %v1574_v7  ;;  %5868 = vrcp.f32 %v1077_v40  ;;  %v1047_v22 = vmul.f32 0.3275911, %v6868_v41 }
 0x197   : > { %v6872_v50 = vpop.eup %5858  ;;  %v1063_v37 = vadd.f32 1.0, %v1031_v1  ;;  %v6876_v32 = vmul.f32 %v6809_v6, %v1202_v45  ;;  %v1448_v35 = vsub.f32 0.0, %v6785_v16  ;;  %v966_v27 = vsel %vm934_vm4, 1.0, %v8943_v43 }
 0x198   : > { %v1413_v34 = vmul.f32 %v6787_v2, %v1381_v52  ;;  %v1160_v31 = vmul.f32 1.0614054, %v6872_v50  ;;  %vm933_vm5 = vcmp.ge.f32.partialorder %v6686_v39, 0.0  ;;  %v6883_v7 = vadd.f32 1.0, %v1047_v22 }
 0x199   : > { %v5861_v29 = vpop.eup %5860  ;;  %5870 = vrcp.f32 %v1063_v37  ;;  %v6889_v28 = vadd.f32 1.0, %v1048_v56  ;;  %v6891_v2 = vadd.f32 -1.4531521, %v1169_v11  ;;  %v6893_v52 = vmul.f32 %v1606_v61, %v966_v27 }
 0x19a   : > { %v6885_v40 = vpop.eup %5862  ;;  %5872 = vrcp.f32 %v1078_v57  ;;  %v6887_v1 = vmul.f32 %v5861_v29, %v1413_v34  ;;  %v1192_v45 = vadd.f32 -1.4531521, %v1160_v31  ;;  %v6899_v37 = vmul.f32 %v6636_v26, %v6820_v53 }
 0x19b   : > { %v6895_v47 = vpop.eup %5864  ;;  %v6906_v34 = vmul.f32 %v1448_v35, %v6785_v16  ;;  %v6040_v31 = vmov 0.0   ;;  %v1327_v26 = vadd.f32 -0.28449672, %v6863_v49  ;;  %v1171_v53 = vmul.f32 1.0614054, %v6885_v40 }
 0x19c   : > { %v1605_v22 = vsub.f32 1.0, %v6887_v1  ;;  %v6903_v57 = vmul.f32 %v6872_v50, %v1192_v45  ;;  %2055 = vst.msk [vmem:[#allocation2 + $0x20] sm:$0xff] %vm535_vm0, %v6040_v31  ;;  %2050 = vst.msk [vmem:[#allocation2] sm:$0xff] %vm535_vm0, %v6040_v31  ;;  %v965_v16 = vsel %vm933_vm5, 1.0, %v8943_v43  ;;  %5874 = vrcp.f32 %v6883_v7 }
 0x19d   : > { %2056 = vst.msk [vmem:[#allocation2 + $0x28] sm:$0x3] %vm2052_vm6, %v6040_v31  ;;  %2053 = vst.msk [vmem:[#allocation2 + $0x10] sm:$0x3] %vm2052_vm6, %v6040_v31  ;;  %v6968_v11 = vpop.eup %5866  ;;  %v1266_v56 = vadd.f32 1.4214138, %v6876_v32  ;;  %5876 = vrcp.f32 %v6889_v28  ;;  %v1233_v39 = vmul.f32 %v6839_v25, %v6891_v2  ;;  %v1359_v28 = vmul.f32 %v6758_v15, %v1327_v26 }
 0x19e   : > { %2051 = vst.msk [vmem:[#allocation2 + $0x8] sm:$0xff] %vm535_vm0, %v6040_v31  ;;  %2054 = vst.msk [vmem:[#allocation2 + $0x18] sm:$0xff] %vm535_vm0, %v6040_v31  ;;  %v1637_v61 = vmul.f32 %v1605_v22, %v965_v16  ;;  %v1256_v35 = vadd.f32 1.4214138, %v6903_v57  ;;  %v8966_v49 = vsub.f32 0.0, %v6696_v13  ;;  %v1670_v27 = vadd.f32 1.0, %v6893_v52 }
 0x19f   : > { %2057 = vst.msk [vmem:[#allocation2 + $0x30] sm:$0xff] %vm535_vm0, %v6040_v31  ;;  %2058 = vst.msk [vmem:[#allocation2 + $0x38] sm:$0xff] %vm535_vm0, %v6040_v31  ;;  %v1447_v7 = vsub.f32 0.0, %v6853_v23  ;;  %v869_v32 = vmul.f32 0.5, %v6670_v63  ;;  %v1527_v22 = vmul.f32 1.442695, %v6906_v34  ;;  %v1298_v52 = vmul.f32 %v6809_v6, %v1266_v56 }
 0x1a0   : > { %2059 = vst.msk [vmem:[#allocation2 + $0x40] sm:$0x3] %vm2052_vm6, %v6040_v31  ;;  %2062 = vst.msk [vmem:[#allocation2 + $0x58] sm:$0x3] %vm2052_vm6, %v6040_v31  ;;  %v1490_v29 = vmul.f32 %v8966_v49, %v6696_v13  ;;  %v1669_v45 = vadd.f32 1.0, %v1637_v61  ;;  %v1288_v1 = vmul.f32 %v6872_v50, %v1256_v35  ;;  %v6985_v57 = vpop.eup %5868  ;;  %v870_v2 = vmul.f32 0.5, %v6598_v42 }
 0x1a1   : > { %2060 = vst.msk [vmem:[#allocation2 + $0x48] sm:$0xff] %vm535_vm0, %v6040_v31  ;;  %2061 = vst.msk [vmem:[#allocation2 + $0x50] sm:$0xff] %vm535_vm0, %v6040_v31  ;;  %v1172_v13 = vmul.f32 1.0614054, %v6968_v11  ;;  %v1457_v16 = vsub.f32 0.0, %v6723_v58  ;;  %v1479_v59 = vmul.f32 %v1447_v7, %v6853_v23  ;;  %5878 = vpow2.f32 %v1527_v22 }
 0x1a2   : > { %2063 = vst.msk [vmem:[#allocation2 + $0x60] sm:$0xff] %vm535_vm0, %v6040_v31  ;;  %2064 = vst.msk [vmem:[#allocation2 + $0x68] sm:$0xff] %vm535_vm0, %v6040_v31  ;;  %v1701_v49 = vmul.f32 %v1669_v45, %v869_v32  ;;  %v1320_v63 = vadd.f32 -0.28449672, %v1288_v1  ;;  %v1547_v35 = vmul.f32 1.442695, %v1490_v29  ;;  %v1702_v34 = vmul.f32 %v1670_v27, %v870_v2 }
 0x1a3   : > { %2065 = vst.msk [vmem:[#allocation2 + $0x70] sm:$0x3] %vm2052_vm6, %v6040_v31  ;;  %2068 = vst.msk [vmem:[#allocation2 + $0x88] sm:$0x3] %vm2052_vm6, %v6040_v31  ;;  %v6992_v61 = vpop.eup %5870  ;;  %v1265_v51 = vadd.f32 1.4214138, %v1233_v39  ;;  %v7003_v56 = vmul.f32 %v6755_v0, %v6899_v37  ;;  %v1489_v7 = vmul.f32 %v1457_v16, %v6723_v58 }
 0x1a4   : > { %2066 = vst.msk [vmem:[#allocation2 + $0x78] sm:$0xff] %vm535_vm0, %v6040_v31  ;;  %2067 = vst.msk [vmem:[#allocation2 + $0x80] sm:$0xff] %vm535_vm0, %v6040_v31  ;;  %v6995_v5 = vpop.eup %5872  ;;  %v1173_v26 = vmul.f32 1.0614054, %v6985_v57  ;;  %v1159_v42 = vmul.f32 1.0614054, %v6992_v61  ;;  %5578 = vmatprep.mubr.msk.f32.mxu1 %vm535_vm0, %v1701_v49  ;;  %5880 = vpow2.f32 %v1547_v35 }
 0x1a5   : > { %2069 = vst.msk [vmem:[#allocation2 + $0x90] sm:$0xff] %vm535_vm0, %v6040_v31  ;;  %2070 = vst.msk [vmem:[#allocation2 + $0x98] sm:$0xff] %vm535_vm0, %v6040_v31  ;;  %v1391_v29 = vadd.f32 0.2548296, %v1359_v28  ;;  %v1204_v39 = vadd.f32 -1.4531521, %v1172_v13  ;;  %5579 = vmatmul.mubr.msk.f32.gmra.mrb[28].mxu1 %vm535_vm0, %v1702_v34  ;;  %v1297_v28 = vmul.f32 %v6839_v25, %v1265_v51 }
 0x1a6   : > { %2071 = vst.msk [vmem:[#allocation2 + $0xa0] sm:$0x3] %vm2052_vm6, %v6040_v31  ;;  %2074 = vst.msk [vmem:[#allocation2 + $0xb8] sm:$0x3] %vm2052_vm6, %v6040_v31  ;;  %v1330_v23 = vadd.f32 -0.28449672, %v1298_v52  ;;  %v7009_v1 = vpop.eup %5874 }
 0x1a7   : > { %2072 = vst.msk [vmem:[#allocation2 + $0xa8] sm:$0xff] %vm535_vm0, %v6040_v31  ;;  %2073 = vst.msk [vmem:[#allocation2 + $0xb0] sm:$0xff] %vm535_vm0, %v6040_v31  ;;  %v1459_v32 = vsub.f32 0.0, %v6774_v30  ;;  %v1191_v45 = vadd.f32 -1.4531521, %v1159_v42  ;;  %v7012_v37 = vpop.eup %5876  ;;  %v1423_v58 = vmul.f32 %v6758_v15, %v1391_v29  ;;  %v1236_v16 = vmul.f32 %v6968_v11, %v1204_v39 }
 0x1a8   : > { %2075 = vst.msk [vmem:[#allocation2 + $0xc0] sm:$0xff] %vm535_vm0, %v6040_v31  ;;  %2076 = vst.msk [vmem:[#allocation2 + $0xc8] sm:$0xff] %vm535_vm0, %v6040_v31  ;;  %v1174_v22 = vmul.f32 1.0614054, %v6995_v5  ;;  %v1525_v0 = vmul.f32 1.442695, %v1479_v59  ;;  %v1362_v35 = vmul.f32 %v6809_v6, %v1330_v23 }
 0x1a9   : > { %2077 = vst.msk [vmem:[#allocation2 + $0xd0] sm:$0x3] %vm2052_vm6, %v6040_v31  ;;  %2080 = vst.msk [vmem:[#allocation2 + $0xe8] sm:$0x3] %vm2052_vm6, %v6040_v31  ;;  %v1205_v13 = vadd.f32 -1.4531521, %v1173_v26  ;;  %v1491_v59 = vmul.f32 %v1459_v32, %v6774_v30 }
 0x1aa   : > { %2078 = vst.msk [vmem:[#allocation2 + $0xd8] sm:$0xff] %vm535_vm0, %v6040_v31  ;;  %2079 = vst.msk [vmem:[#allocation2 + $0xe0] sm:$0xff] %vm535_vm0, %v6040_v31  ;;  %v1175_v52 = vmul.f32 1.0614054, %v7009_v1  ;;  %v1460_v49 = vsub.f32 0.0, %v6790_v33  ;;  %5882 = vpow2.f32 %v1525_v0  ;;  %vm936_vm7 = vcmp.ge.f32.partialorder %v6763_v38, 0.0 }
 0x1ab   : > { %2081 = vst.msk [vmem:[#allocation2 + $0xf0] sm:$0xff] %vm535_vm0, %v6040_v31  ;;  %2082 = vst.msk [vmem:[#allocation2 + $0xf8] sm:$0xff] %vm535_vm0, %v6040_v31  ;;  %v1545_v34 = vmul.f32 1.442695, %v1489_v7  ;;  %v1206_v42 = vadd.f32 -1.4531521, %v1174_v22  ;;  %v1237_v15 = vmul.f32 %v6985_v57, %v1205_v13  ;;  %v5879_v32 = vpop.eup %5878 }
 0x1ac   : > { %2083 = vst.msk [vmem:[#allocation2 + $0x100] sm:$0x3] %vm2052_vm6, %v6040_v31  ;;  %2086 = vst.msk [vmem:[#allocation2 + $0x118] sm:$0x3] %vm2052_vm6, %v6040_v31  ;;  %v1176_v26 = vmul.f32 1.0614054, %v7012_v37  ;;  %v1492_v7 = vmul.f32 %v1460_v49, %v6790_v33 }
 0x1ad   : > { %2084 = vst.msk [vmem:[#allocation2 + $0x108] sm:$0xff] %vm535_vm0, %v6040_v31  ;;  %2085 = vst.msk [vmem:[#allocation2 + $0x110] sm:$0xff] %vm535_vm0, %v6040_v31  ;;  %v1207_v39 = vadd.f32 -1.4531521, %v1175_v52  ;;  %v1268_v23 = vadd.f32 1.4214138, %v1236_v16  ;;  %5884 = vpow2.f32 %v1545_v34 }
 0x1ae   : > { %2087 = vst.msk [vmem:[#allocation2 + $0x120] sm:$0xff] %vm535_vm0, %v6040_v31  ;;  %2088 = vst.msk [vmem:[#allocation2 + $0x128] sm:$0xff] %vm535_vm0, %v6040_v31  ;;  %v1461_v22 = vsub.f32 0.0, %v6816_v48  ;;  %v1394_v0 = vadd.f32 0.2548296, %v1362_v35  ;;  %v7036_v16 = vpop.eup %5880  ;;  %v968_v38 = vsel %vm936_vm7, 1.0, %v8943_v43 }
 0x1af   : > { %2089 = vst.msk [vmem:[#allocation2 + $0x130] sm:$0x3] %vm2052_vm6, %v6040_v31  ;;  %2092 = vst.msk [vmem:[#allocation2 + $0x148] sm:$0x3] %vm2052_vm6, %v6040_v31  ;;  %v1239_v33 = vmul.f32 %v7009_v1, %v1207_v39  ;;  %v1300_v49 = vmul.f32 %v6968_v11, %v1268_v23  ;;  %vm943_vm8 = vcmp.ge.f32.partialorder %v6629_v9, 0.0  ;;  %vm935_vm9 = vcmp.ge.f32.partialorder %v6846_v24, 0.0 }
 0x1b0   : > { %2090 = vst.msk [vmem:[#allocation2 + $0x138] sm:$0xff] %vm535_vm0, %v6040_v31  ;;  %2091 = vst.msk [vmem:[#allocation2 + $0x140] sm:$0xff] %vm535_vm0, %v6040_v31  ;;  %v1493_v35 = vmul.f32 %v1461_v22, %v6816_v48  ;;  %v1464_v22 = vsub.f32 0.0, %v6850_v18  ;;  %v967_v24 = vsel %vm935_vm9, 1.0, %v8943_v43  ;;  %vm944_vm10 = vcmp.ge.f32.partialorder %v6523_v55, 0.0 }
 0x1b1   : > { %2093 = vst.msk [vmem:[#allocation2 + $0x150] sm:$0xff] %vm535_vm0, %v6040_v31  ;;  %2094 = vst.msk [vmem:[#allocation2 + $0x158] sm:$0xff] %vm535_vm0, %v6040_v31  ;;  %v1271_v23 = vadd.f32 1.4214138, %v1239_v33  ;;  %vm945_vm11 = vcmp.ge.f32.partialorder %v6700_v8, 0.0  ;;  %vm946_vm12 = vcmp.ge.f32.partialorder %v6674_v19, 0.0 }
 0x1b2   : > { %2095 = vst.msk [vmem:[#allocation2 + $0x160] sm:$0x3] %vm2052_vm6, %v6040_v31  ;;  %2098 = vst.msk [vmem:[#allocation2 + $0x178] sm:$0x3] %vm2052_vm6, %v6040_v31  ;;  %v977_v55 = vsel %vm945_vm11, 1.0, %v8943_v43  ;;  %vm947_vm13 = vcmp.ge.f32.partialorder %v6751_v62, 0.0 }
 0x1b3   : > { %2096 = vst.msk [vmem:[#allocation2 + $0x168] sm:$0xff] %vm535_vm0, %v6040_v31  ;;  %2097 = vst.msk [vmem:[#allocation2 + $0x170] sm:$0xff] %vm535_vm0, %v6040_v31 }
 0x1b4   : > { %2099 = vst.msk [vmem:[#allocation2 + $0x180] sm:$0xff] %vm535_vm0, %v6040_v31  ;;  %2100 = vst.msk [vmem:[#allocation2 + $0x188] sm:$0xff] %vm535_vm0, %v6040_v31 }
 0x1b5   : > { %2101 = vst.msk [vmem:[#allocation2 + $0x190] sm:$0x3] %vm2052_vm6, %v6040_v31  ;;  %2104 = vst.msk [vmem:[#allocation2 + $0x1a8] sm:$0x3] %vm2052_vm6, %v6040_v31 }
 0x1b6   : > { %2102 = vst.msk [vmem:[#allocation2 + $0x198] sm:$0xff] %vm535_vm0, %v6040_v31  ;;  %2103 = vst.msk [vmem:[#allocation2 + $0x1a0] sm:$0xff] %vm535_vm0, %v6040_v31  ;;  %v1203_v31 = vadd.f32 -1.4531521, %v1171_v53  ;;  %v1352_v53 = vmul.f32 %v6872_v50, %v1320_v63 }
 0x1b8   : > { %v1235_v27 = vmul.f32 %v6885_v40, %v1203_v31  ;;  %v1384_v2 = vadd.f32 0.2548296, %v1352_v53  ;;  %v1223_v31 = vmul.f32 %v6992_v61, %v1191_v45  ;;  %v1329_v45 = vadd.f32 -0.28449672, %v1297_v28 }
 0x1b9   : > { %v1238_v28 = vmul.f32 %v6995_v5, %v1206_v42 }
 0x1ba   : > { %v1267_v63 = vadd.f32 1.4214138, %v1235_v27  ;;  %v1255_v53 = vadd.f32 1.4214138, %v1223_v31  ;;  %v1416_v51 = vmul.f32 %v6872_v50, %v1384_v2  ;;  %v7027_v27 = vmul.f32 %v6895_v47, %v1423_v58 }
 0x1bb   : > { %v1549_v50 = vmul.f32 1.442695, %v1491_v59  ;;  %v1208_v31 = vadd.f32 -1.4531521, %v1176_v26  ;;  %v1361_v52 = vmul.f32 %v6839_v25, %v1329_v45  ;;  %v1269_v47 = vadd.f32 1.4214138, %v1237_v15 }
 0x1bc   : > { %v1287_v29 = vmul.f32 %v6992_v61, %v1255_v53  ;;  %v1299_v30 = vmul.f32 %v6885_v40, %v1267_v63  ;;  %v1576_v13 = vmul.f32 %v5879_v32, %v1416_v51  ;;  %v1551_v63 = vmul.f32 1.442695, %v1492_v7  ;;  %v5883_v7 = vpop.eup %5882 }
 0x1bd   : > { %v1462_v59 = vsub.f32 0.0, %v6824_v60  ;;  %5886 = vpow2.f32 %v1549_v50  ;;  %v1270_v42 = vadd.f32 1.4214138, %v1238_v28  ;;  %v1240_v26 = vmul.f32 %v7012_v37, %v1208_v31 }
 0x1be   : > { %v1319_v2 = vadd.f32 -0.28449672, %v1287_v29  ;;  %v1331_v34 = vadd.f32 -0.28449672, %v1299_v30  ;;  %v1608_v51 = vsub.f32 1.0, %v1576_v13  ;;  %v1463_v45 = vsub.f32 0.0, %v6868_v41 }
 0x1bf   : > { %v1393_v15 = vadd.f32 0.2548296, %v1361_v52  ;;  %v1301_v29 = vmul.f32 %v6985_v57, %v1269_v47  ;;  %v1332_v30 = vadd.f32 -0.28449672, %v1300_v49  ;;  %v1494_v48 = vmul.f32 %v1462_v59, %v6824_v60  ;;  %v5885_v52 = vpop.eup %5884 }
 0x1c0   : > { %v1351_v58 = vmul.f32 %v6992_v61, %v1319_v2  ;;  %v1363_v32 = vmul.f32 %v6885_v40, %v1331_v34  ;;  %v1553_v50 = vmul.f32 1.442695, %v1493_v35  ;;  %v1302_v28 = vmul.f32 %v6995_v5, %v1270_v42 }
 0x1c1   : > { %v1272_v13 = vadd.f32 1.4214138, %v1240_v26  ;;  %v1495_v31 = vmul.f32 %v1463_v45, %v6868_v41  ;;  %5888 = vpow2.f32 %v1551_v63  ;;  %v1333_v47 = vadd.f32 -0.28449672, %v1301_v29 }
 0x1c2   : > { %v1383_v53 = vadd.f32 0.2548296, %v1351_v58  ;;  %v1303_v58 = vmul.f32 %v7009_v1, %v1271_v23  ;;  %v1425_v33 = vmul.f32 %v6839_v25, %v1393_v15  ;;  %v1364_v49 = vmul.f32 %v6968_v11, %v1332_v30 }
 0x1c3   : > { %v1555_v34 = vmul.f32 1.442695, %v1494_v48  ;;  %v1395_v59 = vadd.f32 0.2548296, %v1363_v32  ;;  %5890 = vpow2.f32 %v1553_v50  ;;  %v1496_v35 = vmul.f32 %v1464_v22, %v6850_v18 }
 0x1c4   : > { %v1415_v39 = vmul.f32 %v6992_v61, %v1383_v53  ;;  %v1640_v61 = vmul.f32 %v1608_v51, %v968_v38  ;;  %v1334_v42 = vadd.f32 -0.28449672, %v1302_v28  ;;  %v1304_v63 = vmul.f32 %v7012_v37, %v1272_v13 }
 0x1c5   : > { %v1557_v51 = vmul.f32 1.442695, %v1495_v31  ;;  %v1365_v45 = vmul.f32 %v6985_v57, %v1333_v47  ;;  %v871_v25 = vmul.f32 0.5, %v6831_v3  ;;  %v1335_v29 = vadd.f32 -0.28449672, %v1303_v58 }
 0x1c6   : > { %v1575_v2 = vmul.f32 %v5883_v7, %v1415_v39  ;;  %v1672_v41 = vadd.f32 1.0, %v1640_v61  ;;  %v1615_v39 = vsub.f32 1.0, %v7027_v27  ;;  %v1426_v23 = vmul.f32 %v6809_v6, %v1394_v0 }
 0x1c7   : > { %v5887_v26 = vpop.eup %5886  ;;  %v1585_v7 = vmul.f32 %v5885_v52, %v1425_v33  ;;  %v872_v18 = vmul.f32 0.5, %v6748_v54  ;;  %v1396_v30 = vadd.f32 0.2548296, %v1364_v49  ;;  %5892 = vpow2.f32 %v1555_v34 }
 0x1c8   : > { %v1607_v60 = vsub.f32 1.0, %v1575_v2  ;;  %v1559_v32 = vmul.f32 1.442695, %v1496_v35  ;;  %v1366_v38 = vmul.f32 %v6995_v5, %v1334_v42  ;;  %v1336_v22 = vadd.f32 -0.28449672, %v1304_v63 }
 0x1c9   : > { %v1704_v50 = vmul.f32 %v1672_v41, %v872_v18  ;;  %5894 = vpow2.f32 %v1557_v51  ;;  %v1427_v3 = vmul.f32 %v6885_v40, %v1395_v59  ;;  %v1397_v2 = vadd.f32 0.2548296, %v1365_v45  ;;  %v8969_v45 = vld [vmem:[#allocation7_spill] sm:$0xff]  ;;  %v8971_v18 = vld [vmem:[#allocation12_spill] sm:$0xff] }
 0x1ca   : > { %v1639_v53 = vmul.f32 %v1607_v60, %v967_v24  ;;  %v1367_v27 = vmul.f32 %v7009_v1, %v1335_v29  ;;  %v8967_v54 = vsub.f32 1.0, %v6813_v46  ;;  %v1677_v0 = vadd.f32 1.0, %v6859_v20 }
 0x1cb   : > { %v1616_v28 = vsub.f32 1.0, %v7003_v56  ;;  %v975_v61 = vsel %vm943_vm8, 1.0, %v8943_v43  ;;  %v5889_v40 = vpop.eup %5888  ;;  %v1586_v31 = vmul.f32 %v7036_v16, %v1426_v23  ;;  %v1428_v52 = vmul.f32 %v6968_v11, %v1396_v30 }
 0x1cc   : > { %v1671_v15 = vadd.f32 1.0, %v1639_v53  ;;  %v1646_v6 = vmul.f32 %v8967_v54, %v6609_v17  ;;  %v1647_v13 = vmul.f32 %v1615_v39, %v975_v61  ;;  %5896 = vpow2.f32 %v1559_v32  ;;  %v8970_v39 = vld [vmem:[#allocation14_spill] sm:$0xff]  ;;  %v8972_v32 = vld [vmem:[#allocation13_spill] sm:$0xff] }
 0x1cd   : > { %v1617_v17 = vsub.f32 1.0, %v1585_v7  ;;  %v1398_v46 = vadd.f32 0.2548296, %v1366_v38  ;;  %v1368_v20 = vmul.f32 %v7012_v37, %v1336_v22  ;;  %v5891_v9 = vpop.eup %5890  ;;  %v976_v56 = vsel %vm944_vm10, 1.0, %v8943_v43 }
 0x1ce   : > { %v1703_v48 = vmul.f32 %v1671_v15, %v871_v25  ;;  %v1587_v47 = vmul.f32 %v5887_v26, %v1427_v3  ;;  %v1429_v16 = vmul.f32 %v6985_v57, %v1397_v2  ;;  %v1399_v60 = vadd.f32 0.2548296, %v1367_v27  ;;  %v8973_v3 = vld [vmem:[#allocation15_spill] sm:$0xff] }
 0x1cf   : > { %v1678_v11 = vadd.f32 1.0, %v1646_v6  ;;  %v1648_v58 = vmul.f32 %v1616_v28, %v976_v56  ;;  %v879_v33 = vmul.f32 0.5, %v6615_v21  ;;  %v1618_v49 = vsub.f32 1.0, %v1586_v31  ;;  %v8974_v28 = vld [vmem:[#allocation10_spill] sm:$0xff]  ;;  %v8975_v31 = vld [vmem:[#allocation4_spill] sm:$0xff] }
 0x1d0   : > { %5581 = vmatprep.mubr.msk.f32.mxu1 %vm535_vm0, %v1703_v48  ;;  %v1588_v34 = vmul.f32 %v5889_v40, %v1428_v52  ;;  %v1709_v57 = vmul.f32 %v1677_v0, %v6690_v12  ;;  %v1649_v24 = vmul.f32 %v1617_v17, %v977_v55  ;;  %v1430_v21 = vmul.f32 %v6995_v5, %v1398_v46 }
 0x1d1   : > { %5582 = vmatmul.mubr.msk.f32.gmra.mrb[30].mxu1 %vm535_vm0, %v1704_v50  ;;  %v1400_v59 = vadd.f32 0.2548296, %v1368_v20  ;;  %v5893_v35 = vpop.eup %5892  ;;  %v1589_v53 = vmul.f32 %v5891_v9, %v1429_v16  ;;  %v1431_v42 = vmul.f32 %v7009_v1, %v1399_v60  ;;  %v1710_v8 = vmul.f32 %v1678_v11, %v6589_v4  ;;  %v8976_v20 = vld [vmem:[#allocation16_spill] sm:$0xff]  ;;  %v8977_v11 = vld [vmem:[#allocation3_spill] sm:$0xff] }
 0x1d2   : > { %5584 = vmatprep.mubr.msk.f32.mxu1 %vm535_vm0, %v6586_v14  ;;  %v1679_v14 = vadd.f32 1.0, %v1647_v13  ;;  %v880_v63 = vmul.f32 0.5, %v6509_v36  ;;  %v1680_v51 = vadd.f32 1.0, %v1648_v58  ;;  %v978_v12 = vsel %vm946_vm12, 1.0, %v8943_v43 }
 0x1d3   : > { %v5895_v41 = vpop.eup %5894  ;;  %v1650_v26 = vmul.f32 %v1618_v49, %v978_v12  ;;  %vm948_vm14 = vcmp.ge.f32.partialorder %v8969_v45, 0.0  ;;  %v1620_v25 = vsub.f32 1.0, %v1588_v34  ;;  %v1681_v1 = vadd.f32 1.0, %v1649_v24 }
 0x1d4   : > { %v1711_v5 = vmul.f32 %v1679_v14, %v879_v33  ;;  %v979_v36 = vsel %vm947_vm13, 1.0, %v8943_v43  ;;  %v1590_v4 = vmul.f32 %v5893_v35, %v1430_v21  ;;  %v1432_v15 = vmul.f32 %v7012_v37, %v1400_v59  ;;  %v8978_v33 = vld [vmem:[#allocation6_spill] sm:$0xff]  ;;  %v8979_v59 = vld [vmem:[#allocation5_spill] sm:$0xff] }
 0x1d5   : > { %5585 = vmatmul.mubr.msk.f32.gmra.mrb[32].mxu1 %vm535_vm0, %v6582_v10  ;;  %v1619_v10 = vsub.f32 1.0, %v1587_v47  ;;  %vm949_vm15 = vcmp.ge.f32.partialorder %v8970_v39, 0.0  ;;  %v1621_v23 = vsub.f32 1.0, %v1589_v53  ;;  %v1591_v7 = vmul.f32 %v5895_v41, %v1431_v42 }
 0x1d6   : > { %5587 = vmatprep.mubr.msk.f32.mxu1 %vm535_vm0, %v6706_v44  ;;  %v8968_v44 = vld [vmem:[#allocation11_spill] sm:$0xff]  ;;  %v5897_v19 = vpop.eup %5896  ;;  %v882_v30 = vmul.f32 0.5, %v8971_v18  ;;  %v881_v48 = vmul.f32 0.5, %v8972_v32  ;;  %v980_v38 = vsel %vm948_vm14, 1.0, %v8943_v43  ;;  %v1712_v50 = vmul.f32 %v1680_v51, %v880_v63  ;;  %v8981_v51 = vld [vmem:[#allocation8_spill] sm:$0xff] }
 0x1d7   : > { %v1651_v29 = vmul.f32 %v1619_v10, %v979_v36  ;;  %v1682_v62 = vadd.f32 1.0, %v1650_v26  ;;  %v1652_v22 = vmul.f32 %v1620_v25, %v980_v38  ;;  %vm950_vm1 = vcmp.ge.f32.partialorder %v8973_v3, 0.0  ;;  %v8980_v10 = vld [vmem:[#allocation9_spill] sm:$0xff] }
 0x1d8   : > { %v1713_v37 = vmul.f32 %v1681_v1, %v881_v48  ;;  %v1622_v2 = vsub.f32 1.0, %v1590_v4  ;;  %v981_v27 = vsel %vm949_vm15, 1.0, %v8943_v43  ;;  %v1592_v54 = vmul.f32 %v5897_v19, %v1432_v15  ;;  %v2140_v48 = vld [vmem:[#allocation2] sm:$0xff] }
 0x1d9   : > { %5588 = vmatmul.mubr.msk.f32.gmra.mrb[34].mxu1 %vm535_vm0, %v8968_v44  ;;  %v1683_v6 = vadd.f32 1.0, %v1651_v29  ;;  %v1653_v0 = vmul.f32 %v1621_v23, %v981_v27  ;;  %vm951_vm2 = vcmp.ge.f32.partialorder %v8974_v28, 0.0  ;;  %v1623_v61 = vsub.f32 1.0, %v1591_v7  ;;  %v2138_v7 = vld [vmem:[%s8894_s5] sm:$0xff] }
 0x1da   : > { %5590 = vmatprep.mubr.msk.f32.mxu1 %vm535_vm0, %v1709_v57  ;;  %v1714_v40 = vmul.f32 %v1682_v62, %v882_v30  ;;  %v1684_v13 = vadd.f32 1.0, %v1652_v22  ;;  %v883_v52 = vmul.f32 0.5, %v8975_v31  ;;  %v982_v17 = vsel %vm950_vm1, 1.0, %v8943_v43  ;;  %v2240_v38 = vld [vmem:[#allocation2 + $0x1] sm:$0xff] }
 0x1db   : > { %v1654_v46 = vmul.f32 %v1622_v2, %v982_v17  ;;  %vm952_vm3 = vcmp.ge.f32.partialorder %v8976_v20, 0.0  ;;  %v1624_v9 = vsub.f32 1.0, %v1592_v54  ;;  %v983_v56 = vsel %vm951_vm2, 1.0, %v8943_v43  ;;  %v2141_v22 = vld [vmem:[#allocation2 + $0x8] sm:$0xff] }
 0x1dc   : > { %v1715_v47 = vmul.f32 %v1683_v6, %v883_v52  ;;  %v1685_v16 = vadd.f32 1.0, %v1653_v0  ;;  %v1655_v60 = vmul.f32 %v1623_v61, %v983_v56  ;;  %v884_v58 = vmul.f32 0.5, %v8977_v11  ;;  %v2241_v54 = vld [vmem:[#allocation2 + $0x9] sm:$0xff] }
 0x1dd   : > { %5591 = vmatmul.mubr.msk.f32.gmra.mrb[36].mxu1 %vm535_vm0, %v1710_v8  ;;  %v885_v14 = vmul.f32 0.5, %v8978_v33  ;;  %v984_v49 = vsel %vm952_vm3, 1.0, %v8943_v43  ;;  %v1686_v34 = vadd.f32 1.0, %v1654_v46  ;;  %v886_v35 = vmul.f32 0.5, %v8979_v59  ;;  %v7142_v8 = vld [vmem:[%s8893_s4] ss:$0 sm:$0xff] }
 0x1de   : > { %5593 = vmatprep.mubr.msk.f32.mxu1 %vm535_vm0, %v1711_v5  ;;  %v1716_v55 = vmul.f32 %v1684_v13, %v884_v58  ;;  %v1656_v57 = vmul.f32 %v1624_v9, %v984_v49  ;;  %v1687_v21 = vadd.f32 1.0, %v1655_v60  ;;  %v887_v53 = vmul.f32 0.5, %v8980_v10  ;;  %v2340_v6 = vld [vmem:[#allocation2 + $0x2] sm:$0xff] }
 0x1df   : > { %v1717_v24 = vmul.f32 %v1685_v16, %v885_v14  ;;  %v1718_v42 = vmul.f32 %v1686_v34, %v886_v35  ;;  %v888_v12 = vmul.f32 0.5, %v8981_v51  ;;  %v2172_v19 = vlaneseq }
 0x1e0   : > { %v1688_v41 = vadd.f32 1.0, %v1656_v57  ;;  %v1719_v63 = vmul.f32 %v1687_v21, %v887_v53 }
 0x1e1   : > { %5594 = vmatmul.mubr.msk.f32.gmra.mrb[38].mxu1 %vm535_vm0, %v1712_v50  ;;  %v2173_v29 = vshrl.u32 %v2172_v19, 7 }
 0x1e2   : > { %5596 = vmatprep.mubr.msk.f32.mxu1 %vm535_vm0, %v1713_v37  ;;  %v1720_v45 = vmul.f32 %v1688_v41, %v888_v12 }
 0x1e3   : > { %v2174_v39 = vsub.s32 0, %v2173_v29  ;;  %v2274_v23 = vsub.s32 1, %v2173_v29  ;;  %v2374_v32 = vsub.s32 2, %v2173_v29  ;;  %v2574_v50 = vsub.s32 4, %v2173_v29 }
 0x1e4   : > { %v2674_v62 = vsub.s32 5, %v2173_v29  ;;  %v2474_v27 = vsub.s32 3, %v2173_v29  ;;  %v2875_v11 = vsub.s32 7, %v2173_v29  ;;  %v2775_v14 = vsub.s32 6, %v2173_v29 }
 0x1e5   : > { %5597 = vmatmul.mubr.msk.f32.gmra.mrb[40].mxu1 %vm535_vm0, %v1714_v40  ;;  %v7171_v18 = vrot.slane %v2138_v7, %v2174_v39  ;;  %v7173_v30 = vrot.slane %v2138_v7, %v2274_v23  ;;  %v7177_v2 = vrot.slane %v2138_v7, %v2374_v32  ;;  %v7179_v0 = vrot.slane %v2138_v7, %v2574_v50  ;;  %v2341_v40 = vld [vmem:[#allocation2 + $0xa] sm:$0xff] }
 0x1e6   : > { %5599 = vmatprep.mubr.msk.f32.mxu1 %vm535_vm0, %v1715_v47  ;;  %v7184_v52 = vrot.slane %v2138_v7, %v2474_v27  ;;  %v7187_v9 = vrot.slane %v2138_v7, %v2674_v62  ;;  %v7195_v53 = vrot.slane %v2138_v7, %v2775_v14  ;;  %v7198_v51 = vrot.slane %v2138_v7, %v2875_v11  ;;  %v7207_v7 = vld [vmem:[%s8894_s5 + $0x8] ss:$0 sm:$0xff]  ;;  %v7235_v14 = vld [vmem:[%s8895_s6] ss:$0 sm:$0xff] }
 0x1e7   : > { %v2176_v3 = vmul.f32 %v7171_v18, %v2140_v48  ;;  %v2276_v37 = vmul.f32 %v7173_v30, %v2240_v38  ;;  %v2177_v28 = vmul.f32 %v7171_v18, %v2141_v22  ;;  %v2277_v61 = vmul.f32 %v7173_v30, %v2241_v54 }
 0x1e8   : > { %v2376_v31 = vmul.f32 %v7177_v2, %v2340_v6  ;;  %v2377_v17 = vmul.f32 %v7177_v2, %v2341_v40 }
 0x1e9   : > { %5600 = vmatmul.mubr.msk.f32.gmra.mrb[42].mxu1 %vm535_vm0, %v1716_v55  ;;  %v2308_v13 = vadd.f32 %v2276_v37, %v2176_v3  ;;  %v2309_v56 = vadd.f32 %v2277_v61, %v2177_v28 }
 0x1ea   : > { %5602 = vmatprep.mubr.msk.f32.mxu1 %vm535_vm0, %v1717_v24 }
 0x1eb   : > { %v2408_v47 = vadd.f32 %v2376_v31, %v2308_v13  ;;  %v2409_v49 = vadd.f32 %v2377_v17, %v2309_v56 }
 0x1ed   : > { %5603 = vmatmul.mubr.msk.f32.gmra.mrb[44].mxu1 %vm535_vm0, %v1718_v42 }
 0x1ee   : > { %5605 = vmatprep.mubr.msk.f32.mxu1 %vm535_vm0, %v1719_v63 }
 0x1ef   : > { %v5562_v44 = vpop.f32.mrb[16].mxu1 }
 0x1f0   : > { %v7148_v5 = vadd.f32 %v5562_v44, %v7142_v8  ;;  %v1891_v26 = vpop.f32.mrb[17].mxu1 }
 0x1f1   : > { %v7151_v25 = vadd.f32 %v7142_v8, %v1891_v26  ;;  %5606 = vmatmul.mubr.msk.f32.gmra.mrb[46].mxu1 %vm535_vm0, %v1720_v45 }
 0x1f2   : > { %2107 = vst.msk [vmem:[#allocation2 + $0x21] sm:$0xff] %vm535_vm0, %v7148_v5 }
 0x1f3   : > { %2106 = vst.msk [vmem:[#allocation2 + $0x19] sm:$0xff] %vm535_vm0, %v7151_v25 }
 0x1f7   : > { %v5565_v1 = vpop.f32.mrb[18].mxu1 }
 0x1f8   : > { %v7159_v36 = vadd.f32 %v5565_v1, %v7142_v8  ;;  %v1901_v4 = vpop.f32.mrb[19].mxu1 }
 0x1f9   : > { %v7162_v15 = vadd.f32 %v7142_v8, %v1901_v4  ;;  %v2541_v33 = vld [vmem:[#allocation2 + $0x21] sm:$0xff] }
 0x1fa   : > { %2109 = vst.msk [vmem:[#allocation2 + $0x39] sm:$0xff] %vm535_vm0, %v7159_v36  ;;  %v2440_v46 = vld [vmem:[#allocation2 + $0x18] sm:$0xff]  ;;  %v2441_v58 = vld [vmem:[#allocation2 + $0x20] sm:$0xff]  ;;  %v2577_v41 = vmul.f32 %v7179_v0, %v2541_v33  ;;  %v2279_v22 = vmul.f32 %v2541_v33, %v7173_v30 }
 0x1fb   : > { %2108 = vst.msk [vmem:[#allocation2 + $0x31] sm:$0xff] %vm535_vm0, %v7162_v15  ;;  %v2540_v20 = vld [vmem:[#allocation2 + $0x19] sm:$0xff]  ;;  %v2476_v16 = vmul.f32 %v7184_v52, %v2440_v46  ;;  %v2477_v55 = vmul.f32 %v7184_v52, %v2441_v58  ;;  %v2641_v24 = vld [vmem:[#allocation2 + $0x22] sm:$0xff]  ;;  %v2178_v21 = vmul.f32 %v2440_v46, %v7171_v18  ;;  %v2179_v62 = vmul.f32 %v2441_v58, %v7171_v18 }
 0x1fc   : > { %v2640_v60 = vld [vmem:[#allocation2 + $0x1a] sm:$0xff]  ;;  %v2576_v57 = vmul.f32 %v7179_v0, %v2540_v20  ;;  %v2278_v59 = vmul.f32 %v2540_v20, %v7173_v30  ;;  %v2677_v4 = vmul.f32 %v7187_v9, %v2641_v24  ;;  %v2379_v28 = vmul.f32 %v2641_v24, %v7177_v2 }
 0x1fd   : > { %v2508_v34 = vadd.f32 %v2476_v16, %v2408_v47  ;;  %v2676_v35 = vmul.f32 %v7187_v9, %v2640_v60  ;;  %v2509_v42 = vadd.f32 %v2477_v55, %v2409_v49  ;;  %v2378_v26 = vmul.f32 %v2640_v60, %v7177_v2 }
 0x1fe   : > { %v2310_v44 = vadd.f32 %v2278_v59, %v2178_v21  ;;  %v2311_v31 = vadd.f32 %v2279_v22, %v2179_v62 }
 0x1ff   : > { %v2608_v63 = vadd.f32 %v2576_v57, %v2508_v34  ;;  %v2609_v1 = vadd.f32 %v2577_v41, %v2509_v42 }
 0x200   : > { %v2410_v23 = vadd.f32 %v2378_v26, %v2310_v44  ;;  %v2411_v11 = vadd.f32 %v2379_v28, %v2311_v31 }
 0x201   : > { %v2842_v19 = vld [vmem:[#allocation2 + $0x39] sm:$0xff]  ;;  %v2708_v29 = vadd.f32 %v2676_v35, %v2608_v63  ;;  %v2709_v38 = vadd.f32 %v2677_v4, %v2609_v1 }
 0x202   : > { %v2741_v10 = vld [vmem:[#allocation2 + $0x30] sm:$0xff]  ;;  %v2742_v12 = vld [vmem:[#allocation2 + $0x38] sm:$0xff]  ;;  %v2878_v54 = vmul.f32 %v7198_v51, %v2842_v19  ;;  %v2579_v34 = vmul.f32 %v2842_v19, %v7179_v0 }
 0x203   : > { %v2841_v45 = vld [vmem:[#allocation2 + $0x31] sm:$0xff]  ;;  %v2777_v39 = vmul.f32 %v7195_v53, %v2741_v10  ;;  %v2478_v32 = vmul.f32 %v2741_v10, %v7184_v52  ;;  %v2778_v50 = vmul.f32 %v7195_v53, %v2742_v12  ;;  %v2942_v6 = vld [vmem:[#allocation2 + $0x3a] sm:$0xff]  ;;  %v2479_v17 = vmul.f32 %v2742_v12, %v7184_v52 }
 0x204   : > { %v7209_v48 = vld [vmem:[#allocation2 + $0x32] sm:$0xff]  ;;  %v2877_v27 = vmul.f32 %v7198_v51, %v2841_v45  ;;  %v2978_v60 = vmul.f32 %v7207_v7, %v2942_v6  ;;  %v2578_v33 = vmul.f32 %v2841_v45, %v7179_v0  ;;  %v2679_v42 = vmul.f32 %v2942_v6, %v7187_v9 }
 0x205   : > { %v2809_v37 = vadd.f32 %v2777_v39, %v2708_v29  ;;  %v2810_v13 = vadd.f32 %v2778_v50, %v2709_v38  ;;  %v2977_v56 = vmul.f32 %v7207_v7, %v7209_v48  ;;  %v2510_v47 = vadd.f32 %v2478_v32, %v2410_v23 }
 0x206   : > { %v2511_v55 = vadd.f32 %v2479_v17, %v2411_v11  ;;  %v2678_v35 = vmul.f32 %v7209_v48, %v7187_v9  ;;  %v2180_v1 = vmul.f32 %v2741_v10, %v7171_v18  ;;  %v2280_v4 = vmul.f32 %v2841_v45, %v7173_v30 }
 0x207   : > { %v2909_v20 = vadd.f32 %v2877_v27, %v2809_v37  ;;  %v2910_v16 = vadd.f32 %v2878_v54, %v2810_v13  ;;  %v2610_v24 = vadd.f32 %v2578_v33, %v2510_v47  ;;  %v2181_v32 = vmul.f32 %v2742_v12, %v7171_v18 }
 0x208   : > { %v2611_v59 = vadd.f32 %v2579_v34, %v2511_v55  ;;  %v2281_v38 = vmul.f32 %v2842_v19, %v7173_v30  ;;  %v2312_v27 = vadd.f32 %v2280_v4, %v2180_v1  ;;  %v2380_v13 = vmul.f32 %v7209_v48, %v7177_v2 }
 0x209   : > { %v3009_v58 = vadd.f32 %v2977_v56, %v2909_v20  ;;  %v3010_v49 = vadd.f32 %v2978_v60, %v2910_v16  ;;  %v2710_v41 = vadd.f32 %v2678_v35, %v2610_v24  ;;  %v2381_v17 = vmul.f32 %v2942_v6, %v7177_v2 }
 0x20a   : > { %v2711_v26 = vadd.f32 %v2679_v42, %v2611_v59  ;;  %v2313_v19 = vadd.f32 %v2281_v38, %v2181_v32  ;;  %v2412_v56 = vadd.f32 %v2380_v13, %v2312_v27 }
 0x20b   : > { %v3048_v57 = vadd.f32 %v7235_v14, %v3009_v58  ;;  %v3049_v21 = vadd.f32 %v7235_v14, %v3010_v49 }
 0x20c   : > { %v2413_v60 = vadd.f32 %v2381_v17, %v2313_v19 }
 0x20d   : > { %5610 = vmatprep.mubr.msk.f32.mxu0 %vm535_vm0, %v3048_v57 }
 0x20e   : > { %5611 = vmatmul.mubr.msk.f32.vlgmr.msra.gmra.mrb[16].mxu0 %vm535_vm0, %v3049_v21 }
 0x218   : > { %v5568_v3 = vpop.f32.mrb[20].mxu1 }
 0x219   : > { %v7218_v61 = vadd.f32 %v5568_v3, %v7142_v8  ;;  %v1911_v40 = vpop.f32.mrb[21].mxu1 }
 0x21a   : > { %v7222_v46 = vadd.f32 %v7142_v8, %v1911_v40 }
 0x21b   : > { %2111 = vst.msk [vmem:[#allocation2 + $0x51] sm:$0xff] %vm535_vm0, %v7218_v61 }
 0x21c   : > { %2110 = vst.msk [vmem:[#allocation2 + $0x49] sm:$0xff] %vm535_vm0, %v7222_v46 }
 0x222   : > { %v7255_v23 = vld [vmem:[#allocation2 + $0x51] sm:$0xff] }
 0x223   : > { %v7245_v63 = vld [vmem:[#allocation2 + $0x48] sm:$0xff]  ;;  %v7253_v39 = vld [vmem:[#allocation2 + $0x50] sm:$0xff]  ;;  %v2880_v37 = vmul.f32 %v7198_v51, %v7255_v23  ;;  %v2581_v24 = vmul.f32 %v7255_v23, %v7179_v0 }
 0x224   : > { %v7247_v44 = vld [vmem:[#allocation2 + $0x49] sm:$0xff]  ;;  %v2779_v29 = vmul.f32 %v7195_v53, %v7245_v63  ;;  %v2780_v62 = vmul.f32 %v7195_v53, %v7253_v39  ;;  %v7265_v45 = vld [vmem:[#allocation2 + $0x52] sm:$0xff]  ;;  %v2480_v47 = vmul.f32 %v7245_v63, %v7184_v52  ;;  %v2481_v11 = vmul.f32 %v7253_v39, %v7184_v52 }
 0x225   : > { %v7259_v50 = vld [vmem:[#allocation2 + $0x4a] sm:$0xff]  ;;  %v2879_v10 = vmul.f32 %v7198_v51, %v7247_v44  ;;  %v2980_v40 = vmul.f32 %v7207_v7, %v7265_v45  ;;  %v2580_v57 = vmul.f32 %v7247_v44, %v7179_v0  ;;  %v2681_v42 = vmul.f32 %v7265_v45, %v7187_v9 }
 0x226   : > { %v2811_v22 = vadd.f32 %v2779_v29, %v2710_v41  ;;  %v2812_v3 = vadd.f32 %v2780_v62, %v2711_v26  ;;  %v2979_v12 = vmul.f32 %v7207_v7, %v7259_v50  ;;  %v2512_v55 = vadd.f32 %v2480_v47, %v2412_v56 }
 0x227   : > { %v5571_v58 = vpop.f32.mrb[22].mxu1  ;;  %v2513_v34 = vadd.f32 %v2481_v11, %v2413_v60  ;;  %v2680_v35 = vmul.f32 %v7259_v50, %v7187_v9  ;;  %v2182_v56 = vmul.f32 %v7245_v63, %v7171_v18  ;;  %v2282_v47 = vmul.f32 %v7247_v44, %v7173_v30 }
 0x228   : > { %v2911_v54 = vadd.f32 %v2879_v10, %v2811_v22  ;;  %v2912_v28 = vadd.f32 %v2880_v37, %v2812_v3  ;;  %v7283_v49 = vadd.f32 %v5571_v58, %v7142_v8  ;;  %v1921_v48 = vpop.f32.mrb[23].mxu1  ;;  %v2612_v21 = vadd.f32 %v2580_v57, %v2512_v55 }
 0x229   : > { %v7287_v6 = vadd.f32 %v7142_v8, %v1921_v48  ;;  %v2613_v59 = vadd.f32 %v2581_v24, %v2513_v34  ;;  %v2283_v60 = vmul.f32 %v7255_v23, %v7173_v30  ;;  %v2314_v11 = vadd.f32 %v2282_v47, %v2182_v56 }
 0x22a   : > { %v3011_v31 = vadd.f32 %v2979_v12, %v2911_v54  ;;  %v3012_v20 = vadd.f32 %v2980_v40, %v2912_v28  ;;  %2113 = vst.msk [vmem:[#allocation2 + $0x69] sm:$0xff] %vm535_vm0, %v7283_v49  ;;  %v2712_v41 = vadd.f32 %v2680_v35, %v2612_v21  ;;  %v2383_v48 = vmul.f32 %v7265_v45, %v7177_v2 }
 0x22b   : > { %2112 = vst.msk [vmem:[#allocation2 + $0x61] sm:$0xff] %vm535_vm0, %v7287_v6  ;;  %v2713_v4 = vadd.f32 %v2681_v42, %v2613_v59 }
 0x22c   : > { %v3050_v16 = vadd.f32 %v7235_v14, %v3011_v31  ;;  %v3051_v33 = vadd.f32 %v7235_v14, %v3012_v20 }
 0x22e   : > { %5613 = vmatprep.mubr.msk.f32.mxu0 %vm535_vm0, %v3050_v16  ;;  %v2183_v16 = vmul.f32 %v7253_v39, %v7171_v18 }
 0x22f   : > { %5614 = vmatmul.mubr.msk.f32.gmra.mrb[18].mxu0 %vm535_vm0, %v3051_v33  ;;  %v2382_v33 = vmul.f32 %v7259_v50, %v7177_v2 }
 0x230   : > { %v2315_v58 = vadd.f32 %v2283_v60, %v2183_v16 }
 0x231   : > { %v2846_v38 = vld [vmem:[#allocation2 + $0x69] sm:$0xff]  ;;  %v2414_v55 = vadd.f32 %v2382_v33, %v2314_v11 }
 0x232   : > { %v2745_v26 = vld [vmem:[#allocation2 + $0x60] sm:$0xff]  ;;  %v2746_v32 = vld [vmem:[#allocation2 + $0x68] sm:$0xff]  ;;  %v2882_v54 = vmul.f32 %v7198_v51, %v2846_v38  ;;  %v2415_v34 = vadd.f32 %v2383_v48, %v2315_v58  ;;  %v2583_v59 = vmul.f32 %v2846_v38, %v7179_v0  ;;  %v2285_v47 = vmul.f32 %v2846_v38, %v7173_v30 }
 0x233   : > { %v2845_v1 = vld [vmem:[#allocation2 + $0x61] sm:$0xff]  ;;  %v2781_v29 = vmul.f32 %v7195_v53, %v2745_v26  ;;  %v2782_v22 = vmul.f32 %v7195_v53, %v2746_v32  ;;  %v7307_v37 = vld [vmem:[#allocation2 + $0x6a] sm:$0xff]  ;;  %v2482_v63 = vmul.f32 %v2745_v26, %v7184_v52  ;;  %v2483_v44 = vmul.f32 %v2746_v32, %v7184_v52 }
 0x234   : > { %v7303_v62 = vld [vmem:[#allocation2 + $0x62] sm:$0xff]  ;;  %v2881_v3 = vmul.f32 %v7198_v51, %v2845_v1  ;;  %v2982_v40 = vmul.f32 %v7207_v7, %v7307_v37  ;;  %v2582_v45 = vmul.f32 %v2845_v1, %v7179_v0  ;;  %v2185_v56 = vmul.f32 %v2746_v32, %v7171_v18 }
 0x235   : > { %v2813_v10 = vadd.f32 %v2781_v29, %v2712_v41  ;;  %v2814_v27 = vadd.f32 %v2782_v22, %v2713_v4  ;;  %v2981_v19 = vmul.f32 %v7207_v7, %v7303_v62  ;;  %v2514_v21 = vadd.f32 %v2482_v63, %v2414_v55 }
 0x236   : > { %v2515_v50 = vadd.f32 %v2483_v44, %v2415_v34  ;;  %v2682_v41 = vmul.f32 %v7303_v62, %v7187_v9  ;;  %v2683_v4 = vmul.f32 %v7307_v37, %v7187_v9  ;;  %v2317_v55 = vadd.f32 %v2285_v47, %v2185_v56 }
 0x237   : > { %v2913_v12 = vadd.f32 %v2881_v3, %v2813_v10  ;;  %v2914_v28 = vadd.f32 %v2882_v54, %v2814_v27  ;;  %v2614_v35 = vadd.f32 %v2582_v45, %v2514_v21  ;;  %v2384_v32 = vmul.f32 %v7303_v62, %v7177_v2 }
 0x238   : > { %v2615_v42 = vadd.f32 %v2583_v59, %v2515_v50  ;;  %v2385_v34 = vmul.f32 %v7307_v37, %v7177_v2 }
 0x239   : > { %v3013_v13 = vadd.f32 %v2981_v19, %v2913_v12  ;;  %v3014_v31 = vadd.f32 %v2982_v40, %v2914_v28  ;;  %v2714_v29 = vadd.f32 %v2682_v41, %v2614_v35  ;;  %v2184_v40 = vmul.f32 %v2745_v26, %v7171_v18 }
 0x23a   : > { %v2715_v3 = vadd.f32 %v2683_v4, %v2615_v42  ;;  %v2417_v21 = vadd.f32 %v2385_v34, %v2317_v55 }
 0x23b   : > { %v3052_v17 = vadd.f32 %v7235_v14, %v3013_v13  ;;  %v3053_v20 = vadd.f32 %v7235_v14, %v3014_v31  ;;  %v2284_v13 = vmul.f32 %v2845_v1, %v7173_v30 }
 0x23d   : > { %5616 = vmatprep.mubr.msk.f32.mxu0 %vm535_vm0, %v3052_v17  ;;  %v2316_v33 = vadd.f32 %v2284_v13, %v2184_v40 }
 0x23e   : > { %5617 = vmatmul.mubr.msk.f32.gmra.mrb[20].mxu0 %vm535_vm0, %v3053_v20 }
 0x248   : > { %v5574_v57 = vpop.f32.mrb[24].mxu1 }
 0x249   : > { %v7333_v39 = vadd.f32 %v5574_v57, %v7142_v8  ;;  %v1931_v24 = vpop.f32.mrb[25].mxu1  ;;  %v2416_v57 = vadd.f32 %v2384_v32, %v2316_v33 }
 0x24a   : > { %v7336_v23 = vadd.f32 %v7142_v8, %v1931_v24 }
 0x24b   : > { %2115 = vst.msk [vmem:[#allocation2 + $0x81] sm:$0xff] %vm535_vm0, %v7333_v39 }
 0x24c   : > { %2114 = vst.msk [vmem:[#allocation2 + $0x79] sm:$0xff] %vm535_vm0, %v7336_v23 }
 0x252   : > { %v7356_v12 = vld [vmem:[#allocation2 + $0x81] sm:$0xff] }
 0x253   : > { %v7348_v22 = vld [vmem:[#allocation2 + $0x78] sm:$0xff]  ;;  %v7354_v54 = vld [vmem:[#allocation2 + $0x80] sm:$0xff]  ;;  %v2884_v60 = vmul.f32 %v7198_v51, %v7356_v12  ;;  %v2585_v4 = vmul.f32 %v7356_v12, %v7179_v0 }
 0x254   : > { %v7350_v10 = vld [vmem:[#allocation2 + $0x79] sm:$0xff]  ;;  %v2783_v27 = vmul.f32 %v7195_v53, %v7348_v22  ;;  %v2784_v28 = vmul.f32 %v7195_v53, %v7354_v54  ;;  %v7366_v20 = vld [vmem:[#allocation2 + $0x82] sm:$0xff]  ;;  %v2484_v24 = vmul.f32 %v7348_v22, %v7184_v52  ;;  %v2485_v50 = vmul.f32 %v7354_v54, %v7184_v52 }
 0x255   : > { %v7358_v19 = vld [vmem:[#allocation2 + $0x7a] sm:$0xff]  ;;  %v2883_v17 = vmul.f32 %v7198_v51, %v7350_v10  ;;  %v2984_v1 = vmul.f32 %v7207_v7, %v7366_v20  ;;  %v2584_v41 = vmul.f32 %v7350_v10, %v7179_v0  ;;  %v2186_v34 = vmul.f32 %v7348_v22, %v7171_v18 }
 0x256   : > { %v2815_v31 = vadd.f32 %v2783_v27, %v2714_v29  ;;  %v2816_v16 = vadd.f32 %v2784_v28, %v2715_v3  ;;  %v2983_v26 = vmul.f32 %v7207_v7, %v7358_v19  ;;  %v2516_v35 = vadd.f32 %v2484_v24, %v2416_v57 }
 0x257   : > { %v2517_v42 = vadd.f32 %v2485_v50, %v2417_v21  ;;  %v2684_v27 = vmul.f32 %v7358_v19, %v7187_v9  ;;  %v2685_v28 = vmul.f32 %v7366_v20, %v7187_v9  ;;  %v2187_v24 = vmul.f32 %v7354_v54, %v7171_v18 }
 0x258   : > { %v2915_v11 = vadd.f32 %v2883_v17, %v2815_v31  ;;  %v2916_v58 = vadd.f32 %v2884_v60, %v2816_v16  ;;  %v2616_v29 = vadd.f32 %v2584_v41, %v2516_v35  ;;  %v2287_v21 = vmul.f32 %v7356_v12, %v7173_v30 }
 0x259   : > { %v2617_v3 = vadd.f32 %v2585_v4, %v2517_v42  ;;  %v2386_v22 = vmul.f32 %v7358_v19, %v7177_v2 }
 0x25a   : > { %v3015_v48 = vadd.f32 %v2983_v26, %v2915_v11  ;;  %v3016_v63 = vadd.f32 %v2984_v1, %v2916_v58  ;;  %v2716_v40 = vadd.f32 %v2684_v27, %v2616_v29  ;;  %v2319_v42 = vadd.f32 %v2287_v21, %v2187_v24 }
 0x25b   : > { %v2717_v17 = vadd.f32 %v2685_v28, %v2617_v3 }
 0x25c   : > { %v3054_v38 = vadd.f32 %v7235_v14, %v3015_v48  ;;  %v3055_v44 = vadd.f32 %v7235_v14, %v3016_v63 }
 0x25d   : > { %v5577_v45 = vpop.f32.mrb[26].mxu1 }
 0x25e   : > { %5619 = vmatprep.mubr.msk.f32.mxu0 %vm535_vm0, %v3054_v38  ;;  %v7389_v62 = vadd.f32 %v5577_v45, %v7142_v8  ;;  %v1941_v59 = vpop.f32.mrb[27].mxu1 }
 0x25f   : > { %5620 = vmatmul.mubr.msk.f32.gmra.mrb[22].mxu0 %vm535_vm0, %v3055_v44  ;;  %v7392_v37 = vadd.f32 %v7142_v8, %v1941_v59  ;;  %v2286_v44 = vmul.f32 %v7350_v10, %v7173_v30  ;;  %v2387_v10 = vmul.f32 %v7366_v20, %v7177_v2 }
 0x260   : > { %2117 = vst.msk [vmem:[#allocation2 + $0x99] sm:$0xff] %vm535_vm0, %v7389_v62 }
 0x261   : > { %2116 = vst.msk [vmem:[#allocation2 + $0x91] sm:$0xff] %vm535_vm0, %v7392_v37  ;;  %v2318_v35 = vadd.f32 %v2286_v44, %v2186_v34  ;;  %v2419_v41 = vadd.f32 %v2387_v10, %v2319_v42 }
 0x263   : > { %v2418_v54 = vadd.f32 %v2386_v22, %v2318_v35 }
 0x267   : > { %v7414_v16 = vld [vmem:[#allocation2 + $0x99] sm:$0xff] }
 0x268   : > { %v7406_v13 = vld [vmem:[#allocation2 + $0x90] sm:$0xff]  ;;  %v7412_v47 = vld [vmem:[#allocation2 + $0x98] sm:$0xff]  ;;  %v2886_v48 = vmul.f32 %v7198_v51, %v7414_v16 }
 0x269   : > { %v7408_v31 = vld [vmem:[#allocation2 + $0x91] sm:$0xff]  ;;  %v2785_v56 = vmul.f32 %v7195_v53, %v7406_v13  ;;  %v2786_v11 = vmul.f32 %v7195_v53, %v7412_v47  ;;  %v7422_v1 = vld [vmem:[#allocation2 + $0x9a] sm:$0xff]  ;;  %v2486_v12 = vmul.f32 %v7406_v13, %v7184_v52  ;;  %v2487_v4 = vmul.f32 %v7412_v47, %v7184_v52 }
 0x26a   : > { %v7416_v60 = vld [vmem:[#allocation2 + $0x92] sm:$0xff]  ;;  %v2885_v58 = vmul.f32 %v7198_v51, %v7408_v31  ;;  %v2986_v38 = vmul.f32 %v7207_v7, %v7422_v1 }
 0x26b   : > { %v2817_v26 = vadd.f32 %v2785_v56, %v2716_v40  ;;  %v2818_v33 = vadd.f32 %v2786_v11, %v2717_v17  ;;  %v2985_v63 = vmul.f32 %v7207_v7, %v7416_v60  ;;  %v2518_v19 = vadd.f32 %v2486_v12, %v2418_v54  ;;  %v3551_v11 = vld [vmem:[%s8900_s11] sm:$0xff] }
 0x26c   : > { %v2519_v20 = vadd.f32 %v2487_v4, %v2419_v41  ;;  %v2586_v40 = vmul.f32 %v7408_v31, %v7179_v0  ;;  %v2587_v17 = vmul.f32 %v7414_v16, %v7179_v0  ;;  %5658 = vmatprep.subr.mxu1 %v3551_v11  ;;  %v2188_v41 = vmul.f32 %v7406_v13, %v7171_v18 }
 0x26d   : > { %v2917_v55 = vadd.f32 %v2885_v58, %v2817_v26  ;;  %v2918_v32 = vadd.f32 %v2886_v48, %v2818_v33  ;;  %v2686_v58 = vmul.f32 %v7416_v60, %v7187_v9  ;;  %5659 = vmatpush3.msra.mxu1 %v3551_v11  ;;  %v2687_v33 = vmul.f32 %v7422_v1, %v7187_v9 }
 0x26e   : > { %v2618_v56 = vadd.f32 %v2586_v40, %v2518_v19  ;;  %v2619_v26 = vadd.f32 %v2587_v17, %v2519_v20  ;;  %v2288_v4 = vmul.f32 %v7408_v31, %v7173_v30  ;;  %v2289_v19 = vmul.f32 %v7414_v16, %v7173_v30 }
 0x26f   : > { %v3017_v57 = vadd.f32 %v2985_v63, %v2917_v55  ;;  %v3018_v50 = vadd.f32 %v2986_v38, %v2918_v32  ;;  %v2388_v31 = vmul.f32 %v7416_v60, %v7177_v2 }
 0x270   : > { %v2718_v48 = vadd.f32 %v2686_v58, %v2618_v56  ;;  %v2719_v32 = vadd.f32 %v2687_v33, %v2619_v26  ;;  %v2320_v17 = vadd.f32 %v2288_v4, %v2188_v41  ;;  %v2389_v56 = vmul.f32 %v7422_v1, %v7177_v2 }
 0x271   : > { %v3056_v45 = vadd.f32 %v7235_v14, %v3017_v57  ;;  %v3057_v59 = vadd.f32 %v7235_v14, %v3018_v50 }
 0x273   : > { %5622 = vmatprep.mubr.msk.f32.mxu0 %vm535_vm0, %v3056_v45 }
 0x274   : > { %5623 = vmatmul.mubr.msk.f32.gmra.mrb[24].mxu0 %vm535_vm0, %v3057_v59 }
 0x278   : > { %v5580_v29 = vpop.f32.mrb[28].mxu1 }
 0x279   : > { %v7451_v3 = vadd.f32 %v5580_v29, %v7142_v8  ;;  %v1951_v27 = vpop.f32.mrb[29].mxu1 }
 0x27a   : > { %v7454_v28 = vadd.f32 %v7142_v8, %v1951_v27  ;;  %v2189_v27 = vmul.f32 %v7412_v47, %v7171_v18  ;;  %v2420_v47 = vadd.f32 %v2388_v31, %v2320_v17 }
 0x27b   : > { %2119 = vst.msk [vmem:[#allocation2 + $0xb1] sm:$0xff] %vm535_vm0, %v7451_v3 }
 0x27c   : > { %2118 = vst.msk [vmem:[#allocation2 + $0xa9] sm:$0xff] %vm535_vm0, %v7454_v28  ;;  %v2321_v13 = vadd.f32 %v2289_v19, %v2189_v27 }
 0x27e   : > { %v2421_v16 = vadd.f32 %v2389_v56, %v2321_v13 }
 0x282   : > { %v2852_v44 = vld [vmem:[#allocation2 + $0xb1] sm:$0xff] }
 0x283   : > { %v2751_v55 = vld [vmem:[#allocation2 + $0xa8] sm:$0xff]  ;;  %v2752_v34 = vld [vmem:[#allocation2 + $0xb0] sm:$0xff]  ;;  %v2888_v35 = vmul.f32 %v7198_v51, %v2852_v44 }
 0x284   : > { %v2851_v63 = vld [vmem:[#allocation2 + $0xa9] sm:$0xff]  ;;  %v2787_v38 = vmul.f32 %v7195_v53, %v2751_v55  ;;  %v2788_v24 = vmul.f32 %v7195_v53, %v2752_v34  ;;  %v2952_v45 = vld [vmem:[#allocation2 + $0xb2] sm:$0xff]  ;;  %v2488_v11 = vmul.f32 %v2751_v55, %v7184_v52  ;;  %v2489_v26 = vmul.f32 %v2752_v34, %v7184_v52 }
 0x285   : > { %v2951_v57 = vld [vmem:[#allocation2 + $0xaa] sm:$0xff]  ;;  %v2887_v50 = vmul.f32 %v7198_v51, %v2851_v63  ;;  %v2988_v54 = vmul.f32 %v7207_v7, %v2952_v45  ;;  %v2190_v60 = vmul.f32 %v2751_v55, %v7171_v18  ;;  %v2689_v19 = vmul.f32 %v2952_v45, %v7187_v9 }
 0x286   : > { %v2819_v21 = vadd.f32 %v2787_v38, %v2718_v48  ;;  %v2820_v59 = vadd.f32 %v2788_v24, %v2719_v32  ;;  %v2987_v22 = vmul.f32 %v7207_v7, %v2951_v57  ;;  %v2520_v38 = vadd.f32 %v2488_v11, %v2420_v47 }
 0x287   : > { %v2290_v24 = vmul.f32 %v2851_v63, %v7173_v30  ;;  %v2521_v1 = vadd.f32 %v2489_v26, %v2421_v16  ;;  %v2688_v4 = vmul.f32 %v2951_v57, %v7187_v9 }
 0x288   : > { %v2919_v42 = vadd.f32 %v2887_v50, %v2819_v21  ;;  %v2920_v10 = vadd.f32 %v2888_v35, %v2820_v59  ;;  %v2191_v21 = vmul.f32 %v2752_v34, %v7171_v18  ;;  %v2291_v50 = vmul.f32 %v2852_v44, %v7173_v30 }
 0x289   : > { %v2588_v35 = vmul.f32 %v2851_v63, %v7179_v0 }
 0x28a   : > { %v3019_v12 = vadd.f32 %v2987_v22, %v2919_v42  ;;  %v3020_v29 = vadd.f32 %v2988_v54, %v2920_v10  ;;  %v2589_v22 = vmul.f32 %v2852_v44, %v7179_v0  ;;  %v2323_v41 = vadd.f32 %v2291_v50, %v2191_v21 }
 0x28b   : > { %v2620_v54 = vadd.f32 %v2588_v35, %v2520_v38 }
 0x28c   : > { %v3058_v20 = vadd.f32 %v7235_v14, %v3019_v12  ;;  %v3059_v40 = vadd.f32 %v7235_v14, %v3020_v29  ;;  %v2322_v12 = vadd.f32 %v2290_v24, %v2190_v60  ;;  %v2621_v34 = vadd.f32 %v2589_v22, %v2521_v1 }
 0x28d   : > { %v2390_v29 = vmul.f32 %v2951_v57, %v7177_v2  ;;  %v2720_v17 = vadd.f32 %v2688_v4, %v2620_v54 }
 0x28e   : > { %5625 = vmatprep.mubr.msk.f32.mxu0 %vm535_vm0, %v3058_v20  ;;  %v2391_v20 = vmul.f32 %v2952_v45, %v7177_v2  ;;  %v2721_v11 = vadd.f32 %v2689_v19, %v2621_v34 }
 0x28f   : > { %5626 = vmatmul.mubr.msk.f32.gmra.mrb[26].mxu0 %vm535_vm0, %v3059_v40  ;;  %v2422_v56 = vadd.f32 %v2390_v29, %v2322_v12 }
 0x290   : > { %v2423_v16 = vadd.f32 %v2391_v20, %v2323_v41 }
 0x2a4   : > { %v5583_v58 = vpop.f32.mrb[30].mxu1 }
 0x2a5   : > { %v7496_v33 = vadd.f32 %v5583_v58, %v7142_v8  ;;  %v1961_v48 = vpop.f32.mrb[31].mxu1 }
 0x2a6   : > { %v7499_v32 = vadd.f32 %v7142_v8, %v1961_v48 }
 0x2a7   : > { %2121 = vst.msk [vmem:[#allocation2 + $0xc9] sm:$0xff] %vm535_vm0, %v7496_v33 }
 0x2a8   : > { %2120 = vst.msk [vmem:[#allocation2 + $0xc1] sm:$0xff] %vm535_vm0, %v7499_v32  ;;  %v5586_v59 = vpop.f32.mrb[32].mxu1 }
 0x2a9   : > { %v7511_v42 = vadd.f32 %v5586_v59, %v7142_v8  ;;  %v1971_v55 = vpop.f32.mrb[33].mxu1 }
 0x2aa   : > { %v7515_v10 = vadd.f32 %v7142_v8, %v1971_v55 }
 0x2ab   : > { %2123 = vst.msk [vmem:[#allocation2 + $0xe1] sm:$0xff] %vm535_vm0, %v7511_v42 }
 0x2ac   : > { %2122 = vst.msk [vmem:[#allocation2 + $0xd9] sm:$0xff] %vm535_vm0, %v7515_v10  ;;  %v5589_v63 = vpop.f32.mrb[34].mxu1 }
 0x2ad   : > { %v7524_v44 = vadd.f32 %v5589_v63, %v7142_v8  ;;  %v1981_v27 = vpop.f32.mrb[35].mxu1 }
 0x2ae   : > { %v7529_v40 = vadd.f32 %v7142_v8, %v1981_v27  ;;  %v7531_v13 = vld [vmem:[#allocation2 + $0xc9] sm:$0xff] }
 0x2af   : > { %8982 = vst [vmem:[#allocation11_spill] sm:$0xff] %v7524_v44  ;;  %v7533_v31 = vld [vmem:[#allocation2 + $0xca] sm:$0xff]  ;;  %2125 = vst.msk [vmem:[#allocation2 + $0xf9] sm:$0xff] %vm535_vm0, %v7524_v44  ;;  %v2753_v57 = vld [vmem:[#allocation2 + $0xc0] sm:$0xff]  ;;  %v2890_v38 = vmul.f32 %v7198_v51, %v7531_v13  ;;  %v2591_v29 = vmul.f32 %v7531_v13, %v7179_v0 }
 0x2b0   : > { %8983 = vst [vmem:[#allocation7_spill] sm:$0xff] %v7529_v40  ;;  %v2853_v47 = vld [vmem:[#allocation2 + $0xc1] sm:$0xff]  ;;  %2124 = vst.msk [vmem:[#allocation2 + $0xf1] sm:$0xff] %vm535_vm0, %v7529_v40  ;;  %v5592_v45 = vpop.f32.mrb[36].mxu1  ;;  %v2789_v26 = vmul.f32 %v7195_v53, %v2753_v57  ;;  %v2990_v60 = vmul.f32 %v7207_v7, %v7533_v31  ;;  %v2490_v24 = vmul.f32 %v2753_v57, %v7184_v52 }
 0x2b1   : > { %v2953_v58 = vld [vmem:[#allocation2 + $0xc2] sm:$0xff]  ;;  %v7548_v1 = vadd.f32 %v5592_v45, %v7142_v8  ;;  %v1991_v21 = vpop.f32.mrb[37].mxu1  ;;  %v2889_v50 = vmul.f32 %v7198_v51, %v2853_v47  ;;  %v2590_v35 = vmul.f32 %v2853_v47, %v7179_v0  ;;  %v2691_v27 = vmul.f32 %v7533_v31, %v7187_v9 }
 0x2b2   : > { %v7540_v48 = vld [vmem:[#allocation2 + $0xc8] sm:$0xff]  ;;  %v7555_v55 = vadd.f32 %v7142_v8, %v1991_v21  ;;  %v2821_v22 = vadd.f32 %v2789_v26, %v2720_v17  ;;  %v2522_v54 = vadd.f32 %v2490_v24, %v2422_v56  ;;  %v2989_v34 = vmul.f32 %v7207_v7, %v2953_v58 }
 0x2b3   : > { %8984 = vst [vmem:[#allocation14_spill] sm:$0xff] %v7548_v1  ;;  %v2790_v59 = vmul.f32 %v7195_v53, %v7540_v48  ;;  %v2491_v12 = vmul.f32 %v7540_v48, %v7184_v52  ;;  %2127 = vst.msk [vmem:[#allocation2 + $0x111] sm:$0xff] %vm535_vm0, %v7548_v1  ;;  %v7562_v63 = vld [vmem:[#allocation2 + $0xd8] sm:$0xff]  ;;  %v2690_v56 = vmul.f32 %v2953_v58, %v7187_v9  ;;  %v7573_v45 = vld [vmem:[#allocation2 + $0xe0] sm:$0xff] }
 0x2b4   : > { %8985 = vst [vmem:[#allocation12_spill] sm:$0xff] %v7555_v55  ;;  %v7564_v4 = vld [vmem:[#allocation2 + $0xd9] sm:$0xff]  ;;  %2126 = vst.msk [vmem:[#allocation2 + $0x109] sm:$0xff] %vm535_vm0, %v7555_v55  ;;  %v5595_v19 = vpop.f32.mrb[38].mxu1  ;;  %v2921_v20 = vadd.f32 %v2889_v50, %v2821_v22  ;;  %v2622_v17 = vadd.f32 %v2590_v35, %v2522_v54 }
 0x2b5   : > { %v2822_v41 = vadd.f32 %v2790_v59, %v2721_v11  ;;  %v2192_v11 = vmul.f32 %v2753_v57, %v7171_v18  ;;  %v7577_v26 = vadd.f32 %v5595_v19, %v7142_v8  ;;  %v2001_v24 = vpop.f32.mrb[39].mxu1  ;;  %v2791_v59 = vmul.f32 %v7195_v53, %v7562_v63  ;;  %v7588_v54 = vld [vmem:[#allocation2 + $0xda] sm:$0xff] }
 0x2b6   : > { %v2523_v43 = vadd.f32 %v2491_v12, %v2423_v16  ;;  %v7582_v1 = vadd.f32 %v7142_v8, %v2001_v24  ;;  %v3021_v50 = vadd.f32 %v2989_v34, %v2921_v20  ;;  %v2722_v35 = vadd.f32 %v2690_v56, %v2622_v17  ;;  %v2771_v12 = vld [vmem:[#allocation2 + $0x198] sm:$0xff]  ;;  %v7596_v17 = vld [vmem:[#allocation2 + $0xe1] sm:$0xff] }
 0x2b7   : > { %8986 = vst [vmem:[#allocation13_spill] sm:$0xff] %v7577_v26  ;;  %v2922_v21 = vadd.f32 %v2890_v38, %v2822_v41  ;;  %v2891_v22 = vmul.f32 %v7198_v51, %v7564_v4  ;;  %2129 = vst.msk [vmem:[#allocation2 + $0x129] sm:$0xff] %vm535_vm0, %v7577_v26  ;;  %v2792_v38 = vmul.f32 %v7195_v53, %v7573_v45  ;;  %v7598_v56 = vld [vmem:[#allocation2 + $0xe2] sm:$0xff] }
 0x2b8   : > { %8987 = vst [vmem:[#allocation15_spill] sm:$0xff] %v7582_v1  ;;  %v2623_v19 = vadd.f32 %v2591_v29, %v2523_v43  ;;  %v2292_v16 = vmul.f32 %v2853_v47, %v7173_v30  ;;  %2128 = vst.msk [vmem:[#allocation2 + $0x121] sm:$0xff] %vm535_vm0, %v7582_v1  ;;  %v5598_v34 = vpop.f32.mrb[40].mxu1  ;;  %v3060_v41 = vadd.f32 %v7235_v14, %v3021_v50 }
 0x2b9   : > { %v3022_v57 = vadd.f32 %v2990_v60, %v2922_v21  ;;  %v2823_v20 = vadd.f32 %v2791_v59, %v2722_v35  ;;  %v2392_v60 = vmul.f32 %v2953_v58, %v7177_v2  ;;  %v2492_v43 = vmul.f32 %v7562_v63, %v7184_v52  ;;  %v2011_v47 = vpop.f32.mrb[41].mxu1 }
 0x2ba   : > { %v7604_v29 = vadd.f32 %v5598_v34, %v7142_v8  ;;  %v2723_v21 = vadd.f32 %v2691_v27, %v2623_v19  ;;  %v2324_v26 = vadd.f32 %v2292_v16, %v2192_v11  ;;  %v7608_v50 = vadd.f32 %v7142_v8, %v2011_v47  ;;  %5628 = vmatprep.mubr.msk.f32.mxu0 %vm535_vm0, %v3060_v41  ;;  %v2871_v41 = vld [vmem:[#allocation2 + $0x199] sm:$0xff] }
 0x2bb   : > { %v3061_v24 = vadd.f32 %v7235_v14, %v3022_v57  ;;  %v2923_v59 = vadd.f32 %v2891_v22, %v2823_v20  ;;  %v2991_v58 = vmul.f32 %v7207_v7, %v7588_v54  ;;  %v7614_v35 = vmul.f32 %v7195_v53, %v2771_v12  ;;  %v7709_v1 = vld [vmem:[#allocation2 + $0x109] sm:$0xff] }
 0x2bc   : > { %8988 = vst [vmem:[#allocation10_spill] sm:$0xff] %v7604_v29  ;;  %8989 = vst [vmem:[#allocation4_spill] sm:$0xff] %v7608_v50  ;;  %v2824_v57 = vadd.f32 %v2792_v38, %v2723_v21  ;;  %v2892_v27 = vmul.f32 %v7198_v51, %v7596_v17  ;;  %v2992_v11 = vmul.f32 %v7207_v7, %v7598_v56  ;;  %v5601_v22 = vpop.f32.mrb[42].mxu1  ;;  %v7636_v21 = vld [vmem:[#allocation2 + $0xf1] sm:$0xff] }
 0x2bd   : > { %2131 = vst.msk [vmem:[#allocation2 + $0x141] sm:$0xff] %vm535_vm0, %v7604_v29  ;;  %5629 = vmatmul.mubr.msk.f32.gmra.mrb[28].mxu0 %vm535_vm0, %v3061_v24  ;;  %v2424_v19 = vadd.f32 %v2392_v60, %v2324_v26  ;;  %2130 = vst.msk [vmem:[#allocation2 + $0x139] sm:$0xff] %vm535_vm0, %v7608_v50  ;;  %v3023_v16 = vadd.f32 %v2991_v58, %v2923_v59  ;;  %v2592_v12 = vmul.f32 %v7564_v4, %v7179_v0  ;;  %v2021_v47 = vpop.f32.mrb[43].mxu1  ;;  %v7634_v24 = vld [vmem:[#allocation2 + $0xf0] sm:$0xff]  ;;  %v2759_v50 = vld [vmem:[#allocation2 + $0x108] sm:$0xff] }
 0x2be   : > { %v2193_v34 = vmul.f32 %v7540_v48, %v7171_v18  ;;  %v2293_v38 = vmul.f32 %v7531_v13, %v7173_v30  ;;  %v7632_v20 = vadd.f32 %v5601_v22, %v7142_v8  ;;  %v2924_v26 = vadd.f32 %v2892_v27, %v2824_v57 }
 0x2bf   : > { %v2524_v60 = vadd.f32 %v2492_v43, %v2424_v19  ;;  %v2393_v59 = vmul.f32 %v7533_v31, %v7177_v2  ;;  %v7641_v58 = vadd.f32 %v7142_v8, %v2021_v47  ;;  %v3062_v48 = vadd.f32 %v7235_v14, %v3023_v16  ;;  %v7650_v19 = vld [vmem:[#allocation2 + $0xf2] sm:$0xff] }
 0x2c0   : > { %8990 = vst [vmem:[#allocation16_spill] sm:$0xff] %v7632_v20  ;;  %v2325_v13 = vadd.f32 %v2293_v38, %v2193_v34  ;;  %v2493_v22 = vmul.f32 %v7573_v45, %v7184_v52  ;;  %2133 = vst.msk [vmem:[#allocation2 + $0x159] sm:$0xff] %vm535_vm0, %v7632_v20  ;;  %v3024_v43 = vadd.f32 %v2992_v11, %v2924_v26  ;;  %v5604_v16 = vpop.f32.mrb[44].mxu1  ;;  %v7668_v20 = vld [vmem:[#allocation2 + $0xf8] sm:$0xff] }
 0x2c1   : > { %8991 = vst [vmem:[#allocation3_spill] sm:$0xff] %v7641_v58  ;;  %v2624_v57 = vadd.f32 %v2592_v12, %v2524_v60  ;;  %v2692_v27 = vmul.f32 %v7588_v54, %v7187_v9  ;;  %v7653_v31 = vmul.f32 %v7198_v51, %v2871_v41  ;;  %2132 = vst.msk [vmem:[#allocation2 + $0x151] sm:$0xff] %vm535_vm0, %v7641_v58  ;;  %5631 = vmatprep.mubr.msk.f32.mxu0 %vm535_vm0, %v3062_v48  ;;  %v2031_v41 = vpop.f32.mrb[45].mxu1  ;;  %v7670_v48 = vld [vmem:[#allocation2 + $0xf9] sm:$0xff] }
 0x2c2   : > { %v2793_v34 = vmul.f32 %v7195_v53, %v7634_v24  ;;  %v2893_v11 = vmul.f32 %v7198_v51, %v7636_v21  ;;  %v2425_v12 = vadd.f32 %v2393_v59, %v2325_v13  ;;  %v2194_v38 = vmul.f32 %v7562_v63, %v7171_v18 }
 0x2c3   : > { %v7665_v47 = vadd.f32 %v5604_v16, %v7142_v8  ;;  %v3063_v26 = vadd.f32 %v7235_v14, %v3024_v43  ;;  %v2724_v60 = vadd.f32 %v2692_v27, %v2624_v57  ;;  %v2294_v58 = vmul.f32 %v7564_v4, %v7173_v30  ;;  %v7684_v57 = vld [vmem:[#allocation2 + $0xfa] sm:$0xff] }
 0x2c4   : > { %v7675_v29 = vadd.f32 %v7142_v8, %v2031_v41  ;;  %v2993_v63 = vmul.f32 %v7207_v7, %v7650_v19  ;;  %v2525_v59 = vadd.f32 %v2493_v22, %v2425_v12  ;;  %v2593_v13 = vmul.f32 %v7596_v17, %v7179_v0  ;;  %v5607_v22 = vpop.f32.mrb[46].mxu1 }
 0x2c5   : > { %8992 = vst [vmem:[#allocation6_spill] sm:$0xff] %v7665_v47  ;;  %2135 = vst.msk [vmem:[#allocation2 + $0x171] sm:$0xff] %vm535_vm0, %v7665_v47  ;;  %5632 = vmatmul.mubr.msk.f32.gmra.mrb[30].mxu0 %vm535_vm0, %v3063_v26  ;;  %v2825_v43 = vadd.f32 %v2793_v34, %v2724_v60  ;;  %v2326_v27 = vadd.f32 %v2294_v58, %v2194_v38  ;;  %v2394_v8 = vmul.f32 %v7588_v54, %v7177_v2  ;;  %v6027_v54 = vld [vmem:[%s8893_s4] ss:$0 sm:$0xff]  ;;  %v2041_v26 = vpop.f32.mrb[47].mxu1 }
 0x2c6   : > { %8993 = vst [vmem:[#allocation5_spill] sm:$0xff] %v7675_v29  ;;  %v2494_v4 = vmul.f32 %v7634_v24, %v7184_v52  ;;  %2134 = vst.msk [vmem:[#allocation2 + $0x169] sm:$0xff] %vm535_vm0, %v7675_v29  ;;  %v2625_v16 = vadd.f32 %v2593_v13, %v2525_v59  ;;  %v2693_v12 = vmul.f32 %v7598_v56, %v7187_v9 }
 0x2c7   : > { %v2794_v34 = vmul.f32 %v7195_v53, %v7668_v20  ;;  %v2894_v58 = vmul.f32 %v7198_v51, %v7670_v48  ;;  %v7701_v38 = vadd.f32 %v6027_v54, %v5607_v22  ;;  %v2925_v41 = vadd.f32 %v2893_v11, %v2825_v43  ;;  %v7721_v22 = vld [vmem:[#allocation2 + $0x10a] sm:$0xff] }
 0x2c8   : > { %v2426_v60 = vadd.f32 %v2394_v8, %v2326_v27  ;;  %v2195_v59 = vmul.f32 %v7573_v45, %v7171_v18  ;;  %v7705_v13 = vadd.f32 %v6027_v54, %v2041_v26  ;;  %v2725_v47 = vadd.f32 %v2693_v12, %v2625_v16 }
 0x2c9   : > { %8994 = vst [vmem:[#allocation9_spill] sm:$0xff] %v7701_v38  ;;  %v2994_v29 = vmul.f32 %v7207_v7, %v7684_v57  ;;  %v2295_v55 = vmul.f32 %v7596_v17, %v7173_v30  ;;  %2137 = vst.msk [vmem:[#allocation2 + $0x189] sm:$0xff] %vm535_vm0, %v7701_v38  ;;  %v3025_v11 = vadd.f32 %v2993_v63, %v2925_v41 }
 0x2ca   : > { %8995 = vst [vmem:[#allocation8_spill] sm:$0xff] %v7705_v13  ;;  %v2526_v43 = vadd.f32 %v2494_v4, %v2426_v60  ;;  %v2594_v45 = vmul.f32 %v7636_v21, %v7179_v0  ;;  %v2694_v27 = vmul.f32 %v7650_v19, %v7187_v9  ;;  %2136 = vst.msk [vmem:[#allocation2 + $0x181] sm:$0xff] %vm535_vm0, %v7705_v13 }
 0x2cb   : > { %v2826_v8 = vadd.f32 %v2794_v34, %v2725_v47  ;;  %v2327_v16 = vadd.f32 %v2295_v55, %v2195_v59  ;;  %v2395_v17 = vmul.f32 %v7598_v56, %v7177_v2  ;;  %v2495_v63 = vmul.f32 %v7668_v20, %v7184_v52  ;;  %v7731_v47 = vld [vmem:[#allocation2 + $0x110] sm:$0xff] }
 0x2cc   : > { %v3064_v4 = vadd.f32 %v7235_v14, %v3025_v11  ;;  %v2626_v12 = vadd.f32 %v2594_v45, %v2526_v43  ;;  %v2795_v54 = vmul.f32 %v7195_v53, %v2759_v50  ;;  %v2895_v41 = vmul.f32 %v7198_v51, %v7709_v1  ;;  %v7733_v34 = vld [vmem:[#allocation2 + $0x111] sm:$0xff] }
 0x2cd   : > { %v2926_v26 = vadd.f32 %v2894_v58, %v2826_v8  ;;  %v2427_v60 = vadd.f32 %v2395_v17, %v2327_v16  ;;  %v2196_v55 = vmul.f32 %v7634_v24, %v7171_v18  ;;  %v2296_v56 = vmul.f32 %v7636_v21, %v7173_v30  ;;  %v2960_v16 = vld [vmem:[#allocation2 + $0x112] sm:$0xff] }
 0x2ce   : > { %5634 = vmatprep.mubr.msk.f32.mxu0 %vm535_vm0, %v3064_v4  ;;  %v2726_v59 = vadd.f32 %v2694_v27, %v2626_v12  ;;  %v2995_v11 = vmul.f32 %v7207_v7, %v7721_v22  ;;  %v2595_v58 = vmul.f32 %v7670_v48, %v7179_v0  ;;  %v2396_v43 = vmul.f32 %v7650_v19, %v7177_v2  ;;  %v7753_v12 = vld [vmem:[#allocation2 + $0x120] sm:$0xff] }
 0x2cf   : > { %v3026_v45 = vadd.f32 %v2994_v29, %v2926_v26  ;;  %v2527_v8 = vadd.f32 %v2495_v63, %v2427_v60  ;;  %v2328_v17 = vadd.f32 %v2296_v56, %v2196_v55  ;;  %v2496_v24 = vmul.f32 %v2759_v50, %v7184_v52  ;;  %v7761_v56 = vld [vmem:[#allocation2 + $0x121] sm:$0xff] }
 0x2d0   : > { %v2827_v38 = vadd.f32 %v2795_v54, %v2726_v59  ;;  %v2695_v21 = vmul.f32 %v7684_v57, %v7187_v9  ;;  %v2796_v27 = vmul.f32 %v7195_v53, %v7731_v47  ;;  %v2896_v4 = vmul.f32 %v7198_v51, %v7733_v34 }
 0x2d1   : > { %v3065_v19 = vadd.f32 %v7235_v14, %v3026_v45  ;;  %v2627_v29 = vadd.f32 %v2595_v58, %v2527_v8  ;;  %v2428_v63 = vadd.f32 %v2396_v43, %v2328_v17  ;;  %v2197_v26 = vmul.f32 %v7668_v20, %v7171_v18 }
 0x2d2   : > { %v2927_v60 = vadd.f32 %v2895_v41, %v2827_v38  ;;  %v2996_v54 = vmul.f32 %v7207_v7, %v2960_v16  ;;  %v2596_v55 = vmul.f32 %v7709_v1, %v7179_v0  ;;  %v2297_v59 = vmul.f32 %v7670_v48, %v7173_v30  ;;  %v7770_v38 = vld [vmem:[#allocation2 + $0x122] sm:$0xff] }
 0x2d3   : > { %5635 = vmatmul.mubr.msk.f32.gmra.mrb[32].mxu0 %vm535_vm0, %v3065_v19  ;;  %v2727_v13 = vadd.f32 %v2695_v21, %v2627_v29  ;;  %v2528_v45 = vadd.f32 %v2496_v24, %v2428_v63  ;;  %v2696_v58 = vmul.f32 %v7721_v22, %v7187_v9  ;;  %v2797_v20 = vmul.f32 %v7195_v53, %v7753_v12  ;;  %v7787_v63 = vld [vmem:[#allocation2 + $0x128] sm:$0xff] }
 0x2d4   : > { %v3027_v7 = vadd.f32 %v2995_v11, %v2927_v60  ;;  %v2329_v41 = vadd.f32 %v2297_v59, %v2197_v26  ;;  %v2397_v43 = vmul.f32 %v7684_v57, %v7177_v2  ;;  %v2497_v48 = vmul.f32 %v7731_v47, %v7184_v52  ;;  %v7783_v11 = vld [vmem:[%s8894_s5 + $0x8] ss:$0 sm:$0xff] }
 0x2d5   : > { %v2828_v8 = vadd.f32 %v2796_v27, %v2727_v13  ;;  %v2628_v17 = vadd.f32 %v2596_v55, %v2528_v45  ;;  %v2897_v24 = vmul.f32 %v7198_v51, %v7761_v56  ;;  %v2198_v21 = vmul.f32 %v2759_v50, %v7171_v18  ;;  %v7789_v13 = vld [vmem:[#allocation2 + $0x129] sm:$0xff] }
 0x2d6   : > { %v3066_v19 = vadd.f32 %v7235_v14, %v3027_v7  ;;  %v2997_v57 = vmul.f32 %v7783_v11, %v7770_v38  ;;  %v2429_v29 = vadd.f32 %v2397_v43, %v2329_v41  ;;  %v2298_v27 = vmul.f32 %v7709_v1, %v7173_v30 }
 0x2d7   : > { %v2928_v26 = vadd.f32 %v2896_v4, %v2828_v8  ;;  %v2728_v50 = vadd.f32 %v2696_v58, %v2628_v17  ;;  %v2597_v14 = vmul.f32 %v7733_v34, %v7179_v0  ;;  %v2697_v60 = vmul.f32 %v2960_v16, %v7187_v9  ;;  %v2962_v8 = vld [vmem:[#allocation2 + $0x12a] sm:$0xff] }
 0x2d8   : > { %5637 = vmatprep.mubr.msk.f32.mxu0 %vm535_vm0, %v3066_v19  ;;  %v2529_v55 = vadd.f32 %v2497_v48, %v2429_v29  ;;  %v2330_v59 = vadd.f32 %v2298_v27, %v2198_v21  ;;  %v2398_v45 = vmul.f32 %v7721_v22, %v7177_v2  ;;  %v2498_v7 = vmul.f32 %v7753_v12, %v7184_v52  ;;  %v7805_v19 = vld [vmem:[#allocation2 + $0x138] sm:$0xff] }
 0x2d9   : > { %v3028_v41 = vadd.f32 %v2996_v54, %v2928_v26  ;;  %v2829_v43 = vadd.f32 %v2797_v20, %v2728_v50  ;;  %v2798_v1 = vmul.f32 %v7195_v53, %v7787_v63  ;;  %v2898_v4 = vmul.f32 %v7198_v51, %v7789_v13  ;;  %v7814_v54 = vld [vmem:[%s8895_s6] ss:$0 sm:$0xff] }
 0x2da   : > { %v2629_v58 = vadd.f32 %v2597_v14, %v2529_v55  ;;  %v2430_v17 = vadd.f32 %v2398_v45, %v2330_v59  ;;  %v2199_v48 = vmul.f32 %v7731_v47, %v7171_v18  ;;  %v2299_v22 = vmul.f32 %v7733_v34, %v7173_v30  ;;  %v7819_v27 = vld [vmem:[#allocation2 + $0x139] sm:$0xff] }
 0x2db   : > { %v3067_v20 = vadd.f32 %v7814_v54, %v3028_v41  ;;  %v2929_v21 = vadd.f32 %v2897_v24, %v2829_v43  ;;  %v2598_v29 = vmul.f32 %v7761_v56, %v7179_v0  ;;  %v2399_v26 = vmul.f32 %v2960_v16, %v7177_v2  ;;  %v7822_v14 = vld [vmem:[#allocation2 + $0x13a] sm:$0xff] }
 0x2dc   : > { %v2729_v50 = vadd.f32 %v2697_v60, %v2629_v58  ;;  %v2530_v47 = vadd.f32 %v2498_v7, %v2430_v17  ;;  %v2331_v34 = vadd.f32 %v2299_v22, %v2199_v48  ;;  %v2499_v55 = vmul.f32 %v7787_v63, %v7184_v52 }
 0x2dd   : > { %5638 = vmatmul.mubr.msk.f32.gmra.mrb[34].mxu0 %vm535_vm0, %v3067_v20  ;;  %v3029_v59 = vadd.f32 %v2997_v57, %v2929_v21  ;;  %v2998_v24 = vmul.f32 %v7783_v11, %v2962_v8  ;;  %v2698_v45 = vmul.f32 %v7770_v38, %v7187_v9  ;;  %v2799_v41 = vmul.f32 %v7195_v53, %v7805_v19  ;;  %v7837_v57 = vld [vmem:[#allocation2 + $0x140] sm:$0xff] }
 0x2de   : > { %v2830_v16 = vadd.f32 %v2798_v1, %v2729_v50  ;;  %v2630_v60 = vadd.f32 %v2598_v29, %v2530_v47  ;;  %v2899_v7 = vmul.f32 %v7198_v51, %v7819_v27  ;;  %v2431_v43 = vadd.f32 %v2399_v26, %v2331_v34  ;;  %v7845_v26 = vld [vmem:[#allocation2 + $0x141] sm:$0xff] }
 0x2df   : > { %v3068_v58 = vadd.f32 %v7814_v54, %v3029_v59  ;;  %v2999_v17 = vmul.f32 %v7783_v11, %v7822_v14  ;;  %v2200_v48 = vmul.f32 %v7753_v12, %v7171_v18  ;;  %v2300_v22 = vmul.f32 %v7761_v56, %v7173_v30 }
 0x2e0   : > { %v2930_v20 = vadd.f32 %v2898_v4, %v2830_v16  ;;  %v2730_v1 = vadd.f32 %v2698_v45, %v2630_v60  ;;  %v2531_v21 = vadd.f32 %v2499_v55, %v2431_v43  ;;  %v2599_v29 = vmul.f32 %v7789_v13, %v7179_v0  ;;  %v2964_v16 = vld [vmem:[#allocation2 + $0x142] sm:$0xff] }
 0x2e1   : > { %5640 = vmatprep.mubr.msk.f32.mxu0 %vm535_vm0, %v3068_v58  ;;  %v2699_v50 = vmul.f32 %v2962_v8, %v7187_v9  ;;  %v2332_v47 = vadd.f32 %v2300_v22, %v2200_v48  ;;  %v2400_v34 = vmul.f32 %v7770_v38, %v7177_v2  ;;  %v2500_v12 = vmul.f32 %v7805_v19, %v7184_v52  ;;  %v2765_v22 = vld [vmem:[#allocation2 + $0x150] sm:$0xff] }
 0x2e2   : > { %v3030_v56 = vadd.f32 %v2998_v24, %v2930_v20  ;;  %v2831_v4 = vadd.f32 %v2799_v41, %v2730_v1  ;;  %v2631_v59 = vadd.f32 %v2599_v29, %v2531_v21  ;;  %v2800_v55 = vmul.f32 %v7195_v53, %v7837_v57  ;;  %v7864_v20 = vld [vmem:[#allocation2 + $0x151] sm:$0xff] }
 0x2e3   : > { %v2900_v45 = vmul.f32 %v7198_v51, %v7845_v26  ;;  %v2432_v60 = vadd.f32 %v2400_v34, %v2332_v47  ;;  %v2201_v43 = vmul.f32 %v7787_v63, %v7171_v18  ;;  %v2301_v38 = vmul.f32 %v7789_v13, %v7173_v30  ;;  %v2965_v34 = vld [vmem:[#allocation2 + $0x152] sm:$0xff] }
 0x2e4   : > { %v3069_v58 = vadd.f32 %v7814_v54, %v3030_v56  ;;  %v2931_v48 = vadd.f32 %v2899_v7, %v2831_v4  ;;  %v2731_v24 = vadd.f32 %v2699_v50, %v2631_v59  ;;  %v2600_v41 = vmul.f32 %v7819_v27, %v7179_v0 }
 0x2e5   : > { %v2532_v1 = vadd.f32 %v2500_v12, %v2432_v60  ;;  %v2333_v21 = vadd.f32 %v2301_v38, %v2201_v43  ;;  %v2401_v29 = vmul.f32 %v2962_v8, %v7177_v2  ;;  %v2501_v63 = vmul.f32 %v7837_v57, %v7184_v52  ;;  %v7877_v43 = vld [vmem:[#allocation2 + $0x158] sm:$0xff] }
 0x2e6   : > { %5641 = vmatmul.mubr.msk.f32.gmra.mrb[36].mxu0 %vm535_vm0, %v3069_v58  ;;  %v3031_v13 = vadd.f32 %v2999_v17, %v2931_v48  ;;  %v2832_v47 = vadd.f32 %v2800_v55, %v2731_v24  ;;  %v3000_v7 = vmul.f32 %v7783_v11, %v2964_v16  ;;  %v2700_v50 = vmul.f32 %v7822_v14, %v7187_v9 }
 0x2e7   : > { %v2632_v56 = vadd.f32 %v2600_v41, %v2532_v1  ;;  %v2801_v4 = vmul.f32 %v7195_v53, %v2765_v22  ;;  %v2901_v12 = vmul.f32 %v7198_v51, %v7864_v20  ;;  %v2433_v8 = vadd.f32 %v2401_v29, %v2333_v21  ;;  %v7886_v41 = vld [vmem:[#allocation2 + $0x159] sm:$0xff] }
 0x2e8   : > { %v3070_v59 = vadd.f32 %v7814_v54, %v3031_v13  ;;  %v2932_v60 = vadd.f32 %v2900_v45, %v2832_v47  ;;  %v2202_v17 = vmul.f32 %v7805_v19, %v7171_v18  ;;  %v2302_v55 = vmul.f32 %v7819_v27, %v7173_v30  ;;  %v7889_v1 = vld [vmem:[#allocation2 + $0x15a] sm:$0xff] }
 0x2e9   : > { %v2732_v38 = vadd.f32 %v2700_v50, %v2632_v56  ;;  %v3001_v58 = vmul.f32 %v7783_v11, %v2965_v34  ;;  %v2533_v48 = vadd.f32 %v2501_v63, %v2433_v8  ;;  %v2601_v24 = vmul.f32 %v7845_v26, %v7179_v0 }
 0x2ea   : > { %5643 = vmatprep.mubr.msk.f32.mxu0 %vm535_vm0, %v3070_v59  ;;  %v3032_v45 = vadd.f32 %v3000_v7, %v2932_v60  ;;  %v2334_v21 = vadd.f32 %v2302_v55, %v2202_v17  ;;  %v2402_v19 = vmul.f32 %v7822_v14, %v7177_v2  ;;  %v2502_v27 = vmul.f32 %v2765_v22, %v7184_v52  ;;  %v2767_v60 = vld [vmem:[#allocation2 + $0x168] sm:$0xff] }
 0x2eb   : > { %v2833_v29 = vadd.f32 %v2801_v4, %v2732_v38  ;;  %v2633_v13 = vadd.f32 %v2601_v24, %v2533_v48  ;;  %v2701_v63 = vmul.f32 %v2964_v16, %v7187_v9  ;;  %v2802_v47 = vmul.f32 %v7195_v53, %v7877_v43  ;;  %v7904_v17 = vld [vmem:[#allocation2 + $0x169] sm:$0xff] }
 0x2ec   : > { %v3071_v50 = vadd.f32 %v7814_v54, %v3032_v45  ;;  %v2902_v7 = vmul.f32 %v7198_v51, %v7886_v41  ;;  %v2434_v56 = vadd.f32 %v2402_v19, %v2334_v21  ;;  %v2203_v8 = vmul.f32 %v7837_v57, %v7171_v18  ;;  %v2967_v21 = vld [vmem:[#allocation2 + $0x16a] sm:$0xff] }
 0x2ed   : > { %v2933_v59 = vadd.f32 %v2901_v12, %v2833_v29  ;;  %v2733_v14 = vadd.f32 %v2701_v63, %v2633_v13  ;;  %v3002_v4 = vmul.f32 %v7783_v11, %v7889_v1  ;;  %v2303_v55 = vmul.f32 %v7845_v26, %v7173_v30 }
 0x2ee   : > { %5644 = vmatmul.mubr.msk.f32.gmra.mrb[38].mxu0 %vm535_vm0, %v3071_v50  ;;  %v2534_v38 = vadd.f32 %v2502_v27, %v2434_v56  ;;  %v2602_v48 = vmul.f32 %v7864_v20, %v7179_v0  ;;  %v2702_v24 = vmul.f32 %v2965_v34, %v7187_v9  ;;  %v2403_v57 = vmul.f32 %v2964_v16, %v7177_v2  ;;  %v2768_v16 = vld [vmem:[#allocation2 + $0x170] sm:$0xff] }
 0x2ef   : > { %v3033_v12 = vadd.f32 %v3001_v58, %v2933_v59  ;;  %v2834_v45 = vadd.f32 %v2802_v47, %v2733_v14  ;;  %v2335_v19 = vadd.f32 %v2303_v55, %v2203_v8  ;;  %v2503_v29 = vmul.f32 %v7877_v43, %v7184_v52  ;;  %v2868_v58 = vld [vmem:[#allocation2 + $0x171] sm:$0xff] }
 0x2f0   : > { %v2634_v13 = vadd.f32 %v2602_v48, %v2534_v38  ;;  %v2803_v26 = vmul.f32 %v7195_v53, %v2767_v60  ;;  %v2903_v27 = vmul.f32 %v7198_v51, %v7904_v17  ;;  %v2204_v63 = vmul.f32 %v2765_v22, %v7171_v18  ;;  %v2968_v48 = vld [vmem:[#allocation2 + $0x172] sm:$0xff] }
 0x2f1   : > { %v3072_v50 = vadd.f32 %v7814_v54, %v3033_v12  ;;  %v2934_v56 = vadd.f32 %v2902_v7, %v2834_v45  ;;  %v2435_v44 = vadd.f32 %v2403_v57, %v2335_v19  ;;  %v2304_v47 = vmul.f32 %v7864_v20, %v7173_v30  ;;  %v2769_v19 = vld [vmem:[#allocation2 + $0x180] sm:$0xff] }
 0x2f2   : > { %v2734_v8 = vadd.f32 %v2702_v24, %v2634_v13  ;;  %v3003_v59 = vmul.f32 %v7783_v11, %v2967_v21  ;;  %v2603_v14 = vmul.f32 %v7886_v41, %v7179_v0  ;;  %v2404_v55 = vmul.f32 %v2965_v34, %v7177_v2 }
 0x2f3   : > { %5646 = vmatprep.mubr.msk.f32.mxu0 %vm535_vm0, %v3072_v50  ;;  %v3034_v22 = vadd.f32 %v3002_v4, %v2934_v56  ;;  %v2535_v38 = vadd.f32 %v2503_v29, %v2435_v44  ;;  %v2336_v7 = vadd.f32 %v2304_v47, %v2204_v63  ;;  %v2504_v57 = vmul.f32 %v2767_v60, %v7184_v52  ;;  %v2869_v63 = vld [vmem:[#allocation2 + $0x181] sm:$0xff] }
 0x2f4   : > { %v2835_v12 = vadd.f32 %v2803_v26, %v2734_v8  ;;  %v2703_v20 = vmul.f32 %v7889_v1, %v7187_v9  ;;  %v2804_v24 = vmul.f32 %v7195_v53, %v2768_v16  ;;  %v2904_v45 = vmul.f32 %v7198_v51, %v2868_v58 }
 0x2f5   : > { %v3073_v13 = vadd.f32 %v7814_v54, %v3034_v22  ;;  %v2635_v34 = vadd.f32 %v2603_v14, %v2535_v38  ;;  %v2436_v40 = vadd.f32 %v2404_v55, %v2336_v7  ;;  %v2205_v44 = vmul.f32 %v7877_v43, %v7171_v18  ;;  %v2969_v55 = vld [vmem:[#allocation2 + $0x182] sm:$0xff] }
 0x2f6   : > { %v2935_v4 = vadd.f32 %v2903_v27, %v2835_v12  ;;  %v3004_v29 = vmul.f32 %v7783_v11, %v2968_v48  ;;  %v2604_v26 = vmul.f32 %v7904_v17, %v7179_v0  ;;  %v2305_v50 = vmul.f32 %v7886_v41, %v7173_v30 }
 0x2f7   : > { %5647 = vmatmul.mubr.msk.f32.gmra.mrb[40].mxu0 %vm535_vm0, %v3073_v13  ;;  %v2735_v56 = vadd.f32 %v2703_v20, %v2635_v34  ;;  %v2536_v47 = vadd.f32 %v2504_v57, %v2436_v40  ;;  %v2704_v8 = vmul.f32 %v2967_v21, %v7187_v9  ;;  %v2805_v14 = vmul.f32 %v7195_v53, %v2769_v19 }
 0x2f8   : > { %v3035_v43 = vadd.f32 %v3003_v59, %v2935_v4  ;;  %v2337_v27 = vadd.f32 %v2305_v50, %v2205_v44  ;;  %v2405_v22 = vmul.f32 %v7889_v1, %v7177_v2  ;;  %v2505_v38 = vmul.f32 %v2768_v16, %v7184_v52  ;;  %v2770_v4 = vld [vmem:[#allocation2 + $0x188] sm:$0xff] }
 0x2f9   : > { %v2836_v7 = vadd.f32 %v2804_v24, %v2735_v56  ;;  %v2636_v12 = vadd.f32 %v2604_v26, %v2536_v47  ;;  %v2905_v41 = vmul.f32 %v7198_v51, %v2869_v63  ;;  %v2206_v13 = vmul.f32 %v2767_v60, %v7171_v18 }
 0x2fa   : > { %v3074_v40 = vadd.f32 %v7814_v54, %v3035_v43  ;;  %v3005_v57 = vmul.f32 %v7783_v11, %v2969_v55  ;;  %v2437_v20 = vadd.f32 %v2405_v22, %v2337_v27  ;;  %v2306_v59 = vmul.f32 %v7904_v17, %v7173_v30  ;;  %v2870_v22 = vld [vmem:[#allocation2 + $0x189] sm:$0xff] }
 0x2fb   : > { %v2936_v34 = vadd.f32 %v2904_v45, %v2836_v7  ;;  %v2736_v44 = vadd.f32 %v2704_v8, %v2636_v12  ;;  %v2605_v1 = vmul.f32 %v2868_v58, %v7179_v0  ;;  %v2406_v24 = vmul.f32 %v2967_v21, %v7177_v2  ;;  %v7962_v45 = vld [vmem:[%s8897_s8] ss:$0 sm:$0xff]  ;;  %v5612_v7 = vpop.f32.mrb[16].mxu0 }
 0x2fc   : > { %5649 = vmatprep.mubr.msk.f32.mxu0 %vm535_vm0, %v3074_v40  ;;  %v2537_v26 = vadd.f32 %v2505_v38, %v2437_v20  ;;  %v2338_v50 = vadd.f32 %v2306_v59, %v2206_v13  ;;  %v2506_v60 = vmul.f32 %v2769_v19, %v7184_v52  ;;  %v2207_v56 = vmul.f32 %v2768_v16, %v7171_v18  ;;  %v3250_v20 = vpop.f32.mrb[17].mxu0  ;;  %v7980_v59 = vld [vmem:[%s8899_s10] ss:$0 sm:$0xff] }
 0x2fd   : > { %v3036_v47 = vadd.f32 %v3004_v29, %v2936_v34  ;;  %v2837_v43 = vadd.f32 %v2805_v14, %v2736_v44  ;;  %v2705_v27 = vmul.f32 %v2968_v48, %v7187_v9  ;;  %v2307_v17 = vmul.f32 %v2868_v58, %v7173_v30  ;;  %v7971_v30 = vld [vmem:[%s8898_s9] ss:$0 sm:$0xff] }
 0x2fe   : > { %v2637_v21 = vadd.f32 %v2605_v1, %v2537_v26  ;;  %v2806_v8 = vmul.f32 %v7195_v53, %v2770_v4  ;;  %v2438_v38 = vadd.f32 %v2406_v24, %v2338_v50  ;;  %v2407_v19 = vmul.f32 %v2968_v48, %v7177_v2  ;;  %v2971_v26 = vld [vmem:[#allocation2 + $0x19a] sm:$0xff] }
 0x2ff   : > { %v3075_v18 = vadd.f32 %v7814_v54, %v3036_v47  ;;  %v2937_v16 = vadd.f32 %v2905_v41, %v2837_v43  ;;  %v2339_v29 = vadd.f32 %v2307_v17, %v2207_v56  ;;  %v2507_v14 = vmul.f32 %v2770_v4, %v7184_v52  ;;  %v2970_v41 = vld [vmem:[#allocation2 + $0x18a] sm:$0xff]  ;;  %v2772_v4 = vld [vmem:[#allocation2 + $0x1a0] sm:$0xff] }
 0x300   : > { %v2737_v58 = vadd.f32 %v2705_v27, %v2637_v21  ;;  %v2538_v12 = vadd.f32 %v2506_v60, %v2438_v38  ;;  %v2606_v13 = vmul.f32 %v2869_v63, %v7179_v0  ;;  %v3256_v40 = vadd.f32 %v5612_v7, %v7962_v45  ;;  %v2872_v17 = vld [vmem:[#allocation2 + $0x1a1] sm:$0xff] }
 0x301   : > { %5650 = vmatmul.mubr.msk.f32.gmra.mrb[42].mxu0 %vm535_vm0, %v3075_v18  ;;  %v3037_v2 = vadd.f32 %v3005_v57, %v2937_v16  ;;  %v2906_v48 = vmul.f32 %v7198_v51, %v2870_v22  ;;  %v2439_v52 = vadd.f32 %v2407_v19, %v2339_v29  ;;  %v3251_v34 = vadd.f32 %v7962_v45, %v3250_v20  ;;  %v2972_v16 = vld [vmem:[#allocation2 + $0x1a2] sm:$0xff] }
 0x302   : > { %v2838_v44 = vadd.f32 %v2806_v8, %v2737_v58  ;;  %v2638_v1 = vadd.f32 %v2606_v13, %v2538_v12  ;;  %v2706_v63 = vmul.f32 %v2969_v55, %v7187_v9  ;;  %v3417_v24 = vmul.f32 %v7971_v30, %v3256_v40 }
 0x303   : > { %v3076_v57 = vadd.f32 %v7814_v54, %v3037_v2  ;;  %v2539_v50 = vadd.f32 %v2507_v14, %v2439_v52  ;;  %v2607_v60 = vmul.f32 %v2870_v22, %v7179_v0  ;;  %v3416_v56 = vmul.f32 %v7971_v30, %v3251_v34 }
 0x304   : > { %v2938_v47 = vadd.f32 %v2906_v48, %v2838_v44  ;;  %v3006_v43 = vmul.f32 %v7783_v11, %v2970_v41  ;;  %v2738_v27 = vadd.f32 %v2706_v63, %v2638_v1  ;;  %v3456_v21 = vadd.f32 %v7980_v59, %v3417_v24 }
 0x305   : > { %5652 = vmatprep.mubr.msk.f32.mxu0 %vm535_vm0, %v3076_v57  ;;  %v2639_v55 = vadd.f32 %v2607_v60, %v2539_v50  ;;  %v2707_v8 = vmul.f32 %v2970_v41, %v7187_v9  ;;  %v2808_v38 = vmul.f32 %v7195_v53, %v2772_v4  ;;  %v3455_v19 = vadd.f32 %v7980_v59, %v3416_v56  ;;  %v5615_v41 = vpop.f32.mrb[18].mxu0 }
 0x306   : > { %v3038_v18 = vadd.f32 %v3006_v43, %v2938_v47  ;;  %v2839_v0 = vadd.f32 %v7614_v35, %v2738_v27  ;;  %v3007_v22 = vmul.f32 %v7783_v11, %v2971_v26  ;;  %v3488_v29 = vmax.f32 %v3456_v21, 0.0 }
 0x307   : > { %v2739_v14 = vadd.f32 %v2707_v8, %v2639_v55  ;;  %v2908_v7 = vmul.f32 %v7198_v51, %v2872_v17  ;;  %v3487_v58 = vmax.f32 %v3455_v19, 0.0  ;;  %v3008_v53 = vmul.f32 %v7783_v11, %v2972_v16  ;;  %v3260_v11 = vpop.f32.mrb[19].mxu0 }
 0x308   : > { %v3077_v12 = vadd.f32 %v7814_v54, %v3038_v18  ;;  %v2939_v13 = vadd.f32 %v7653_v31, %v2839_v0  ;;  %v3520_v20 = vadd.f32 %v3488_v29, %v7148_v5  ;;  %v3266_v31 = vadd.f32 %v5615_v41, %v7962_v45 }
 0x309   : > { %v2840_v9 = vadd.f32 %v2808_v38, %v2739_v14  ;;  %v3519_v40 = vadd.f32 %v3487_v58, %v7151_v25  ;;  %v3261_v52 = vadd.f32 %v7962_v45, %v3260_v11 }
 0x30a   : > { %5653 = vmatmul.mubr.msk.f32.gmra.mrb[44].mxu0 %vm535_vm0, %v3077_v12  ;;  %v3039_v35 = vadd.f32 %v3007_v22, %v2939_v13  ;;  %v3419_v5 = vmul.f32 %v7971_v30, %v3266_v31 }
 0x30b   : > { %v2940_v2 = vadd.f32 %v2908_v7, %v2840_v9  ;;  %5660 = vmatprep.mubr.msk.f32.mxu1 %vm535_vm0, %v3519_v40  ;;  %v3418_v34 = vmul.f32 %v7971_v30, %v3261_v52 }
 0x30c   : > { %v3078_v51 = vadd.f32 %v7814_v54, %v3039_v35  ;;  %5661 = vmatmul.mubr.msk.f32.vlgmr.msra.gmra.mrb[48].mxu1 %vm535_vm0, %v3520_v20  ;;  %v3458_v44 = vadd.f32 %v7980_v59, %v3419_v5 }
 0x30d   : > { %v3040_v48 = vadd.f32 %v3008_v53, %v2940_v2  ;;  %v3457_v1 = vadd.f32 %v7980_v59, %v3418_v34 }
 0x30e   : > { %5655 = vmatprep.mubr.msk.f32.mxu0 %vm535_vm0, %v3078_v51  ;;  %v3490_v63 = vmax.f32 %v3458_v44, 0.0  ;;  %v4744_v51 = vld [vmem:[%s8902_s13] sm:$0xff] }
 0x30f   : > { %v3079_v25 = vadd.f32 %v7814_v54, %v3040_v48  ;;  %v3489_v4 = vmax.f32 %v3457_v1, 0.0  ;;  %5708 = vmatprep.subr.mxu0 %v4744_v51 }
 0x310   : > { %v3522_v57 = vadd.f32 %v3490_v63, %v7159_v36  ;;  %5709 = vmatpush3.msra.mxu0 %v4744_v51 }
 0x311   : > { %5656 = vmatmul.mubr.msk.f32.gmra.mrb[46].mxu0 %vm535_vm0, %v3079_v25  ;;  %v3521_v24 = vadd.f32 %v3489_v4, %v7162_v15  ;;  %v5618_v54 = vpop.f32.mrb[20].mxu0 }
 0x312   : > { %v3276_v26 = vadd.f32 %v5618_v54, %v7962_v45  ;;  %v3270_v50 = vpop.f32.mrb[21].mxu0 }
 0x313   : > { %5663 = vmatprep.mubr.msk.f32.mxu1 %vm535_vm0, %v3521_v24  ;;  %v3271_v60 = vadd.f32 %v7962_v45, %v3270_v50 }
 0x314   : > { %5664 = vmatmul.mubr.msk.f32.gmra.mrb[50].mxu1 %vm535_vm0, %v3522_v57  ;;  %v3421_v56 = vmul.f32 %v7971_v30, %v3276_v26 }
 0x315   : > { %v3420_v47 = vmul.f32 %v7971_v30, %v3271_v60 }
 0x316   : > { %v3460_v43 = vadd.f32 %v7980_v59, %v3421_v56 }
 0x317   : > { %v3459_v15 = vadd.f32 %v7980_v59, %v3420_v47 }
 0x318   : > { %v3492_v27 = vmax.f32 %v3460_v43, 0.0 }
 0x319   : > { %v3491_v36 = vmax.f32 %v3459_v15, 0.0 }
 0x31a   : > { %v3524_v21 = vadd.f32 %v3492_v27, %v7218_v61 }
 0x31b   : > { %v3523_v17 = vadd.f32 %v3491_v36, %v7222_v46 }
 0x31d   : > { %5666 = vmatprep.mubr.msk.f32.mxu1 %vm535_vm0, %v3523_v17 }
 0x31e   : > { %5667 = vmatmul.mubr.msk.f32.gmra.mrb[52].mxu1 %vm535_vm0, %v3524_v21 }
 0x332   : > { %v5621_v55 = vpop.f32.mrb[22].mxu0 }
 0x333   : > { %v3286_v8 = vadd.f32 %v5621_v55, %v7962_v45  ;;  %v3280_v38 = vpop.f32.mrb[23].mxu0 }
 0x334   : > { %v3281_v19 = vadd.f32 %v7962_v45, %v3280_v38 }
 0x335   : > { %v3423_v18 = vmul.f32 %v7971_v30, %v3286_v8 }
 0x336   : > { %v3422_v0 = vmul.f32 %v7971_v30, %v3281_v19 }
 0x337   : > { %v3462_v22 = vadd.f32 %v7980_v59, %v3423_v18 }
 0x338   : > { %v3461_v46 = vadd.f32 %v7980_v59, %v3422_v0 }
 0x339   : > { %v3494_v16 = vmax.f32 %v3462_v22, 0.0 }
 0x33a   : > { %v3493_v61 = vmax.f32 %v3461_v46, 0.0 }
 0x33b   : > { %v3526_v14 = vadd.f32 %v3494_v16, %v7283_v49 }
 0x33c   : > { %v3525_v29 = vadd.f32 %v3493_v61, %v7287_v6 }
 0x33e   : > { %5669 = vmatprep.mubr.msk.f32.mxu1 %vm535_vm0, %v3525_v29 }
 0x33f   : > { %5670 = vmatmul.mubr.msk.f32.gmra.mrb[54].mxu1 %vm535_vm0, %v3526_v14 }
 0x347   : > { %v5624_v7 = vpop.f32.mrb[24].mxu0 }
 0x348   : > { %v3296_v58 = vadd.f32 %v5624_v7, %v7962_v45  ;;  %v3290_v12 = vpop.f32.mrb[25].mxu0 }
 0x349   : > { %v3291_v13 = vadd.f32 %v7962_v45, %v3290_v12 }
 0x34a   : > { %v3425_v9 = vmul.f32 %v7971_v30, %v3296_v58 }
 0x34b   : > { %v3424_v53 = vmul.f32 %v7971_v30, %v3291_v13 }
 0x34c   : > { %v3464_v40 = vadd.f32 %v7980_v59, %v3425_v9 }
 0x34d   : > { %v3463_v6 = vadd.f32 %v7980_v59, %v3424_v53 }
 0x34e   : > { %v3496_v35 = vmax.f32 %v3464_v40, 0.0 }
 0x34f   : > { %v3495_v49 = vmax.f32 %v3463_v6, 0.0 }
 0x350   : > { %v3528_v2 = vadd.f32 %v3496_v35, %v7333_v39 }
 0x351   : > { %v3527_v20 = vadd.f32 %v3495_v49, %v7336_v23 }
 0x353   : > { %5672 = vmatprep.mubr.msk.f32.mxu1 %vm535_vm0, %v3527_v20 }
 0x354   : > { %5673 = vmatmul.mubr.msk.f32.gmra.mrb[56].mxu1 %vm535_vm0, %v3528_v2  ;;  %v8996_v2 = vld [vmem:[#allocation7_spill] sm:$0xff] }
 0x362   : > { %v5627_v48 = vpop.f32.mrb[26].mxu0 }
 0x363   : > { %v3306_v41 = vadd.f32 %v5627_v48, %v7962_v45  ;;  %v3300_v31 = vpop.f32.mrb[27].mxu0 }
 0x364   : > { %v3301_v11 = vadd.f32 %v7962_v45, %v3300_v31  ;;  %v8997_v31 = vld [vmem:[#allocation11_spill] sm:$0xff] }
 0x365   : > { %v3427_v23 = vmul.f32 %v7971_v30, %v3306_v41 }
 0x366   : > { %v3426_v39 = vmul.f32 %v7971_v30, %v3301_v11 }
 0x367   : > { %v3466_v25 = vadd.f32 %v7980_v59, %v3427_v23 }
 0x368   : > { %v3465_v52 = vadd.f32 %v7980_v59, %v3426_v39 }
 0x369   : > { %v3498_v5 = vmax.f32 %v3466_v25, 0.0 }
 0x36a   : > { %v3497_v34 = vmax.f32 %v3465_v52, 0.0 }
 0x36b   : > { %v3530_v1 = vadd.f32 %v3498_v5, %v7389_v62 }
 0x36c   : > { %v3529_v44 = vadd.f32 %v3497_v34, %v7392_v37 }
 0x36e   : > { %5675 = vmatprep.mubr.msk.f32.mxu1 %vm535_vm0, %v3529_v44 }
 0x36f   : > { %5676 = vmatmul.mubr.msk.f32.gmra.mrb[58].mxu1 %vm535_vm0, %v3530_v1 }
 0x390   : > { %v5630_v63 = vpop.f32.mrb[28].mxu0 }
 0x391   : > { %v3316_v4 = vadd.f32 %v5630_v63, %v7962_v45  ;;  %v3310_v24 = vpop.f32.mrb[29].mxu0 }
 0x392   : > { %v3311_v57 = vadd.f32 %v7962_v45, %v3310_v24  ;;  %v8998_v24 = vld [vmem:[#allocation12_spill] sm:$0xff] }
 0x393   : > { %v3429_v54 = vmul.f32 %v7971_v30, %v3316_v4 }
 0x394   : > { %v3428_v26 = vmul.f32 %v7971_v30, %v3311_v57 }
 0x395   : > { %v3468_v50 = vadd.f32 %v7980_v59, %v3429_v54 }
 0x396   : > { %v3467_v37 = vadd.f32 %v7980_v59, %v3428_v26  ;;  %v8999_v26 = vld [vmem:[#allocation14_spill] sm:$0xff] }
 0x397   : > { %v3500_v60 = vmax.f32 %v3468_v50, 0.0 }
 0x398   : > { %v3499_v62 = vmax.f32 %v3467_v37, 0.0  ;;  %v5633_v56 = vpop.f32.mrb[30].mxu0 }
 0x399   : > { %v3326_v47 = vadd.f32 %v5633_v56, %v7962_v45  ;;  %v3320_v43 = vpop.f32.mrb[31].mxu0  ;;  %v3532_v36 = vadd.f32 %v3500_v60, %v7451_v3 }
 0x39a   : > { %v3531_v15 = vadd.f32 %v3499_v62, %v7454_v28  ;;  %v3321_v27 = vadd.f32 %v7962_v45, %v3320_v43 }
 0x39b   : > { %v3431_v17 = vmul.f32 %v7971_v30, %v3326_v47 }
 0x39c   : > { %v3430_v21 = vmul.f32 %v7971_v30, %v3321_v27  ;;  %5678 = vmatprep.mubr.msk.f32.mxu1 %vm535_vm0, %v3531_v15  ;;  %v9000_v27 = vld [vmem:[#allocation15_spill] sm:$0xff] }
 0x39d   : > { %v3470_v55 = vadd.f32 %v7980_v59, %v3431_v17  ;;  %5679 = vmatmul.mubr.msk.f32.gmra.mrb[60].mxu1 %vm535_vm0, %v3532_v36 }
 0x39e   : > { %v3469_v8 = vadd.f32 %v7980_v59, %v3430_v21 }
 0x39f   : > { %v3502_v38 = vmax.f32 %v3470_v55, 0.0  ;;  %v9001_v55 = vld [vmem:[#allocation13_spill] sm:$0xff] }
 0x3a0   : > { %v3501_v19 = vmax.f32 %v3469_v8, 0.0 }
 0x3a1   : > { %v3534_v18 = vadd.f32 %v3502_v38, %v7496_v33 }
 0x3a2   : > { %v3533_v28 = vadd.f32 %v3501_v19, %v7499_v32 }
 0x3a4   : > { %5681 = vmatprep.mubr.msk.f32.mxu1 %vm535_vm0, %v3533_v28 }
 0x3a5   : > { %5682 = vmatmul.mubr.msk.f32.gmra.mrb[62].mxu1 %vm535_vm0, %v3534_v18 }
 0x3a6   : > { %v5636_v3 = vpop.f32.mrb[32].mxu0 }
 0x3a7   : > { %v3336_v0 = vadd.f32 %v5636_v3, %v7962_v45  ;;  %v3330_v22 = vpop.f32.mrb[33].mxu0 }
 0x3a8   : > { %v3331_v46 = vadd.f32 %v7962_v45, %v3330_v22 }
 0x3a9   : > { %v3433_v16 = vmul.f32 %v7971_v30, %v3336_v0 }
 0x3aa   : > { %v3432_v61 = vmul.f32 %v7971_v30, %v3331_v46  ;;  %v9002_v46 = vld [vmem:[#allocation4_spill] sm:$0xff] }
 0x3ab   : > { %v3472_v29 = vadd.f32 %v7980_v59, %v3433_v16 }
 0x3ac   : > { %v3471_v32 = vadd.f32 %v7980_v59, %v3432_v61 }
 0x3ad   : > { %v3504_v14 = vmax.f32 %v3472_v29, 0.0  ;;  %v9003_v29 = vld [vmem:[#allocation10_spill] sm:$0xff] }
 0x3ae   : > { %v3503_v33 = vmax.f32 %v3471_v32, 0.0 }
 0x3af   : > { %v3536_v12 = vadd.f32 %v3504_v14, %v7511_v42 }
 0x3b0   : > { %v3535_v7 = vadd.f32 %v3503_v33, %v7515_v10  ;;  %v5639_v58 = vpop.f32.mrb[34].mxu0 }
 0x3b1   : > { %v3346_v13 = vadd.f32 %v5639_v58, %v7962_v45  ;;  %v3340_v9 = vpop.f32.mrb[35].mxu0 }
 0x3b2   : > { %v3341_v53 = vadd.f32 %v7962_v45, %v3340_v9  ;;  %5684 = vmatprep.mubr.msk.f32.mxu1 %vm535_vm0, %v3535_v7 }
 0x3b3   : > { %v3435_v40 = vmul.f32 %v7971_v30, %v3346_v13  ;;  %5685 = vmatmul.mubr.msk.f32.gmra.mrb[64].mxu1 %vm535_vm0, %v3536_v12 }
 0x3b4   : > { %v3434_v6 = vmul.f32 %v7971_v30, %v3341_v53 }
 0x3b5   : > { %v3474_v35 = vadd.f32 %v7980_v59, %v3435_v40 }
 0x3b6   : > { %v3473_v10 = vadd.f32 %v7980_v59, %v3434_v6 }
 0x3b7   : > { %v3506_v49 = vmax.f32 %v3474_v35, 0.0  ;;  %v8141_v35 = vld [vmem:[%s8901_s12] ss:$0 sm:$0xff] }
 0x3b8   : > { %v3505_v20 = vmax.f32 %v3473_v10, 0.0  ;;  %v9004_v10 = vld [vmem:[#allocation3_spill] sm:$0xff] }
 0x3b9   : > { %v5642_v42 = vpop.f32.mrb[36].mxu0  ;;  %v3538_v11 = vadd.f32 %v3506_v49, %v8997_v31 }
 0x3ba   : > { %v3537_v51 = vadd.f32 %v3505_v20, %v8996_v2  ;;  %v3356_v48 = vadd.f32 %v5642_v42, %v7962_v45  ;;  %v3350_v41 = vpop.f32.mrb[37].mxu0  ;;  %v9005_v2 = vld [vmem:[#allocation16_spill] sm:$0xff] }
 0x3bb   : > { %v3351_v23 = vadd.f32 %v7962_v45, %v3350_v41 }
 0x3bc   : > { %v3437_v39 = vmul.f32 %v7971_v30, %v3356_v48  ;;  %5687 = vmatprep.mubr.msk.f32.mxu1 %vm535_vm0, %v3537_v51 }
 0x3bd   : > { %v3436_v25 = vmul.f32 %v7971_v30, %v3351_v23  ;;  %5688 = vmatmul.mubr.msk.f32.gmra.mrb[66].mxu1 %vm535_vm0, %v3538_v11 }
 0x3be   : > { %v3476_v52 = vadd.f32 %v7980_v59, %v3437_v39 }
 0x3bf   : > { %v3475_v5 = vadd.f32 %v7980_v59, %v3436_v25 }
 0x3c0   : > { %v3508_v34 = vmax.f32 %v3476_v52, 0.0 }
 0x3c1   : > { %v3507_v44 = vmax.f32 %v3475_v5, 0.0  ;;  %v5645_v1 = vpop.f32.mrb[38].mxu0 }
 0x3c2   : > { %v3366_v63 = vadd.f32 %v5645_v1, %v7962_v45  ;;  %v3360_v4 = vpop.f32.mrb[39].mxu0  ;;  %v3540_v50 = vadd.f32 %v3508_v34, %v8999_v26 }
 0x3c3   : > { %v3539_v57 = vadd.f32 %v3507_v44, %v8998_v24  ;;  %v3361_v54 = vadd.f32 %v7962_v45, %v3360_v4 }
 0x3c4   : > { %v3439_v37 = vmul.f32 %v7971_v30, %v3366_v63 }
 0x3c5   : > { %v3438_v60 = vmul.f32 %v7971_v30, %v3361_v54  ;;  %5690 = vmatprep.mubr.msk.f32.mxu1 %vm535_vm0, %v3539_v57 }
 0x3c6   : > { %v3478_v62 = vadd.f32 %v7980_v59, %v3439_v37  ;;  %5691 = vmatmul.mubr.msk.f32.gmra.mrb[68].mxu1 %vm535_vm0, %v3540_v50  ;;  %v9006_v37 = vld [vmem:[#allocation5_spill] sm:$0xff] }
 0x3c7   : > { %v3477_v56 = vadd.f32 %v7980_v59, %v3438_v60 }
 0x3c8   : > { %v3510_v47 = vmax.f32 %v3478_v62, 0.0 }
 0x3c9   : > { %v3509_v43 = vmax.f32 %v3477_v56, 0.0 }
 0x3ca   : > { %v5648_v15 = vpop.f32.mrb[40].mxu0  ;;  %v3542_v8 = vadd.f32 %v3510_v47, %v9001_v55  ;;  %v9007_v47 = vld [vmem:[#allocation6_spill] sm:$0xff] }
 0x3cb   : > { %v3541_v36 = vadd.f32 %v3509_v43, %v9000_v27  ;;  %v3376_v17 = vadd.f32 %v5648_v15, %v7962_v45  ;;  %v3370_v21 = vpop.f32.mrb[41].mxu0 }
 0x3cc   : > { %v3371_v38 = vadd.f32 %v7962_v45, %v3370_v21 }
 0x3cd   : > { %v3441_v19 = vmul.f32 %v7971_v30, %v3376_v17  ;;  %5693 = vmatprep.mubr.msk.f32.mxu1 %vm535_vm0, %v3541_v36 }
 0x3ce   : > { %v3440_v28 = vmul.f32 %v7971_v30, %v3371_v38  ;;  %5694 = vmatmul.mubr.msk.f32.gmra.mrb[70].mxu1 %vm535_vm0, %v3542_v8 }
 0x3cf   : > { %v3480_v18 = vadd.f32 %v7980_v59, %v3441_v19  ;;  %v9008_v19 = vld [vmem:[#allocation8_spill] sm:$0xff] }
 0x3d0   : > { %v3479_v3 = vadd.f32 %v7980_v59, %v3440_v28 }
 0x3d1   : > { %v3512_v0 = vmax.f32 %v3480_v18, 0.0 }
 0x3d2   : > { %v3511_v22 = vmax.f32 %v3479_v3, 0.0  ;;  %v9009_v3 = vld [vmem:[#allocation9_spill] sm:$0xff] }
 0x3d3   : > { %v3544_v32 = vadd.f32 %v3512_v0, %v9003_v29 }
 0x3d4   : > { %v3543_v16 = vadd.f32 %v3511_v22, %v9002_v46  ;;  %v5651_v61 = vpop.f32.mrb[42].mxu0 }
 0x3d5   : > { %v3386_v14 = vadd.f32 %v5651_v61, %v7962_v45  ;;  %v3380_v33 = vpop.f32.mrb[43].mxu0 }
 0x3d6   : > { %v3381_v7 = vadd.f32 %v7962_v45, %v3380_v33  ;;  %5696 = vmatprep.mubr.msk.f32.mxu1 %vm535_vm0, %v3543_v16 }
 0x3d7   : > { %v3443_v58 = vmul.f32 %v7971_v30, %v3386_v14  ;;  %5697 = vmatmul.mubr.msk.f32.gmra.mrb[72].mxu1 %vm535_vm0, %v3544_v32 }
 0x3d8   : > { %v3442_v12 = vmul.f32 %v7971_v30, %v3381_v7 }
 0x3d9   : > { %v3482_v13 = vadd.f32 %v7980_v59, %v3443_v58 }
 0x3da   : > { %v3481_v9 = vadd.f32 %v7980_v59, %v3442_v12 }
 0x3db   : > { %v3514_v53 = vmax.f32 %v3482_v13, 0.0 }
 0x3dc   : > { %v3513_v40 = vmax.f32 %v3481_v9, 0.0 }
 0x3dd   : > { %v5654_v6 = vpop.f32.mrb[44].mxu0  ;;  %v3546_v51 = vadd.f32 %v3514_v53, %v9005_v2 }
 0x3de   : > { %v3545_v49 = vadd.f32 %v3513_v40, %v9004_v10  ;;  %v3396_v20 = vadd.f32 %v5654_v6, %v7962_v45  ;;  %v3390_v42 = vpop.f32.mrb[45].mxu0 }
 0x3df   : > { %v3391_v48 = vadd.f32 %v7962_v45, %v3390_v42  ;;  %v5662_v41 = vpop.f32.mrb[48].mxu1 }
 0x3e0   : > { %v3445_v31 = vmul.f32 %v7971_v30, %v3396_v20  ;;  %5699 = vmatprep.mubr.msk.f32.mxu1 %vm535_vm0, %v3545_v49  ;;  %v8150_v11 = vadd.f32 %v5662_v41, %v8141_v35  ;;  %v3721_v23 = vpop.f32.mrb[49].mxu1 }
 0x3e1   : > { %v3444_v39 = vmul.f32 %v7971_v30, %v3391_v48  ;;  %5700 = vmatmul.mubr.msk.f32.gmra.mrb[74].mxu1 %vm535_vm0, %v3546_v51  ;;  %v8155_v25 = vadd.f32 %v8141_v35, %v3721_v23 }
 0x3e2   : > { %v3484_v52 = vadd.f32 %v7980_v59, %v3445_v31  ;;  %v8159_v5 = vmul.f32 0.70710677, %v8150_v11 }
 0x3e3   : > { %v3483_v34 = vadd.f32 %v7980_v59, %v3444_v39  ;;  %v8163_v44 = vmul.f32 0.70710677, %v8155_v25 }
 0x3e4   : > { %v3516_v1 = vmax.f32 %v3484_v52, 0.0  ;;  %v5657_v63 = vpop.f32.mrb[46].mxu0  ;;  %v4009_v4 = vand.u32 2147483647, %v8159_v5  ;;  %vm3945_vm4 = vcmp.ge.f32.partialorder %v8159_v5, 0.0 }
 0x3e5   : > { %v3515_v24 = vmax.f32 %v3483_v34, 0.0  ;;  %v3406_v57 = vadd.f32 %v5657_v63, %v7962_v45  ;;  %v3400_v54 = vpop.f32.mrb[47].mxu0  ;;  %v4008_v56 = vand.u32 2147483647, %v8163_v44  ;;  %vm3944_vm5 = vcmp.ge.f32.partialorder %v8163_v44, 0.0 }
 0x3e6   : > { %v3401_v26 = vadd.f32 %v7962_v45, %v3400_v54  ;;  %v4041_v50 = vmul.f32 0.3275911, %v4009_v4  ;;  %v3548_v43 = vadd.f32 %v3516_v1, %v9007_v47 }
 0x3e7   : > { %v3547_v60 = vadd.f32 %v3515_v24, %v9006_v37  ;;  %v3447_v62 = vmul.f32 %v7971_v30, %v3406_v57  ;;  %v4040_v17 = vmul.f32 0.3275911, %v4008_v56  ;;  %v5665_v38 = vpop.f32.mrb[50].mxu1  ;;  %v4456_v29 = vsub.f32 0.0, %v4008_v56 }
 0x3e8   : > { %v3446_v15 = vmul.f32 %v7971_v30, %v3401_v26  ;;  %v4073_v27 = vadd.f32 1.0, %v4041_v50  ;;  %v8179_v30 = vadd.f32 %v5665_v38, %v8141_v35  ;;  %v3731_v18 = vpop.f32.mrb[51].mxu1 }
 0x3e9   : > { %v3486_v36 = vadd.f32 %v7980_v59, %v3447_v62  ;;  %5702 = vmatprep.mubr.msk.f32.mxu1 %vm535_vm0, %v3547_v60  ;;  %v4072_v55 = vadd.f32 1.0, %v4040_v17  ;;  %v8183_v22 = vadd.f32 %v8141_v35, %v3731_v18  ;;  %v4488_v40 = vmul.f32 %v4456_v29, %v4008_v56 }
 0x3ea   : > { %v3485_v21 = vadd.f32 %v7980_v59, %v3446_v15  ;;  %5703 = vmatmul.mubr.msk.f32.gmra.mrb[76].mxu1 %vm535_vm0, %v3548_v43  ;;  %5898 = vrcp.f32 %v4073_v27  ;;  %v4457_v59 = vsub.f32 0.0, %v4009_v4  ;;  %v8187_v46 = vmul.f32 0.70710677, %v8179_v30 }
 0x3eb   : > { %v3518_v45 = vmax.f32 %v3486_v36, 0.0  ;;  %5900 = vrcp.f32 %v4072_v55  ;;  %v8191_v16 = vmul.f32 0.70710677, %v8183_v22  ;;  %v4520_v51 = vmul.f32 1.442695, %v4488_v40 }
 0x3ec   : > { %v3517_v8 = vmax.f32 %v3485_v21, 0.0  ;;  %v4011_v61 = vand.u32 2147483647, %v8187_v46  ;;  %v4489_v33 = vmul.f32 %v4457_v59, %v4009_v4  ;;  %v9010_v18 = vmov -1.0  }
 0x3ed   : > { %v3550_v0 = vadd.f32 %v3518_v45, %v9009_v3  ;;  %v4010_v32 = vand.u32 2147483647, %v8191_v16  ;;  %v3977_v3 = vsel %vm3945_vm4, 1.0, %v9010_v18  ;;  %vm3947_vm6 = vcmp.ge.f32.partialorder %v8187_v46, 0.0 }
 0x3ee   : > { %v3549_v28 = vadd.f32 %v3517_v8, %v9008_v19  ;;  %v4043_v7 = vmul.f32 0.3275911, %v4011_v61  ;;  %v4522_v10 = vmul.f32 1.442695, %v4489_v33  ;;  %v4459_v23 = vsub.f32 0.0, %v4011_v61 }
 0x3ef   : > { %v4042_v12 = vmul.f32 0.3275911, %v4010_v32  ;;  %v4458_v52 = vsub.f32 0.0, %v4010_v32  ;;  %vm3946_vm7 = vcmp.ge.f32.partialorder %v8191_v16, 0.0  ;;  %v3882_v16 = vmul.f32 0.5, %v8183_v22 }
 0x3f0   : > { %5705 = vmatprep.mubr.msk.f32.mxu1 %vm535_vm0, %v3549_v28  ;;  %v4075_v13 = vadd.f32 1.0, %v4043_v7  ;;  %v4491_v24 = vmul.f32 %v4459_v23, %v4011_v61  ;;  %v3881_v23 = vmul.f32 0.5, %v8150_v11 }
 0x3f1   : > { %5706 = vmatmul.mubr.msk.f32.gmra.mrb[78].mxu1 %vm535_vm0, %v3550_v0  ;;  %v4074_v6 = vadd.f32 1.0, %v4042_v12  ;;  %v5668_v57 = vpop.f32.mrb[52].mxu1  ;;  %v4490_v37 = vmul.f32 %v4458_v52, %v4010_v32 }
 0x3f2   : > { %5902 = vrcp.f32 %v4075_v13  ;;  %v8196_v60 = vadd.f32 %v5668_v57, %v8141_v35  ;;  %v3741_v62 = vpop.f32.mrb[53].mxu1  ;;  %v4526_v45 = vmul.f32 1.442695, %v4491_v24 }
 0x3f3   : > { %5904 = vrcp.f32 %v4074_v6  ;;  %v8199_v43 = vadd.f32 %v8141_v35, %v3741_v62  ;;  %v4524_v19 = vmul.f32 1.442695, %v4490_v37 }
 0x3f4   : > { %v5899_v14 = vpop.eup %5898  ;;  %5906 = vpow2.f32 %v4522_v10  ;;  %v8203_v36 = vmul.f32 0.70710677, %v8196_v60  ;;  %v3976_v10 = vsel %vm3944_vm5, 1.0, %v9010_v18 }
 0x3f5   : > { %v4169_v58 = vmul.f32 1.0614054, %v5899_v14  ;;  %v5901_v9 = vpop.eup %5900  ;;  %5908 = vpow2.f32 %v4520_v51  ;;  %v8208_v5 = vmul.f32 0.70710677, %v8199_v43 }
 0x3f6   : > { %v4168_v49 = vmul.f32 1.0614054, %v5901_v9  ;;  %v4013_v28 = vand.u32 2147483647, %v8203_v36  ;;  %5910 = vpow2.f32 %v4526_v45  ;;  %vm3949_vm8 = vcmp.ge.f32.partialorder %v8203_v36, 0.0 }
 0x3f7   : > { %v4201_v53 = vadd.f32 -1.4531521, %v4169_v58  ;;  %v4012_v58 = vand.u32 2147483647, %v8208_v5  ;;  %5912 = vpow2.f32 %v4524_v19  ;;  %vm3948_vm9 = vcmp.ge.f32.partialorder %v8208_v5, 0.0 }
 0x3f8   : > { %v4200_v42 = vadd.f32 -1.4531521, %v4168_v49  ;;  %v4461_v24 = vsub.f32 0.0, %v4013_v28 }
 0x3f9   : > { %v4233_v20 = vmul.f32 %v5899_v14, %v4201_v53  ;;  %v4044_v6 = vmul.f32 0.3275911, %v4012_v58  ;;  %v4460_v11 = vsub.f32 0.0, %v4012_v58 }
 0x3fa   : > { %v4232_v48 = vmul.f32 %v5901_v9, %v4200_v42 }
 0x3fb   : > { %v4265_v2 = vadd.f32 1.4214138, %v4233_v20  ;;  %v4076_v42 = vadd.f32 1.0, %v4044_v6 }
 0x3fc   : > { %v4264_v31 = vadd.f32 1.4214138, %v4232_v48  ;;  %v5903_v63 = vpop.eup %5902  ;;  %v3880_v48 = vmul.f32 0.5, %v8155_v25 }
 0x3fd   : > { %v4297_v41 = vmul.f32 %v5899_v14, %v4265_v2  ;;  %v5905_v54 = vpop.eup %5904  ;;  %v4171_v50 = vmul.f32 1.0614054, %v5903_v63 }
 0x3fe   : > { %v4296_v34 = vmul.f32 %v5901_v9, %v4264_v31  ;;  %v4170_v47 = vmul.f32 1.0614054, %v5905_v54  ;;  %v5907_v17 = vpop.eup %5906 }
 0x3ff   : > { %v4329_v39 = vadd.f32 -0.28449672, %v4297_v41  ;;  %v4203_v27 = vadd.f32 -1.4531521, %v4171_v50  ;;  %v5909_v61 = vpop.eup %5908 }
 0x400   : > { %v4328_v4 = vadd.f32 -0.28449672, %v4296_v34  ;;  %v4202_v55 = vadd.f32 -1.4531521, %v4170_v47  ;;  %v5911_v57 = vpop.eup %5910  ;;  %v4493_v47 = vmul.f32 %v4461_v24, %v4013_v28  ;;  %v3981_v24 = vsel %vm3949_vm8, 1.0, %v9010_v18 }
 0x401   : > { %v4361_v1 = vmul.f32 %v5899_v14, %v4329_v39  ;;  %v4235_v38 = vmul.f32 %v5903_v63, %v4203_v27  ;;  %v5913_v50 = vpop.eup %5912 }
 0x402   : > { %v4360_v56 = vmul.f32 %v5901_v9, %v4328_v4  ;;  %v4234_v59 = vmul.f32 %v5905_v54, %v4202_v55  ;;  %v4492_v55 = vmul.f32 %v4460_v11, %v4012_v58 }
 0x403   : > { %v4393_v26 = vadd.f32 0.2548296, %v4361_v1  ;;  %v4267_v32 = vadd.f32 1.4214138, %v4235_v38  ;;  %v4530_v38 = vmul.f32 1.442695, %v4493_v47 }
 0x404   : > { %v4392_v21 = vadd.f32 0.2548296, %v4360_v56  ;;  %v4266_v7 = vadd.f32 1.4214138, %v4234_v59  ;;  %v3885_v47 = vmul.f32 0.5, %v8196_v60 }
 0x405   : > { %v4425_v15 = vmul.f32 %v5899_v14, %v4393_v26  ;;  %v4045_v14 = vmul.f32 0.3275911, %v4013_v28  ;;  %v4299_v13 = vmul.f32 %v5903_v63, %v4267_v32  ;;  %v3883_v28 = vmul.f32 0.5, %v8179_v30 }
 0x406   : > { %v4424_v0 = vmul.f32 %v5901_v9, %v4392_v21  ;;  %v4298_v40 = vmul.f32 %v5905_v54, %v4266_v7  ;;  %v4528_v32 = vmul.f32 1.442695, %v4492_v55 }
 0x407   : > { %v4585_v8 = vmul.f32 %v5907_v17, %v4425_v15  ;;  %v4077_v53 = vadd.f32 1.0, %v4045_v14  ;;  %v4331_v49 = vadd.f32 -0.28449672, %v4299_v13  ;;  %v3978_v17 = vsel %vm3946_vm7, 1.0, %v9010_v18 }
 0x408   : > { %v4584_v33 = vmul.f32 %v5909_v61, %v4424_v0  ;;  %v4330_v44 = vadd.f32 -0.28449672, %v4298_v40 }
 0x409   : > { %v4617_v29 = vsub.f32 1.0, %v4585_v8  ;;  %5914 = vrcp.f32 %v4077_v53  ;;  %v4363_v51 = vmul.f32 %v5903_v63, %v4331_v49 }
 0x40a   : > { %v4616_v9 = vsub.f32 1.0, %v4584_v33  ;;  %v4362_v31 = vmul.f32 %v5905_v54, %v4330_v44  ;;  %5916 = vrcp.f32 %v4076_v42 }
 0x40b   : > { %v4649_v12 = vmul.f32 %v4617_v29, %v3977_v3  ;;  %v4395_v39 = vadd.f32 0.2548296, %v4363_v51  ;;  %5918 = vpow2.f32 %v4530_v38 }
 0x40c   : > { %v4648_v20 = vmul.f32 %v4616_v9, %v3976_v10  ;;  %v4394_v34 = vadd.f32 0.2548296, %v4362_v31  ;;  %5920 = vpow2.f32 %v4528_v32 }
 0x40d   : > { %v4681_v2 = vadd.f32 1.0, %v4649_v12  ;;  %v4427_v4 = vmul.f32 %v5903_v63, %v4395_v39  ;;  %v3979_v63 = vsel %vm3947_vm6, 1.0, %v9010_v18 }
 0x40e   : > { %v4680_v41 = vadd.f32 1.0, %v4648_v20  ;;  %v4426_v26 = vmul.f32 %v5905_v54, %v4394_v34 }
 0x40f   : > { %v4713_v1 = vmul.f32 %v4681_v2, %v3881_v23  ;;  %v4587_v37 = vmul.f32 %v5911_v57, %v4427_v4 }
 0x410   : > { %v4712_v52 = vmul.f32 %v4680_v41, %v3880_v48  ;;  %v4586_v25 = vmul.f32 %v5913_v50, %v4426_v26 }
 0x411   : > { %v4619_v56 = vsub.f32 1.0, %v4587_v37 }
 0x412   : > { %5710 = vmatprep.mubr.msk.f32.mxu0 %vm535_vm0, %v4712_v52  ;;  %v4618_v15 = vsub.f32 1.0, %v4586_v25  ;;  %v5671_v13 = vpop.f32.mrb[54].mxu1  ;;  %v3980_v25 = vsel %vm3948_vm9, 1.0, %v9010_v18 }
 0x413   : > { %5711 = vmatmul.mubr.msk.f32.vlgmr.msra.gmra.mrb[48].mxu0 %vm535_vm0, %v4713_v1  ;;  %v5915_v62 = vpop.eup %5914  ;;  %v4651_v54 = vmul.f32 %v4619_v56, %v3979_v63  ;;  %v8226_v30 = vadd.f32 %v5671_v13, %v8141_v35  ;;  %v3751_v9 = vpop.f32.mrb[55].mxu1 }
 0x414   : > { %v4173_v27 = vmul.f32 1.0614054, %v5915_v62  ;;  %v5917_v21 = vpop.eup %5916  ;;  %v4650_v45 = vmul.f32 %v4618_v15, %v3978_v17  ;;  %v8229_v6 = vadd.f32 %v8141_v35, %v3751_v9 }
 0x415   : > { %v4683_v8 = vadd.f32 1.0, %v4651_v54  ;;  %v4172_v19 = vmul.f32 1.0614054, %v5917_v21  ;;  %v8232_v49 = vmul.f32 0.70710677, %v8226_v30  ;;  %v5919_v51 = vpop.eup %5918 }
 0x416   : > { %v4205_v46 = vadd.f32 -1.4531521, %v4173_v27  ;;  %v4682_v3 = vadd.f32 1.0, %v4650_v45  ;;  %v8235_v44 = vmul.f32 0.70710677, %v8229_v6  ;;  %v5921_v34 = vpop.eup %5920 }
 0x417   : > { %v4204_v59 = vadd.f32 -1.4531521, %v4172_v19  ;;  %v4715_v14 = vmul.f32 %v4683_v8, %v3883_v28  ;;  %v4015_v2 = vand.u32 2147483647, %v8232_v49  ;;  %vm3951_vm10 = vcmp.ge.f32.partialorder %v8232_v49, 0.0 }
 0x418   : > { %v4237_v0 = vmul.f32 %v5915_v62, %v4205_v46  ;;  %v4714_v61 = vmul.f32 %v4682_v3, %v3882_v16  ;;  %v4014_v41 = vand.u32 2147483647, %v8235_v44  ;;  %vm3950_vm11 = vcmp.ge.f32.partialorder %v8235_v44, 0.0 }
 0x419   : > { %v4236_v33 = vmul.f32 %v5917_v21, %v4204_v59  ;;  %v4047_v23 = vmul.f32 0.3275911, %v4015_v2  ;;  %v4463_v63 = vsub.f32 0.0, %v4015_v2 }
 0x41a   : > { %v4269_v29 = vadd.f32 1.4214138, %v4237_v0  ;;  %5713 = vmatprep.mubr.msk.f32.mxu0 %vm535_vm0, %v4714_v61  ;;  %v4046_v52 = vmul.f32 0.3275911, %v4014_v41  ;;  %v4462_v27 = vsub.f32 0.0, %v4014_v41 }
 0x41b   : > { %v4268_v58 = vadd.f32 1.4214138, %v4236_v33  ;;  %5714 = vmatmul.mubr.msk.f32.gmra.mrb[50].mxu0 %vm535_vm0, %v4715_v14  ;;  %v4079_v4 = vadd.f32 1.0, %v4047_v23  ;;  %v4495_v17 = vmul.f32 %v4463_v63, %v4015_v2  ;;  %v3886_v63 = vmul.f32 0.5, %v8229_v6 }
 0x41c   : > { %v4301_v7 = vmul.f32 %v5915_v62, %v4269_v29  ;;  %v4078_v26 = vadd.f32 1.0, %v4046_v52  ;;  %v4494_v46 = vmul.f32 %v4462_v27, %v4014_v41  ;;  %v3887_v27 = vmul.f32 0.5, %v8226_v30 }
 0x41d   : > { %v4300_v22 = vmul.f32 %v5917_v21, %v4268_v58  ;;  %5922 = vrcp.f32 %v4079_v4  ;;  %v4534_v19 = vmul.f32 1.442695, %v4495_v17 }
 0x41e   : > { %v4333_v12 = vadd.f32 -0.28449672, %v4301_v7  ;;  %5924 = vrcp.f32 %v4078_v26  ;;  %v4532_v28 = vmul.f32 1.442695, %v4494_v46 }
 0x41f   : > { %v4332_v40 = vadd.f32 -0.28449672, %v4300_v22  ;;  %5926 = vpow2.f32 %v4534_v19 }
 0x420   : > { %v4365_v53 = vmul.f32 %v5915_v62, %v4333_v12  ;;  %5928 = vpow2.f32 %v4532_v28 }
 0x421   : > { %v4364_v20 = vmul.f32 %v5917_v21, %v4332_v40 }
 0x422   : > { %v4397_v10 = vadd.f32 0.2548296, %v4365_v53 }
 0x423   : > { %v4396_v48 = vadd.f32 0.2548296, %v4364_v20 }
 0x424   : > { %v4429_v42 = vmul.f32 %v5915_v62, %v4397_v10  ;;  %v3884_v62 = vmul.f32 0.5, %v8199_v43 }
 0x425   : > { %v4428_v39 = vmul.f32 %v5917_v21, %v4396_v48 }
 0x426   : > { %v4589_v31 = vmul.f32 %v5919_v51, %v4429_v42 }
 0x427   : > { %v4588_v57 = vmul.f32 %v5921_v34, %v4428_v39  ;;  %v5923_v5 = vpop.eup %5922  ;;  %v5674_v8 = vpop.f32.mrb[56].mxu1 }
 0x428   : > { %v4621_v1 = vsub.f32 1.0, %v4589_v31  ;;  %v5925_v21 = vpop.eup %5924  ;;  %v4175_v45 = vmul.f32 1.0614054, %v5923_v5  ;;  %v8248_v43 = vadd.f32 %v5674_v8, %v8141_v35  ;;  %v3761_v60 = vpop.f32.mrb[57].mxu1 }
 0x429   : > { %v4620_v37 = vsub.f32 1.0, %v4588_v57  ;;  %v4174_v55 = vmul.f32 1.0614054, %v5925_v21  ;;  %v8251_v3 = vadd.f32 %v8141_v35, %v3761_v60  ;;  %v5927_v41 = vpop.eup %5926 }
 0x42a   : > { %v4653_v50 = vmul.f32 %v4621_v1, %v3981_v24  ;;  %v4207_v38 = vadd.f32 -1.4531521, %v4175_v45  ;;  %v8254_v59 = vmul.f32 0.70710677, %v8248_v43  ;;  %v5929_v23 = vpop.eup %5928  ;;  %v3983_v24 = vsel %vm3951_vm10, 1.0, %v9010_v18 }
 0x42b   : > { %v4652_v36 = vmul.f32 %v4620_v37, %v3980_v25  ;;  %v4206_v16 = vadd.f32 -1.4531521, %v4174_v55  ;;  %v8257_v29 = vmul.f32 0.70710677, %v8251_v3  ;;  %v3982_v37 = vsel %vm3950_vm11, 1.0, %v9010_v18 }
 0x42c   : > { %v4685_v11 = vadd.f32 1.0, %v4653_v50  ;;  %v4239_v0 = vmul.f32 %v5923_v5, %v4207_v38  ;;  %v4017_v14 = vand.u32 2147483647, %v8254_v59  ;;  %vm3953_vm12 = vcmp.ge.f32.partialorder %v8254_v59, 0.0 }
 0x42d   : > { %v4684_v56 = vadd.f32 1.0, %v4652_v36  ;;  %v4238_v61 = vmul.f32 %v5925_v21, %v4206_v16  ;;  %v4016_v7 = vand.u32 2147483647, %v8257_v29  ;;  %vm3952_vm13 = vcmp.ge.f32.partialorder %v8257_v29, 0.0 }
 0x42e   : > { %v4717_v54 = vmul.f32 %v4685_v11, %v3885_v47  ;;  %v4271_v32 = vadd.f32 1.4214138, %v4239_v0  ;;  %v4049_v12 = vmul.f32 0.3275911, %v4017_v14  ;;  %v4465_v52 = vsub.f32 0.0, %v4017_v14 }
 0x42f   : > { %v4716_v15 = vmul.f32 %v4684_v56, %v3884_v62  ;;  %v4270_v33 = vadd.f32 1.4214138, %v4238_v61  ;;  %v4048_v13 = vmul.f32 0.3275911, %v4016_v7  ;;  %v4464_v1 = vsub.f32 0.0, %v4016_v7 }
 0x430   : > { %v4303_v58 = vmul.f32 %v5923_v5, %v4271_v32  ;;  %v4081_v9 = vadd.f32 1.0, %v4049_v12  ;;  %v4497_v25 = vmul.f32 %v4465_v52, %v4017_v14  ;;  %v3889_v59 = vmul.f32 0.5, %v8248_v43 }
 0x431   : > { %5716 = vmatprep.mubr.msk.f32.mxu0 %vm535_vm0, %v4716_v15  ;;  %v4302_v22 = vmul.f32 %v5925_v21, %v4270_v33  ;;  %v4080_v10 = vadd.f32 1.0, %v4048_v13  ;;  %v4496_v56 = vmul.f32 %v4464_v1, %v4016_v7 }
 0x432   : > { %5717 = vmatmul.mubr.msk.f32.gmra.mrb[52].mxu0 %vm535_vm0, %v4717_v54  ;;  %v4335_v53 = vadd.f32 -0.28449672, %v4303_v58  ;;  %5930 = vrcp.f32 %v4081_v9  ;;  %v4538_v54 = vmul.f32 1.442695, %v4497_v25 }
 0x433   : > { %v4334_v40 = vadd.f32 -0.28449672, %v4302_v22  ;;  %5932 = vrcp.f32 %v4080_v10  ;;  %v4536_v45 = vmul.f32 1.442695, %v4496_v56 }
 0x434   : > { %v4367_v20 = vmul.f32 %v5923_v5, %v4335_v53  ;;  %5934 = vpow2.f32 %v4538_v54 }
 0x435   : > { %v4366_v42 = vmul.f32 %v5925_v21, %v4334_v40  ;;  %5936 = vpow2.f32 %v4536_v45 }
 0x436   : > { %v4399_v2 = vadd.f32 0.2548296, %v4367_v20 }
 0x437   : > { %v4398_v51 = vadd.f32 0.2548296, %v4366_v42 }
 0x438   : > { %v4431_v48 = vmul.f32 %v5923_v5, %v4399_v2 }
 0x439   : > { %v4430_v31 = vmul.f32 %v5925_v21, %v4398_v51 }
 0x43a   : > { %v4591_v39 = vmul.f32 %v5927_v41, %v4431_v48 }
 0x43b   : > { %v4590_v34 = vmul.f32 %v5929_v23, %v4430_v31  ;;  %v3985_v23 = vsel %vm3953_vm12, 1.0, %v9010_v18 }
 0x43c   : > { %v4623_v4 = vsub.f32 1.0, %v4591_v39  ;;  %v5931_v26 = vpop.eup %5930 }
 0x43d   : > { %v4622_v57 = vsub.f32 1.0, %v4590_v34  ;;  %v5933_v36 = vpop.eup %5932  ;;  %v4177_v62 = vmul.f32 1.0614054, %v5931_v26  ;;  %v3984_v34 = vsel %vm3952_vm13, 1.0, %v9010_v18 }
 0x43e   : > { %v4655_v50 = vmul.f32 %v4623_v4, %v3983_v24  ;;  %v4176_v47 = vmul.f32 1.0614054, %v5933_v36  ;;  %v5935_v42 = vpop.eup %5934 }
 0x43f   : > { %v4654_v11 = vmul.f32 %v4622_v57, %v3982_v37  ;;  %v4209_v15 = vadd.f32 -1.4531521, %v4177_v62  ;;  %v5937_v51 = vpop.eup %5936 }
 0x440   : > { %v4687_v49 = vadd.f32 1.0, %v4655_v50  ;;  %v4208_v5 = vadd.f32 -1.4531521, %v4176_v47 }
 0x441   : > { %v4686_v44 = vadd.f32 1.0, %v4654_v11  ;;  %v4241_v21 = vmul.f32 %v5931_v26, %v4209_v15 }
 0x442   : > { %v4719_v46 = vmul.f32 %v4687_v49, %v3887_v27  ;;  %v4240_v55 = vmul.f32 %v5933_v36, %v4208_v5  ;;  %v5677_v8 = vpop.f32.mrb[58].mxu1 }
 0x443   : > { %v4718_v17 = vmul.f32 %v4686_v44, %v3886_v63  ;;  %v4273_v38 = vadd.f32 1.4214138, %v4241_v21  ;;  %v8268_v60 = vadd.f32 %v5677_v8, %v8141_v35  ;;  %v3771_v19 = vpop.f32.mrb[59].mxu1 }
 0x444   : > { %v4272_v6 = vadd.f32 1.4214138, %v4240_v55  ;;  %v8272_v16 = vadd.f32 %v8141_v35, %v3771_v19 }
 0x445   : > { %5719 = vmatprep.mubr.msk.f32.mxu0 %vm535_vm0, %v4718_v17  ;;  %v4305_v30 = vmul.f32 %v5931_v26, %v4273_v38  ;;  %v8276_v0 = vmul.f32 0.70710677, %v8268_v60 }
 0x446   : > { %5720 = vmatmul.mubr.msk.f32.gmra.mrb[54].mxu0 %vm535_vm0, %v4719_v46  ;;  %v4304_v28 = vmul.f32 %v5933_v36, %v4272_v6  ;;  %v8279_v61 = vmul.f32 0.70710677, %v8272_v16 }
 0x447   : > { %v4337_v32 = vadd.f32 -0.28449672, %v4305_v30  ;;  %v4019_v14 = vand.u32 2147483647, %v8276_v0  ;;  %vm3955_vm14 = vcmp.ge.f32.partialorder %v8276_v0, 0.0 }
 0x448   : > { %v4336_v33 = vadd.f32 -0.28449672, %v4304_v28  ;;  %v4018_v7 = vand.u32 2147483647, %v8279_v61  ;;  %vm3954_vm15 = vcmp.ge.f32.partialorder %v8279_v61, 0.0 }
 0x449   : > { %v4369_v58 = vmul.f32 %v5931_v26, %v4337_v32  ;;  %v4051_v12 = vmul.f32 0.3275911, %v4019_v14  ;;  %v4467_v1 = vsub.f32 0.0, %v4019_v14 }
 0x44a   : > { %v4368_v22 = vmul.f32 %v5933_v36, %v4336_v33  ;;  %v4050_v13 = vmul.f32 0.3275911, %v4018_v7  ;;  %v4466_v24 = vsub.f32 0.0, %v4018_v7 }
 0x44b   : > { %v4401_v53 = vadd.f32 0.2548296, %v4369_v58  ;;  %v4083_v9 = vadd.f32 1.0, %v4051_v12  ;;  %v4499_v25 = vmul.f32 %v4467_v1, %v4019_v14 }
 0x44c   : > { %v4400_v40 = vadd.f32 0.2548296, %v4368_v22  ;;  %v4082_v10 = vadd.f32 1.0, %v4050_v13  ;;  %v4498_v62 = vmul.f32 %v4466_v24, %v4018_v7  ;;  %v3986_v24 = vsel %vm3954_vm15, 1.0, %v9010_v18 }
 0x44d   : > { %v4433_v20 = vmul.f32 %v5931_v26, %v4401_v53  ;;  %5938 = vrcp.f32 %v4083_v9  ;;  %v3888_v26 = vmul.f32 0.5, %v8251_v3  ;;  %v4542_v63 = vmul.f32 1.442695, %v4499_v25 }
 0x44e   : > { %v4432_v2 = vmul.f32 %v5933_v36, %v4400_v40  ;;  %5940 = vrcp.f32 %v4082_v10  ;;  %v4540_v3 = vmul.f32 1.442695, %v4498_v62  ;;  %v3891_v62 = vmul.f32 0.5, %v8268_v60 }
 0x44f   : > { %v4593_v48 = vmul.f32 %v5935_v42, %v4433_v20  ;;  %5942 = vpow2.f32 %v4542_v63  ;;  %vm5073_vm15 = vcmask 15360  }
 0x450   : > { %v4592_v41 = vmul.f32 %v5937_v51, %v4432_v2  ;;  %5944 = vpow2.f32 %v4540_v3 }
 0x451   : > { %v4625_v31 = vsub.f32 1.0, %v4593_v48 }
 0x452   : > { %v4624_v39 = vsub.f32 1.0, %v4592_v41 }
 0x453   : > { %v4657_v52 = vmul.f32 %v4625_v31, %v3985_v23 }
 0x454   : > { %v4656_v4 = vmul.f32 %v4624_v39, %v3984_v34  ;;  %v3987_v34 = vsel %vm3955_vm14, 1.0, %v9010_v18 }
 0x455   : > { %v4689_v57 = vadd.f32 1.0, %v4657_v52 }
 0x456   : > { %v4688_v50 = vadd.f32 1.0, %v4656_v4 }
 0x457   : > { %v5939_v37 = vpop.eup %5938  ;;  %v4721_v56 = vmul.f32 %v4689_v57, %v3889_v59 }
 0x458   : > { %v5941_v29 = vpop.eup %5940  ;;  %v4720_v36 = vmul.f32 %v4688_v50, %v3888_v26  ;;  %v4179_v11 = vmul.f32 1.0614054, %v5939_v37 }
 0x459   : > { %v4178_v49 = vmul.f32 1.0614054, %v5941_v29  ;;  %v5943_v42 = vpop.eup %5942 }
 0x45a   : > { %v4211_v47 = vadd.f32 -1.4531521, %v4179_v11  ;;  %5722 = vmatprep.mubr.msk.f32.mxu0 %vm535_vm0, %v4720_v36  ;;  %v5945_v51 = vpop.eup %5944 }
 0x45b   : > { %v4210_v44 = vadd.f32 -1.4531521, %v4178_v49  ;;  %5723 = vmatmul.mubr.msk.f32.gmra.mrb[56].mxu0 %vm535_vm0, %v4721_v56 }
 0x45c   : > { %v4243_v15 = vmul.f32 %v5939_v37, %v4211_v47 }
 0x45d   : > { %v4242_v27 = vmul.f32 %v5941_v29, %v4210_v44 }
 0x45e   : > { %v4275_v54 = vadd.f32 1.4214138, %v4243_v15 }
 0x45f   : > { %v4274_v43 = vadd.f32 1.4214138, %v4242_v27 }
 0x460   : > { %v4307_v45 = vmul.f32 %v5939_v37, %v4275_v54 }
 0x461   : > { %v4306_v55 = vmul.f32 %v5941_v29, %v4274_v43 }
 0x462   : > { %v4339_v38 = vadd.f32 -0.28449672, %v4307_v45 }
 0x463   : > { %v4338_v6 = vadd.f32 -0.28449672, %v4306_v55 }
 0x464   : > { %v4371_v28 = vmul.f32 %v5939_v37, %v4339_v38 }
 0x465   : > { %v4370_v14 = vmul.f32 %v5941_v29, %v4338_v6 }
 0x466   : > { %v4403_v7 = vadd.f32 0.2548296, %v4371_v28 }
 0x467   : > { %v4402_v22 = vadd.f32 0.2548296, %v4370_v14 }
 0x468   : > { %v4435_v40 = vmul.f32 %v5939_v37, %v4403_v7 }
 0x469   : > { %v4434_v2 = vmul.f32 %v5941_v29, %v4402_v22  ;;  %v3890_v29 = vmul.f32 0.5, %v8272_v16 }
 0x46a   : > { %v4595_v48 = vmul.f32 %v5943_v42, %v4435_v40 }
 0x46b   : > { %v4594_v31 = vmul.f32 %v5945_v51, %v4434_v2 }
 0x46c   : > { %v4627_v39 = vsub.f32 1.0, %v4595_v48 }
 0x46d   : > { %v4626_v1 = vsub.f32 1.0, %v4594_v31 }
 0x46e   : > { %v4659_v0 = vmul.f32 %v4627_v39, %v3987_v34 }
 0x46f   : > { %v4658_v26 = vmul.f32 %v4626_v1, %v3986_v24 }
 0x470   : > { %v5680_v5 = vpop.f32.mrb[60].mxu1  ;;  %v4691_v61 = vadd.f32 1.0, %v4659_v0 }
 0x471   : > { %v8292_v17 = vadd.f32 %v5680_v5, %v8141_v35  ;;  %v3781_v21 = vpop.f32.mrb[61].mxu1  ;;  %v4690_v36 = vadd.f32 1.0, %v4658_v26 }
 0x472   : > { %v8295_v46 = vadd.f32 %v8141_v35, %v3781_v21  ;;  %v4723_v15 = vmul.f32 %v4691_v61, %v3891_v62 }
 0x473   : > { %v8298_v8 = vmul.f32 0.70710677, %v8292_v17  ;;  %v4722_v49 = vmul.f32 %v4690_v36, %v3890_v29 }
 0x474   : > { %v8301_v19 = vmul.f32 0.70710677, %v8295_v46  ;;  %v8356_v22 = vmul.f32 0.5, %v8295_v46 }
 0x475   : > { %v4021_v30 = vand.u32 2147483647, %v8298_v8  ;;  %5725 = vmatprep.mubr.msk.f32.mxu0 %vm535_vm0, %v4722_v49  ;;  %vm3957_vm1 = vcmp.ge.f32.partialorder %v8298_v8, 0.0 }
 0x476   : > { %v4020_v32 = vand.u32 2147483647, %v8301_v19  ;;  %5726 = vmatmul.mubr.msk.f32.gmra.mrb[58].mxu0 %vm535_vm0, %v4723_v15  ;;  %vm3956_vm2 = vcmp.ge.f32.partialorder %v8301_v19, 0.0 }
 0x477   : > { %v4053_v33 = vmul.f32 0.3275911, %v4021_v30  ;;  %v4469_v50 = vsub.f32 0.0, %v4021_v30  ;;  %v3988_v62 = vsel %vm3956_vm2, 1.0, %v9010_v18 }
 0x478   : > { %v4052_v58 = vmul.f32 0.3275911, %v4020_v32  ;;  %v5683_v12 = vpop.f32.mrb[62].mxu1  ;;  %v4468_v59 = vsub.f32 0.0, %v4020_v32 }
 0x479   : > { %v4085_v13 = vadd.f32 1.0, %v4053_v33  ;;  %v8306_v53 = vadd.f32 %v5683_v12, %v8141_v35  ;;  %v3791_v9 = vpop.f32.mrb[63].mxu1  ;;  %v4501_v47 = vmul.f32 %v4469_v50, %v4021_v30 }
 0x47a   : > { %v4084_v10 = vadd.f32 1.0, %v4052_v58  ;;  %v8309_v20 = vadd.f32 %v8141_v35, %v3791_v9  ;;  %v4500_v27 = vmul.f32 %v4468_v59, %v4020_v32  ;;  %v8353_v58 = vmul.f32 0.5, %v8292_v17 }
 0x47b   : > { %5946 = vrcp.f32 %v4085_v13  ;;  %v8313_v41 = vmul.f32 0.70710677, %v8306_v53  ;;  %v4546_v45 = vmul.f32 1.442695, %v4501_v47  ;;  %v8361_v9 = vsel %vm3957_vm1, 1.0, %v9010_v18 }
 0x47c   : > { %5948 = vrcp.f32 %v4084_v10  ;;  %v8317_v23 = vmul.f32 0.70710677, %v8309_v20  ;;  %v4544_v30 = vmul.f32 1.442695, %v4500_v27 }
 0x47d   : > { %v4023_v52 = vand.u32 2147483647, %v8313_v41  ;;  %vm3959_vm3 = vcmp.ge.f32.partialorder %v8313_v41, 0.0  ;;  %v3894_v41 = vmul.f32 0.5, %v8309_v20 }
 0x47e   : > { %v4022_v4 = vand.u32 2147483647, %v8317_v23  ;;  %vm3958_vm4 = vcmp.ge.f32.partialorder %v8317_v23, 0.0 }
 0x47f   : > { %v4055_v57 = vmul.f32 0.3275911, %v4023_v52  ;;  %v4471_v28 = vsub.f32 0.0, %v4023_v52 }
 0x480   : > { %v4054_v37 = vmul.f32 0.3275911, %v4022_v4  ;;  %v4470_v33 = vsub.f32 0.0, %v4022_v4 }
 0x481   : > { %v4087_v25 = vadd.f32 1.0, %v4055_v57  ;;  %v4503_v17 = vmul.f32 %v4471_v28, %v4023_v52  ;;  %v8398_v28 = vmul.f32 0.5, %v8306_v53 }
 0x482   : > { %v4086_v11 = vadd.f32 1.0, %v4054_v37  ;;  %v4502_v8 = vmul.f32 %v4470_v33, %v4022_v4 }
 0x483   : > { %5950 = vrcp.f32 %v4087_v25  ;;  %v4550_v50 = vmul.f32 1.442695, %v4503_v17 }
 0x484   : > { %5952 = vrcp.f32 %v4086_v11  ;;  %v4548_v29 = vmul.f32 1.442695, %v4502_v8 }
 0x485   : > { %v8325_v56 = vpop.eup %5946  ;;  %5954 = vpow2.f32 %v4546_v45 }
 0x486   : > { %v5686_v63 = vpop.f32.mrb[64].mxu1  ;;  %v8327_v44 = vpop.eup %5948  ;;  %v4181_v3 = vmul.f32 1.0614054, %v8325_v56  ;;  %5956 = vpow2.f32 %v4544_v30 }
 0x487   : > { %v8331_v54 = vadd.f32 %v5686_v63, %v8141_v35  ;;  %v3801_v16 = vpop.f32.mrb[65].mxu1  ;;  %v4180_v5 = vmul.f32 1.0614054, %v8327_v44 }
 0x488   : > { %v8335_v60 = vadd.f32 %v8141_v35, %v3801_v16  ;;  %v4213_v43 = vadd.f32 -1.4531521, %v4181_v3 }
 0x489   : > { %v8340_v21 = vmul.f32 0.70710677, %v8331_v54  ;;  %v4212_v55 = vadd.f32 -1.4531521, %v4180_v5 }
 0x48a   : > { %v8344_v38 = vmul.f32 0.70710677, %v8335_v60  ;;  %v4245_v6 = vmul.f32 %v8325_v56, %v4213_v43 }
 0x48b   : > { %v4025_v32 = vand.u32 2147483647, %v8340_v21  ;;  %v4244_v14 = vmul.f32 %v8327_v44, %v4212_v55  ;;  %vm3961_vm5 = vcmp.ge.f32.partialorder %v8340_v21, 0.0 }
 0x48c   : > { %v8350_v7 = vand.u32 2147483647, %v8344_v38  ;;  %v4277_v12 = vadd.f32 1.4214138, %v4245_v6  ;;  %vm3960_vm6 = vcmp.ge.f32.partialorder %v8344_v38, 0.0  ;;  %v3897_v38 = vmul.f32 0.5, %v8331_v54 }
 0x48d   : > { %v4057_v13 = vmul.f32 0.3275911, %v4025_v32  ;;  %v4276_v40 = vadd.f32 1.4214138, %v4244_v14  ;;  %v8364_v42 = vpop.eup %5950  ;;  %v4473_v26 = vsub.f32 0.0, %v4025_v32 }
 0x48e   : > { %v4056_v10 = vmul.f32 0.3275911, %v8350_v7  ;;  %v4309_v2 = vmul.f32 %v8325_v56, %v4277_v12  ;;  %v8367_v48 = vpop.eup %5952  ;;  %v4183_v31 = vmul.f32 1.0614054, %v8364_v42  ;;  %v4472_v27 = vsub.f32 0.0, %v8350_v7 }
 0x48f   : > { %v4089_v51 = vadd.f32 1.0, %v4057_v13  ;;  %v4308_v46 = vmul.f32 %v8327_v44, %v4276_v40  ;;  %v4182_v0 = vmul.f32 1.0614054, %v8367_v48  ;;  %v4505_v3 = vmul.f32 %v4473_v26, %v4025_v32  ;;  %v5955_v43 = vpop.eup %5954 }
 0x490   : > { %v4088_v39 = vadd.f32 1.0, %v4056_v10  ;;  %v5689_v34 = vpop.f32.mrb[66].mxu1  ;;  %v4341_v1 = vadd.f32 -0.28449672, %v4309_v2  ;;  %v4215_v57 = vadd.f32 -1.4531521, %v4183_v31  ;;  %v5957_v6 = vpop.eup %5956  ;;  %v4504_v13 = vmul.f32 %v4472_v27, %v8350_v7 }
 0x491   : > { %5958 = vrcp.f32 %v4089_v51  ;;  %v4340_v24 = vadd.f32 -0.28449672, %v4308_v46  ;;  %v4214_v37 = vadd.f32 -1.4531521, %v4182_v0  ;;  %v8375_v61 = vadd.f32 %v5689_v34, %v8141_v35  ;;  %v3811_v4 = vpop.f32.mrb[67].mxu1 }
 0x492   : > { %5960 = vrcp.f32 %v4088_v39  ;;  %v4373_v52 = vmul.f32 %v8325_v56, %v4341_v1  ;;  %v4247_v25 = vmul.f32 %v8364_v42, %v4215_v57  ;;  %v8380_v36 = vadd.f32 %v8141_v35, %v3811_v4 }
 0x493   : > { %v4372_v59 = vmul.f32 %v8327_v44, %v4340_v24  ;;  %v4246_v49 = vmul.f32 %v8367_v48, %v4214_v37  ;;  %v8387_v47 = vmul.f32 0.70710677, %v8375_v61  ;;  %5962 = vpow2.f32 %v4550_v50 }
 0x494   : > { %v4405_v11 = vadd.f32 0.2548296, %v4373_v52  ;;  %v4279_v15 = vadd.f32 1.4214138, %v4247_v25  ;;  %5964 = vpow2.f32 %v4548_v29  ;;  %v8395_v55 = vmul.f32 0.70710677, %v8380_v36 }
 0x495   : > { %v4404_v63 = vadd.f32 0.2548296, %v4372_v59  ;;  %v4278_v35 = vadd.f32 1.4214138, %v4246_v49  ;;  %v4027_v5 = vand.u32 2147483647, %v8387_v47 }
 0x496   : > { %v4437_v16 = vmul.f32 %v8325_v56, %v4405_v11  ;;  %v4311_v45 = vmul.f32 %v8364_v42, %v4279_v15  ;;  %v8410_v34 = vand.u32 2147483647, %v8395_v55  ;;  %v4552_v52 = vmul.f32 1.442695, %v4504_v13 }
 0x497   : > { %v4436_v19 = vmul.f32 %v8327_v44, %v4404_v63  ;;  %v4310_v56 = vmul.f32 %v8367_v48, %v4278_v35  ;;  %v4059_v32 = vmul.f32 0.3275911, %v4027_v5  ;;  %v4554_v44 = vmul.f32 1.442695, %v4505_v3 }
 0x498   : > { %v4597_v30 = vmul.f32 %v5955_v43, %v4437_v16  ;;  %v4343_v12 = vadd.f32 -0.28449672, %v4311_v45  ;;  %v4475_v46 = vsub.f32 0.0, %v4027_v5  ;;  %v4058_v63 = vmul.f32 0.3275911, %v8410_v34 }
 0x499   : > { %v5692_v14 = vpop.f32.mrb[68].mxu1  ;;  %v4596_v33 = vmul.f32 %v5957_v6, %v4436_v19  ;;  %v4342_v17 = vadd.f32 -0.28449672, %v4310_v56  ;;  %v4091_v51 = vadd.f32 1.0, %v4059_v32  ;;  %v3991_v56 = vsel %vm3959_vm3, 1.0, %v9010_v18 }
 0x49a   : > { %v3821_v40 = vpop.f32.mrb[69].mxu1  ;;  %v4629_v2 = vsub.f32 1.0, %v4597_v30  ;;  %v4375_v8 = vmul.f32 %v8364_v42, %v4343_v12  ;;  %v4090_v6 = vadd.f32 1.0, %v4058_v63  ;;  %v3990_v12 = vsel %vm3958_vm4, 1.0, %v9010_v18 }
 0x49b   : > { %v8403_v10 = vpop.eup %5958  ;;  %v4628_v31 = vsub.f32 1.0, %v4596_v33  ;;  %v4374_v7 = vmul.f32 %v8367_v48, %v4342_v17  ;;  %5966 = vrcp.f32 %v4091_v51  ;;  %vm3963_vm7 = vcmp.ge.f32.partialorder %v8387_v47, 0.0 }
 0x49c   : > { %v8405_v53 = vpop.eup %5960  ;;  %v4185_v39 = vmul.f32 1.0614054, %v8403_v10  ;;  %v4661_v1 = vmul.f32 %v4629_v2, %v8361_v9  ;;  %v4407_v57 = vadd.f32 0.2548296, %v4375_v8  ;;  %5968 = vpow2.f32 %v4554_v44 }
 0x49d   : > { %v4184_v0 = vmul.f32 1.0614054, %v8405_v53  ;;  %v4660_v24 = vmul.f32 %v4628_v31, %v3988_v62  ;;  %v4406_v37 = vadd.f32 0.2548296, %v4374_v7  ;;  %v5963_v9 = vpop.eup %5962  ;;  %v4507_v62 = vmul.f32 %v4475_v46, %v4027_v5 }
 0x49e   : > { %v4217_v26 = vadd.f32 -1.4531521, %v4185_v39  ;;  %v4693_v50 = vadd.f32 1.0, %v4661_v1  ;;  %v4439_v25 = vmul.f32 %v8364_v42, %v4407_v57  ;;  %v5965_v3 = vpop.eup %5964  ;;  %5970 = vpow2.f32 %v4552_v52 }
 0x49f   : > { %v4216_v4 = vadd.f32 -1.4531521, %v4184_v0  ;;  %v4692_v59 = vadd.f32 1.0, %v4660_v24  ;;  %v4438_v11 = vmul.f32 %v8367_v48, %v4406_v37  ;;  %v8428_v48 = vld [vmem:[%s8901_s12] ss:$0 sm:$0xff]  ;;  %5972 = vrcp.f32 %v4090_v6 }
 0x4a0   : > { %v4249_v29 = vmul.f32 %v8403_v10, %v4217_v26  ;;  %v4725_v27 = vmul.f32 %v4693_v50, %v8353_v58  ;;  %v4599_v35 = vmul.f32 %v5963_v9, %v4439_v25  ;;  %v8431_v5 = vadd.f32 %v8428_v48, %v5692_v14 }
 0x4a1   : > { %v4248_v49 = vmul.f32 %v8405_v53, %v4216_v4  ;;  %v5695_v15 = vpop.f32.mrb[70].mxu1  ;;  %v4724_v16 = vmul.f32 %v4692_v59, %v8356_v22  ;;  %v4598_v19 = vmul.f32 %v5965_v3, %v4438_v11  ;;  %v8435_v22 = vadd.f32 %v8428_v48, %v3821_v40 }
 0x4a2   : > { %v4281_v43 = vadd.f32 1.4214138, %v4249_v29  ;;  %v8423_v42 = vpop.f32.mrb[71].mxu1  ;;  %v4631_v30 = vsub.f32 1.0, %v4599_v35  ;;  %v8447_v13 = vmul.f32 0.70710677, %v8431_v5  ;;  %v8471_v63 = vadd.f32 %v8428_v48, %v5695_v15 }
 0x4a3   : > { %v4280_v45 = vadd.f32 1.4214138, %v4248_v49  ;;  %5728 = vmatprep.mubr.msk.f32.mxu0 %vm535_vm0, %v4724_v16  ;;  %v4630_v32 = vsub.f32 1.0, %v4598_v19  ;;  %v4558_v51 = vmul.f32 1.442695, %v4507_v62  ;;  %v4474_v7 = vsub.f32 0.0, %v8410_v34 }
 0x4a4   : > { %v4313_v58 = vmul.f32 %v8403_v10, %v4281_v43  ;;  %5729 = vmatmul.mubr.msk.f32.gmra.mrb[60].mxu0 %vm535_vm0, %v4725_v27  ;;  %v4663_v14 = vmul.f32 %v4631_v30, %v3991_v56  ;;  %v8455_v39 = vmul.f32 0.70710677, %v8435_v22  ;;  %v4029_v0 = vand.u32 2147483647, %v8447_v13 }
 0x4a5   : > { %v4312_v33 = vmul.f32 %v8405_v53, %v4280_v45  ;;  %v8449_v40 = vpop.eup %5966  ;;  %v4662_v2 = vmul.f32 %v4630_v32, %v3990_v12  ;;  %v4506_v49 = vmul.f32 %v4474_v7, %v8410_v34  ;;  %5974 = vpow2.f32 %v4558_v51 }
 0x4a6   : > { %v4345_v44 = vadd.f32 -0.28449672, %v4313_v58  ;;  %v4695_v46 = vadd.f32 1.0, %v4663_v14  ;;  %v4187_v8 = vmul.f32 1.0614054, %v8449_v40  ;;  %v5969_v24 = vpop.eup %5968  ;;  %v3992_v34 = vsel %vm3960_vm6, 1.0, %v9010_v18 }
 0x4a7   : > { %v4344_v17 = vadd.f32 -0.28449672, %v4312_v33  ;;  %v4694_v23 = vadd.f32 1.0, %v4662_v2  ;;  %v4061_v37 = vmul.f32 0.3275911, %v4029_v0  ;;  %v4477_v58 = vsub.f32 0.0, %v4029_v0 }
 0x4a8   : > { %v4377_v31 = vmul.f32 %v8403_v10, %v4345_v44  ;;  %v4219_v57 = vadd.f32 -1.4531521, %v4187_v8  ;;  %v4727_v59 = vmul.f32 %v4695_v46, %v8398_v28  ;;  %v4028_v9 = vand.u32 2147483647, %v8455_v39  ;;  %v5971_v3 = vpop.eup %5970 }
 0x4a9   : > { %v4376_v1 = vmul.f32 %v8405_v53, %v4344_v17  ;;  %v4726_v52 = vmul.f32 %v4694_v23, %v3894_v41  ;;  %v4093_v62 = vadd.f32 1.0, %v4061_v37  ;;  %v4556_v30 = vmul.f32 1.442695, %v4506_v49 }
 0x4aa   : > { %v4409_v20 = vadd.f32 0.2548296, %v4377_v31  ;;  %v5698_v26 = vpop.f32.mrb[72].mxu1  ;;  %v4251_v29 = vmul.f32 %v8449_v40, %v4219_v57  ;;  %v4060_v28 = vmul.f32 0.3275911, %v4028_v9  ;;  %v4476_v12 = vsub.f32 0.0, %v4028_v9 }
 0x4ab   : > { %v4408_v50 = vadd.f32 0.2548296, %v4376_v1  ;;  %v8462_v4 = vpop.f32.mrb[73].mxu1  ;;  %5731 = vmatprep.mubr.msk.f32.mxu0 %vm535_vm0, %v4726_v52  ;;  %5976 = vrcp.f32 %v4093_v62  ;;  %v8486_v56 = vmul.f32 0.70710677, %v8471_v63  ;;  %v3896_v2 = vmul.f32 0.5, %v8335_v60 }
 0x4ac   : > { %v4441_v25 = vmul.f32 %v8403_v10, %v4409_v20  ;;  %v4283_v16 = vadd.f32 1.4214138, %v4251_v29  ;;  %5732 = vmatmul.mubr.msk.f32.gmra.mrb[62].mxu0 %vm535_vm0, %v4727_v59  ;;  %v8475_v10 = vpop.eup %5972  ;;  %v4092_v45 = vadd.f32 1.0, %v4060_v28  ;;  %v4509_v7 = vmul.f32 %v4477_v58, %v4029_v0 }
 0x4ad   : > { %v4440_v11 = vmul.f32 %v8405_v53, %v4408_v50  ;;  %v3993_v53 = vsel %vm3961_vm5, 1.0, %v9010_v18  ;;  %v4186_v19 = vmul.f32 1.0614054, %v8475_v10  ;;  %v8490_v44 = vand.u32 2147483647, %v8486_v56 }
 0x4ae   : > { %v4601_v27 = vmul.f32 %v5969_v24, %v4441_v25  ;;  %v4315_v43 = vmul.f32 %v8449_v40, %v4283_v16  ;;  %5978 = vrcp.f32 %v4092_v45  ;;  %v8503_v60 = vadd.f32 %v8428_v48, %v8423_v42 }
 0x4af   : > { %v4600_v15 = vmul.f32 %v5971_v3, %v4440_v11  ;;  %v4218_v33 = vadd.f32 -1.4531521, %v4186_v19  ;;  %5980 = vpow2.f32 %v4556_v30  ;;  %v4063_v54 = vmul.f32 0.3275911, %v8490_v44  ;;  %v5975_v50 = vpop.eup %5974 }
 0x4b0   : > { %v4633_v35 = vsub.f32 1.0, %v4601_v27  ;;  %v4347_v32 = vadd.f32 -0.28449672, %v4315_v43  ;;  %v4508_v20 = vmul.f32 %v4476_v12, %v4028_v9  ;;  %v8506_v52 = vadd.f32 %v8428_v48, %v5698_v26 }
 0x4b1   : > { %v4632_v6 = vsub.f32 1.0, %v4600_v15  ;;  %v4250_v51 = vmul.f32 %v8475_v10, %v4218_v33  ;;  %v4095_v57 = vadd.f32 1.0, %v4063_v54  ;;  %v8511_v29 = vmul.f32 0.70710677, %v8503_v60 }
 0x4b2   : > { %v4665_v21 = vmul.f32 %v4633_v35, %v3993_v53  ;;  %v4379_v17 = vmul.f32 %v8449_v40, %v4347_v32  ;;  %v8516_v42 = vmul.f32 0.5, %v8375_v61  ;;  %v8521_v11 = vmul.f32 0.70710677, %v8506_v52 }
 0x4b3   : > { %v4664_v14 = vmul.f32 %v4632_v6, %v3992_v34  ;;  %v4282_v1 = vadd.f32 1.4214138, %v4250_v51  ;;  %5982 = vrcp.f32 %v4095_v57  ;;  %v8528_v62 = vmul.f32 0.5, %v8380_v36 }
 0x4b4   : > { %v4697_v41 = vadd.f32 1.0, %v4665_v21  ;;  %v8495_v46 = vpop.f32.mrb[74].mxu1  ;;  %v4411_v23 = vadd.f32 0.2548296, %v4379_v17  ;;  %v4030_v61 = vand.u32 2147483647, %v8511_v29  ;;  %v8547_v32 = vadd.f32 %v8428_v48, %v8462_v4 }
 0x4b5   : > { %v4696_v31 = vadd.f32 1.0, %v4664_v14  ;;  %v8499_v8 = vpop.f32.mrb[75].mxu1  ;;  %v4314_v25 = vmul.f32 %v8475_v10, %v4282_v1  ;;  %v8513_v0 = vpop.eup %5976  ;;  %v4562_v28 = vmul.f32 1.442695, %v4509_v7  ;;  %v4560_v53 = vmul.f32 1.442695, %v4508_v20 }
 0x4b6   : > { %v4729_v37 = vmul.f32 %v4697_v41, %v3897_v38  ;;  %v4443_v59 = vmul.f32 %v8449_v40, %v4411_v23  ;;  %v4189_v26 = vmul.f32 1.0614054, %v8513_v0  ;;  %v3995_v40 = vsel %vm3963_vm7, 1.0, %v9010_v18 }
 0x4b7   : > { %v4728_v24 = vmul.f32 %v4696_v31, %v3896_v2  ;;  %v4346_v9 = vadd.f32 -0.28449672, %v4314_v25  ;;  %vm3962_vm8 = vcmp.ge.f32.partialorder %v8395_v55, 0.0  ;;  %v4062_v15 = vmul.f32 0.3275911, %v4030_v61 }
 0x4b8   : > { %v4603_v49 = vmul.f32 %v5975_v50, %v4443_v59  ;;  %v8531_v3 = vpop.eup %5978  ;;  %v4221_v16 = vadd.f32 -1.4531521, %v4189_v26  ;;  %v4479_v43 = vsub.f32 0.0, %v8490_v44  ;;  %v8541_v19 = vand.u32 2147483647, %v8521_v11 }
 0x4b9   : > { %5734 = vmatprep.mubr.msk.f32.mxu0 %vm535_vm0, %v4728_v24  ;;  %v4378_v27 = vmul.f32 %v8475_v10, %v4346_v9  ;;  %v4188_v34 = vmul.f32 1.0614054, %v8531_v3  ;;  %v5981_v6 = vpop.eup %5980  ;;  %v4094_v21 = vadd.f32 1.0, %v4062_v15  ;;  %5984 = vpow2.f32 %v4562_v28 }
 0x4ba   : > { %5735 = vmatmul.mubr.msk.f32.gmra.mrb[64].mxu0 %vm535_vm0, %v4729_v37  ;;  %v4253_v36 = vmul.f32 %v8513_v0, %v4221_v16  ;;  %v4635_v30 = vsub.f32 1.0, %v4603_v49  ;;  %v4065_v14 = vmul.f32 0.3275911, %v8541_v19  ;;  %v3994_v12 = vsel %vm3962_vm8, 1.0, %v9010_v18 }
 0x4bb   : > { %v4410_v35 = vadd.f32 0.2548296, %v4378_v27  ;;  %v4220_v58 = vadd.f32 -1.4531521, %v4188_v34  ;;  %vm3965_vm9 = vcmp.ge.f32.partialorder %v8447_v13, 0.0  ;;  %5986 = vrcp.f32 %v4094_v21 }
 0x4bc   : > { %v4285_v38 = vadd.f32 1.4214138, %v4253_v36  ;;  %v4511_v4 = vmul.f32 %v4479_v43, %v8490_v44  ;;  %v4097_v51 = vadd.f32 1.0, %v4065_v14  ;;  %v4667_v31 = vmul.f32 %v4635_v30, %v3995_v40 }
 0x4bd   : > { %v8536_v47 = vpop.f32.mrb[76].mxu1  ;;  %v4442_v33 = vmul.f32 %v8475_v10, %v4410_v35  ;;  %v4252_v41 = vmul.f32 %v8531_v3, %v4220_v58  ;;  %v8558_v10 = vpop.eup %5982  ;;  %5988 = vpow2.f32 %v4560_v53  ;;  %v8561_v23 = vmul.f32 0.70710677, %v8547_v32 }
 0x4be   : > { %v8543_v45 = vpop.f32.mrb[77].mxu1  ;;  %v4317_v17 = vmul.f32 %v8513_v0, %v4285_v38  ;;  %v4191_v7 = vmul.f32 1.0614054, %v8558_v10  ;;  %5990 = vrcp.f32 %v4097_v51  ;;  %v8567_v20 = vmul.f32 0.5, %v8431_v5 }
 0x4bf   : > { %v4602_v2 = vmul.f32 %v5981_v6, %v4442_v33  ;;  %v4284_v54 = vadd.f32 1.4214138, %v4252_v41  ;;  %v4478_v57 = vsub.f32 0.0, %v4030_v61  ;;  %v8571_v50 = vand.u32 2147483647, %v8561_v23 }
 0x4c0   : > { %v4349_v1 = vadd.f32 -0.28449672, %v4317_v17  ;;  %v4223_v9 = vadd.f32 -1.4531521, %v4191_v7  ;;  %v4566_v26 = vmul.f32 1.442695, %v4511_v4  ;;  %v8583_v34 = vadd.f32 %v8428_v48, %v8495_v46 }
 0x4c1   : > { %v4634_v55 = vsub.f32 1.0, %v4602_v2  ;;  %v4316_v44 = vmul.f32 %v8531_v3, %v4284_v54  ;;  %v4699_v40 = vadd.f32 1.0, %v4667_v31  ;;  %v3997_v49 = vsel %vm3965_vm9, 1.0, %v9010_v18 }
 0x4c2   : > { %v4381_v25 = vmul.f32 %v8513_v0, %v4349_v1  ;;  %v4064_v27 = vmul.f32 0.3275911, %v8571_v50  ;;  %v4255_v53 = vmul.f32 %v8558_v10, %v4223_v9  ;;  %vm3964_vm10 = vcmp.ge.f32.partialorder %v8455_v39, 0.0 }
 0x4c3   : > { %v4666_v59 = vmul.f32 %v4634_v55, %v3994_v12  ;;  %v4348_v5 = vadd.f32 -0.28449672, %v4316_v44  ;;  %v4510_v35 = vmul.f32 %v4478_v57, %v4030_v61  ;;  %v5985_v43 = vpop.eup %5984  ;;  %v4481_v58 = vsub.f32 0.0, %v8541_v19 }
 0x4c4   : > { %v8564_v24 = vpop.f32.mrb[78].mxu1  ;;  %v4413_v28 = vadd.f32 0.2548296, %v4381_v25  ;;  %v4096_v36 = vadd.f32 1.0, %v4064_v27  ;;  %v4287_v30 = vadd.f32 1.4214138, %v4255_v53  ;;  %v4731_v33 = vmul.f32 %v4699_v40, %v8516_v42 }
 0x4c5   : > { %v8573_v37 = vpop.f32.mrb[79].mxu1  ;;  %v4698_v16 = vadd.f32 1.0, %v4666_v59  ;;  %v4380_v15 = vmul.f32 %v8531_v3, %v4348_v5  ;;  %v8590_v21 = vpop.eup %5986  ;;  %v8594_v38 = vmul.f32 0.70710677, %v8583_v34  ;;  %v4564_v41 = vmul.f32 1.442695, %v4510_v35 }
 0x4c6   : > { %v4445_v6 = vmul.f32 %v8513_v0, %v4413_v28  ;;  %5992 = vrcp.f32 %v4096_v36  ;;  %v4319_v61 = vmul.f32 %v8558_v10, %v4287_v30  ;;  %v8605_v42 = vadd.f32 %v8428_v48, %v8499_v8 }
 0x4c7   : > { %v4730_v13 = vmul.f32 %v4698_v16, %v8528_v62  ;;  %v4412_v46 = vadd.f32 0.2548296, %v4380_v15  ;;  %5994 = vpow2.f32 %v4566_v26  ;;  %v4190_v62 = vmul.f32 1.0614054, %v8590_v21  ;;  %v5989_v0 = vpop.eup %5988 }
 0x4c8   : > { %v4605_v14 = vmul.f32 %v5985_v43, %v4445_v6  ;;  %v8601_v2 = vand.u32 2147483647, %v8594_v38  ;;  %v8608_v17 = vpop.eup %5990  ;;  %v4351_v51 = vadd.f32 -0.28449672, %v4319_v61  ;;  %v4513_v54 = vmul.f32 %v4481_v58, %v8541_v19 }
 0x4c9   : > { %5737 = vmatprep.mubr.msk.f32.mxu0 %vm535_vm0, %v4730_v13  ;;  %v4444_v12 = vmul.f32 %v8531_v3, %v4412_v46  ;;  %v4222_v31 = vadd.f32 -1.4531521, %v4190_v62  ;;  %v3996_v3 = vsel %vm3964_vm10, 1.0, %v9010_v18  ;;  %v4193_v1 = vmul.f32 1.0614054, %v8608_v17 }
 0x4ca   : > { %5738 = vmatmul.mubr.msk.f32.gmra.mrb[66].mxu0 %vm535_vm0, %v4731_v33  ;;  %v4637_v4 = vsub.f32 1.0, %v4605_v14  ;;  %v4067_v7 = vmul.f32 0.3275911, %v8601_v2  ;;  %v4383_v44 = vmul.f32 %v8558_v10, %v4351_v51  ;;  %v4480_v59 = vsub.f32 0.0, %v8571_v50 }
 0x4cb   : > { %v4604_v55 = vmul.f32 %v5989_v0, %v4444_v12  ;;  %v4254_v57 = vmul.f32 %v8590_v21, %v4222_v31  ;;  %v4225_v9 = vadd.f32 -1.4531521, %v4193_v1  ;;  %v8620_v19 = vmul.f32 0.70710677, %v8605_v42 }
 0x4cc   : > { %v4669_v8 = vmul.f32 %v4637_v4, %v3997_v49  ;;  %v4099_v26 = vadd.f32 1.0, %v4067_v7  ;;  %v4415_v39 = vadd.f32 0.2548296, %v4383_v44  ;;  %5996 = vpow2.f32 %v4564_v41 }
 0x4cd   : > { %v4636_v25 = vsub.f32 1.0, %v4604_v55  ;;  %v4286_v40 = vadd.f32 1.4214138, %v4254_v57  ;;  %v4570_v5 = vmul.f32 1.442695, %v4513_v54  ;;  %v3900_v27 = vmul.f32 0.5, %v8435_v22 }
 0x4ce   : > { %v4257_v49 = vmul.f32 %v8608_v17, %v4225_v9  ;;  %5998 = vrcp.f32 %v4099_v26  ;;  %v4701_v28 = vadd.f32 1.0, %v4669_v8  ;;  %v4447_v53 = vmul.f32 %v8558_v10, %v4415_v39 }
 0x4cf   : > { %v4668_v16 = vmul.f32 %v4636_v25, %v3996_v3  ;;  %v4318_v15 = vmul.f32 %v8590_v21, %v4286_v40  ;;  %v4512_v35 = vmul.f32 %v4480_v59, %v8571_v50  ;;  %vm3967_vm11 = vcmp.ge.f32.partialorder %v8486_v56, 0.0 }
 0x4d0   : > { %v8627_v36 = vpop.eup %5992  ;;  %v4289_v13 = vadd.f32 1.4214138, %v4257_v49  ;;  %v8631_v6 = vand.u32 2147483647, %v8620_v19  ;;  %6000 = vpow2.f32 %v4570_v5  ;;  %v8636_v10 = vadd.f32 %v8428_v48, %v8536_v47 }
 0x4d1   : > { %v4700_v43 = vadd.f32 1.0, %v4668_v16  ;;  %v5995_v22 = vpop.eup %5994  ;;  %v4350_v30 = vadd.f32 -0.28449672, %v4318_v15  ;;  %v4192_v58 = vmul.f32 1.0614054, %v8627_v36  ;;  %v4733_v61 = vmul.f32 %v4701_v28, %v8567_v20 }
 0x4d2   : > { %v4607_v50 = vmul.f32 %v5995_v22, %v4447_v53  ;;  %v4321_v46 = vmul.f32 %v8608_v17, %v4289_v13  ;;  %v4066_v14 = vmul.f32 0.3275911, %v8631_v6  ;;  %v4568_v12 = vmul.f32 1.442695, %v4512_v35 }
 0x4d3   : > { %v4732_v33 = vmul.f32 %v4700_v43, %v3900_v27  ;;  %v4382_v62 = vmul.f32 %v8590_v21, %v4350_v30  ;;  %v4224_v0 = vadd.f32 -1.4531521, %v4192_v58  ;;  %v4483_v4 = vsub.f32 0.0, %v8601_v2 }
 0x4d4   : > { %v4353_v41 = vadd.f32 -0.28449672, %v4321_v46  ;;  %v4098_v51 = vadd.f32 1.0, %v4066_v14  ;;  %v8644_v31 = vmul.f32 0.70710677, %v8636_v10  ;;  %v3903_v47 = vmul.f32 0.5, %v8471_v63 }
 0x4d5   : > { %5740 = vmatprep.mubr.msk.f32.mxu0 %vm535_vm0, %v4732_v33  ;;  %v3999_v54 = vsel %vm3967_vm11, 1.0, %v9010_v18  ;;  %v4414_v20 = vadd.f32 0.2548296, %v4382_v62  ;;  %v4256_v3 = vmul.f32 %v8627_v36, %v4224_v0  ;;  %v4639_v55 = vsub.f32 1.0, %v4607_v50 }
 0x4d6   : > { %5741 = vmatmul.mubr.msk.f32.gmra.mrb[68].mxu0 %vm535_vm0, %v4733_v61  ;;  %v4385_v1 = vmul.f32 %v8608_v17, %v4353_v41  ;;  %6002 = vrcp.f32 %v4098_v51  ;;  %v8656_v7 = vadd.f32 %v8428_v48, %v8543_v45  ;;  %v5997_v8 = vpop.eup %5996  ;;  %v3902_v63 = vmul.f32 0.5, %v8503_v60 }
 0x4d7   : > { %vm3966_vm12 = vcmp.ge.f32.partialorder %v8511_v29, 0.0  ;;  %v4446_v56 = vmul.f32 %v8590_v21, %v4414_v20  ;;  %v4288_v44 = vadd.f32 1.4214138, %v4256_v3  ;;  %6004 = vpow2.f32 %v4568_v12 }
 0x4d8   : > { %v8661_v57 = vpop.eup %5998  ;;  %v4417_v59 = vadd.f32 0.2548296, %v4385_v1  ;;  %v4515_v25 = vmul.f32 %v4483_v4, %v8601_v2  ;;  %v8665_v9 = vand.u32 2147483647, %v8644_v31  ;;  %vm3969_vm13 = vcmp.ge.f32.partialorder %v8521_v11, 0.0 }
 0x4d9   : > { %v4606_v26 = vmul.f32 %v5997_v8, %v4446_v56  ;;  %v4320_v45 = vmul.f32 %v8627_v36, %v4288_v44  ;;  %v4195_v60 = vmul.f32 1.0614054, %v8661_v57  ;;  %v4671_v39 = vmul.f32 %v4639_v55, %v3999_v54 }
 0x4da   : > { %v4449_v21 = vmul.f32 %v8608_v17, %v4417_v59  ;;  %v4069_v40 = vmul.f32 0.3275911, %v8665_v9  ;;  %v8673_v5 = vmul.f32 0.70710677, %v8656_v7  ;;  %v6001_v27 = vpop.eup %6000  ;;  %v3998_v2 = vsel %vm3966_vm12, 1.0, %v9010_v18 }
 0x4db   : > { %v4638_v16 = vsub.f32 1.0, %v4606_v26  ;;  %v4352_v49 = vadd.f32 -0.28449672, %v4320_v45  ;;  %v4227_v28 = vadd.f32 -1.4531521, %v4195_v60  ;;  %v4482_v35 = vsub.f32 0.0, %v8631_v6 }
 0x4dc   : > { %v4609_v53 = vmul.f32 %v6001_v27, %v4449_v21  ;;  %v4574_v15 = vmul.f32 1.442695, %v4515_v25  ;;  %v4101_v43 = vadd.f32 1.0, %v4069_v40  ;;  %v4001_v17 = vsel %vm3969_vm13, 1.0, %v9010_v18 }
 0x4dd   : > { %v4670_v13 = vmul.f32 %v4638_v16, %v3998_v2  ;;  %v4384_v22 = vmul.f32 %v8627_v36, %v4352_v49  ;;  %v4259_v30 = vmul.f32 %v8661_v57, %v4227_v28  ;;  %v4703_v58 = vadd.f32 1.0, %v4671_v39 }
 0x4de   : > { %6006 = vrcp.f32 %v4101_v43  ;;  %v8685_v29 = vand.u32 2147483647, %v8673_v5  ;;  %v8689_v33 = vadd.f32 %v8428_v48, %v8564_v24  ;;  %vm3968_vm14 = vcmp.ge.f32.partialorder %v8561_v23, 0.0 }
 0x4df   : > { %v4702_v50 = vadd.f32 1.0, %v4670_v13  ;;  %v4416_v46 = vadd.f32 0.2548296, %v4384_v22  ;;  %v4291_v14 = vadd.f32 1.4214138, %v4259_v30  ;;  %v4641_v61 = vsub.f32 1.0, %v4609_v53 }
 0x4e0   : > { %v8692_v11 = vpop.eup %6002  ;;  %6008 = vpow2.f32 %v4574_v15  ;;  %v4514_v62 = vmul.f32 %v4482_v35, %v8631_v6  ;;  %v4068_v0 = vmul.f32 0.3275911, %v8685_v29  ;;  %v4735_v54 = vmul.f32 %v4703_v58, %v3903_v47 }
 0x4e1   : > { %v4734_v12 = vmul.f32 %v4702_v50, %v3902_v63  ;;  %v4448_v41 = vmul.f32 %v8627_v36, %v4416_v46  ;;  %v4323_v4 = vmul.f32 %v8661_v57, %v4291_v14  ;;  %v4194_v24 = vmul.f32 1.0614054, %v8692_v11  ;;  %v6005_v51 = vpop.eup %6004 }
 0x4e2   : > { %v4485_v20 = vsub.f32 0.0, %v8665_v9  ;;  %v4100_v3 = vadd.f32 1.0, %v4068_v0  ;;  %v8701_v55 = vmul.f32 0.70710677, %v8689_v33  ;;  %v8705_v63 = vadd.f32 %v8428_v48, %v8573_v37 }
 0x4e3   : > { %v4608_v1 = vmul.f32 %v6005_v51, %v4448_v41  ;;  %v4355_v8 = vadd.f32 -0.28449672, %v4323_v4  ;;  %v4226_v6 = vadd.f32 -1.4531521, %v4194_v24  ;;  %5743 = vmatprep.mubr.msk.f32.mxu0 %vm535_vm0, %v4734_v12  ;;  %v4673_v56 = vmul.f32 %v4641_v61, %v4001_v17 }
 0x4e4   : > { %v4572_v44 = vmul.f32 1.442695, %v4514_v62  ;;  %6010 = vrcp.f32 %v4100_v3  ;;  %5744 = vmatmul.mubr.msk.f32.gmra.mrb[70].mxu0 %vm535_vm0, %v4735_v54  ;;  %v3905_v59 = vmul.f32 0.5, %v8506_v52  ;;  %v3904_v60 = vmul.f32 0.5, %v8547_v32  ;;  %v8726_v32 = vld [vmem:[%s8903_s14] ss:$0 sm:$0xff] }
 0x4e5   : > { %v4640_v25 = vsub.f32 1.0, %v4608_v1  ;;  %v4387_v26 = vmul.f32 %v8661_v57, %v4355_v8  ;;  %v4258_v45 = vmul.f32 %v8692_v11, %v4226_v6  ;;  %v4000_v48 = vsel %vm3968_vm14, 1.0, %v9010_v18 }
 0x4e6   : > { %v5712_v36 = vpop.f32.mrb[48].mxu0  ;;  %v8717_v37 = vand.u32 2147483647, %v8701_v55  ;;  %v8720_v39 = vmul.f32 0.70710677, %v8705_v63  ;;  %v4517_v27 = vmul.f32 %v4485_v20, %v8665_v9  ;;  %v4705_v23 = vadd.f32 1.0, %v4673_v56 }
 0x4e7   : > { %v4914_v47 = vpop.f32.mrb[49].mxu0  ;;  %v4672_v21 = vmul.f32 %v4640_v25, %v4000_v48  ;;  %v4419_v40 = vadd.f32 0.2548296, %v4387_v26  ;;  %v4290_v52 = vadd.f32 1.4214138, %v4258_v45  ;;  %6012 = vpow2.f32 %v4572_v44 }
 0x4e8   : > { %v8728_v2 = vpop.eup %6006  ;;  %v4071_v16 = vmul.f32 0.3275911, %v8717_v37  ;;  %v8732_v49 = vand.u32 2147483647, %v8720_v39  ;;  %v4484_v43 = vsub.f32 0.0, %v8685_v29  ;;  %v4920_v22 = vadd.f32 %v5712_v36, %v8726_v32 }
 0x4e9   : > { %v4704_v28 = vadd.f32 1.0, %v4672_v21  ;;  %v4451_v53 = vmul.f32 %v8661_v57, %v4419_v40  ;;  %v4322_v9 = vmul.f32 %v8692_v11, %v4290_v52  ;;  %v4197_v15 = vmul.f32 1.0614054, %v8728_v2 }
 0x4ea   : > { %v6009_v35 = vpop.eup %6008  ;;  %v4103_v13 = vadd.f32 1.0, %v4071_v16  ;;  %v4070_v17 = vmul.f32 0.3275911, %v8732_v49  ;;  %v4578_v50 = vmul.f32 1.442695, %v4517_v27  ;;  %v4737_v46 = vmul.f32 %v4705_v23, %v3905_v59  ;;  %5075 = vst.msk [vmem:[%s8745_s30 + $0x8] sm:$0xff] %vm5073_vm15, %v4920_v22 }
 0x4eb   : > { %v4736_v30 = vmul.f32 %v4704_v28, %v3904_v60  ;;  %v4354_v57 = vadd.f32 -0.28449672, %v4322_v9  ;;  %v4229_v58 = vadd.f32 -1.4531521, %v4197_v15  ;;  %v4611_v14 = vmul.f32 %v6009_v35, %v4451_v53 }
 0x4ec   : > { %6014 = vrcp.f32 %v4103_v13  ;;  %v4102_v61 = vadd.f32 1.0, %v4070_v17  ;;  %vm3971_vm1 = vcmp.ge.f32.partialorder %v8594_v38, 0.0  ;;  %v4516_v41 = vmul.f32 %v4484_v43, %v8685_v29 }
 0x4ed   : > { %v4386_v62 = vmul.f32 %v8692_v11, %v4354_v57  ;;  %v4261_v0 = vmul.f32 %v8728_v2, %v4229_v58  ;;  %5746 = vmatprep.mubr.msk.f32.mxu0 %vm535_vm0, %v4736_v30  ;;  %v4915_v4 = vadd.f32 %v8726_v32, %v4914_v47  ;;  %6016 = vpow2.f32 %v4578_v50 }
 0x4ee   : > { %v8750_v12 = vpop.eup %6010  ;;  %5747 = vmatmul.mubr.msk.f32.gmra.mrb[72].mxu0 %vm535_vm0, %v4737_v46  ;;  %v4643_v20 = vsub.f32 1.0, %v4611_v14  ;;  %6018 = vrcp.f32 %v4102_v61  ;;  %v5715_v3 = vpop.f32.mrb[50].mxu0  ;;  %v4003_v38 = vsel %vm3971_vm1, 1.0, %v9010_v18  ;;  %v4576_v56 = vmul.f32 1.442695, %v4516_v41 }
 0x4ef   : > { %v4418_v24 = vadd.f32 0.2548296, %v4386_v62  ;;  %v4293_v51 = vadd.f32 1.4214138, %v4261_v0  ;;  %v4196_v54 = vmul.f32 1.0614054, %v8750_v12  ;;  %v4930_v47 = vadd.f32 %v5715_v3, %v8726_v32 }
 0x4f0   : > { %5074 = vst.msk [vmem:[%s8745_s30] sm:$0xff] %vm5073_vm15, %v4915_v4  ;;  %v4924_v6 = vpop.f32.mrb[51].mxu0  ;;  %v4487_v44 = vsub.f32 0.0, %v8717_v37  ;;  %vm3970_vm2 = vcmp.ge.f32.partialorder %v8620_v19, 0.0  ;;  %v4675_v60 = vmul.f32 %v4643_v20, %v4003_v38  ;;  %6020 = vpow2.f32 %v4576_v56 }
 0x4f1   : > { %v4450_v29 = vmul.f32 %v8692_v11, %v4418_v24  ;;  %v4325_v1 = vmul.f32 %v8728_v2, %v4293_v51  ;;  %v4228_v8 = vadd.f32 -1.4531521, %v4196_v54  ;;  %v6013_v36 = vpop.eup %6012  ;;  %v4925_v59 = vadd.f32 %v8726_v32, %v4924_v6  ;;  %5077 = vst.msk [vmem:[%s8745_s30 + $0x18] sm:$0xff] %vm5073_vm15, %v4930_v47 }
 0x4f2   : > { %v4002_v52 = vsel %vm3970_vm2, 1.0, %v9010_v18  ;;  %v4519_v27 = vmul.f32 %v4487_v44, %v8717_v37  ;;  %v4486_v19 = vsub.f32 0.0, %v8732_v49  ;;  %v4707_v9 = vadd.f32 1.0, %v4675_v60 }
 0x4f3   : > { %v4610_v25 = vmul.f32 %v6013_v36, %v4450_v29  ;;  %v4357_v26 = vadd.f32 -0.28449672, %v4325_v1  ;;  %v4260_v45 = vmul.f32 %v8750_v12, %v4228_v8  ;;  %5076 = vst.msk [vmem:[%s8745_s30 + $0x10] sm:$0xff] %vm5073_vm15, %v4925_v59  ;;  %v3906_v15 = vmul.f32 0.5, %v8605_v42 }
 0x4f4   : > { %v3907_v57 = vmul.f32 0.5, %v8583_v34  ;;  %v4582_v37 = vmul.f32 1.442695, %v4519_v27  ;;  %v4518_v58 = vmul.f32 %v4486_v19, %v8732_v49  ;;  %vm3973_vm3 = vcmp.ge.f32.partialorder %v8644_v31, 0.0 }
 0x4f5   : > { %v4642_v11 = vsub.f32 1.0, %v4610_v25  ;;  %v4389_v48 = vmul.f32 %v8728_v2, %v4357_v26  ;;  %v4292_v21 = vadd.f32 1.4214138, %v4260_v45  ;;  %v4005_v20 = vsel %vm3973_vm3, 1.0, %v9010_v18 }
 0x4f6   : > { %v6015_v40 = vpop.eup %6014  ;;  %v4739_v62 = vmul.f32 %v4707_v9, %v3907_v57  ;;  %6022 = vpow2.f32 %v4582_v37  ;;  %v4580_v24 = vmul.f32 1.442695, %v4518_v58  ;;  %vm3972_vm4 = vcmp.ge.f32.partialorder %v8673_v5, 0.0 }
 0x4f7   : > { %v4674_v23 = vmul.f32 %v4642_v11, %v4002_v52  ;;  %v4421_v16 = vadd.f32 0.2548296, %v4389_v48  ;;  %v4324_v28 = vmul.f32 %v8750_v12, %v4292_v21  ;;  %v4199_v53 = vmul.f32 1.0614054, %v6015_v40  ;;  %v6017_v35 = vpop.eup %6016 }
 0x4f8   : > { %v6019_v30 = vpop.eup %6018  ;;  %6024 = vpow2.f32 %v4580_v24  ;;  %v4004_v6 = vsel %vm3972_vm4, 1.0, %v9010_v18  ;;  %v3908_v25 = vmul.f32 0.5, %v8656_v7  ;;  %v3909_v48 = vmul.f32 0.5, %v8636_v10 }
 0x4f9   : > { %v4706_v43 = vadd.f32 1.0, %v4674_v23  ;;  %v4453_v13 = vmul.f32 %v8728_v2, %v4421_v16  ;;  %v4356_v17 = vadd.f32 -0.28449672, %v4324_v28  ;;  %v4231_v22 = vadd.f32 -1.4531521, %v4199_v53 }
 0x4fa   : > { %v4198_v0 = vmul.f32 1.0614054, %v6019_v30  ;;  %v6021_v51 = vpop.eup %6020  ;;  %vm3975_vm5 = vcmp.ge.f32.partialorder %v8701_v55, 0.0  ;;  %vm3974_vm6 = vcmp.ge.f32.partialorder %v8720_v39, 0.0 }
 0x4fb   : > { %v4738_v50 = vmul.f32 %v4706_v43, %v3906_v15  ;;  %v4613_v46 = vmul.f32 %v6017_v35, %v4453_v13  ;;  %v4388_v14 = vmul.f32 %v8750_v12, %v4356_v17  ;;  %v4263_v61 = vmul.f32 %v6015_v40, %v4231_v22 }
 0x4fc   : > { %v4230_v4 = vadd.f32 -1.4531521, %v4198_v0  ;;  %v4007_v28 = vsel %vm3975_vm5, 1.0, %v9010_v18  ;;  %v4006_v35 = vsel %vm3974_vm6, 1.0, %v9010_v18  ;;  %v3910_v13 = vmul.f32 0.5, %v8705_v63 }
 0x4fd   : > { %v4420_v42 = vadd.f32 0.2548296, %v4388_v14  ;;  %v4295_v41 = vadd.f32 1.4214138, %v4263_v61  ;;  %5749 = vmatprep.mubr.msk.f32.mxu0 %vm535_vm0, %v4738_v50  ;;  %v4645_v2 = vsub.f32 1.0, %v4613_v46  ;;  %v3911_v22 = vmul.f32 0.5, %v8689_v33 }
 0x4fe   : > { %5750 = vmatmul.mubr.msk.f32.gmra.mrb[74].mxu0 %vm535_vm0, %v4739_v62  ;;  %v4262_v54 = vmul.f32 %v6019_v30, %v4230_v4 }
 0x4ff   : > { %v4452_v34 = vmul.f32 %v8750_v12, %v4420_v42  ;;  %v4327_v49 = vmul.f32 %v6015_v40, %v4295_v41  ;;  %v4677_v29 = vmul.f32 %v4645_v2, %v4005_v20 }
 0x500   : > { %v4294_v1 = vadd.f32 1.4214138, %v4262_v54  ;;  %v6023_v11 = vpop.eup %6022 }
 0x501   : > { %v4612_v3 = vmul.f32 %v6021_v51, %v4452_v34  ;;  %v4359_v38 = vadd.f32 -0.28449672, %v4327_v49  ;;  %v4709_v44 = vadd.f32 1.0, %v4677_v29 }
 0x502   : > { %v4326_v36 = vmul.f32 %v6019_v30, %v4294_v1  ;;  %v6025_v10 = vpop.eup %6024 }
 0x503   : > { %v4644_v31 = vsub.f32 1.0, %v4612_v3  ;;  %v4391_v8 = vmul.f32 %v6015_v40, %v4359_v38  ;;  %v4741_v23 = vmul.f32 %v4709_v44, %v3909_v48 }
 0x504   : > { %v4358_v47 = vadd.f32 -0.28449672, %v4326_v36 }
 0x505   : > { %v4676_v56 = vmul.f32 %v4644_v31, %v4004_v6  ;;  %v4423_v12 = vadd.f32 0.2548296, %v4391_v8  ;;  %v5718_v59 = vpop.f32.mrb[52].mxu0 }
 0x506   : > { %v4940_v45 = vadd.f32 %v5718_v59, %v8726_v32  ;;  %v4934_v60 = vpop.f32.mrb[53].mxu0  ;;  %v4390_v21 = vmul.f32 %v6019_v30, %v4358_v47 }
 0x507   : > { %v4708_v5 = vadd.f32 1.0, %v4676_v56  ;;  %v4455_v26 = vmul.f32 %v6015_v40, %v4423_v12  ;;  %v4935_v52 = vadd.f32 %v8726_v32, %v4934_v60 }
 0x508   : > { %5079 = vst.msk [vmem:[%s8745_s30 + $0x28] sm:$0xff] %vm5073_vm15, %v4940_v45  ;;  %v4422_v16 = vadd.f32 0.2548296, %v4390_v21 }
 0x509   : > { %v4740_v27 = vmul.f32 %v4708_v5, %v3908_v25  ;;  %v4615_v19 = vmul.f32 %v6023_v11, %v4455_v26  ;;  %5078 = vst.msk [vmem:[%s8745_s30 + $0x20] sm:$0xff] %vm5073_vm15, %v4935_v52 }
 0x50a   : > { %v4454_v40 = vmul.f32 %v6019_v30, %v4422_v16 }
 0x50b   : > { %v4647_v7 = vsub.f32 1.0, %v4615_v19  ;;  %5752 = vmatprep.mubr.msk.f32.mxu0 %vm535_vm0, %v4740_v27 }
 0x50c   : > { %5753 = vmatmul.mubr.msk.f32.gmra.mrb[76].mxu0 %vm535_vm0, %v4741_v23  ;;  %v4614_v53 = vmul.f32 %v6025_v10, %v4454_v40 }
 0x50d   : > { %v4679_v9 = vmul.f32 %v4647_v7, %v4007_v28 }
 0x50e   : > { %v4646_v15 = vsub.f32 1.0, %v4614_v53 }
 0x50f   : > { %v4711_v55 = vadd.f32 1.0, %v4679_v9 }
 0x510   : > { %v4678_v43 = vmul.f32 %v4646_v15, %v4006_v35 }
 0x511   : > { %v4743_v57 = vmul.f32 %v4711_v55, %v3911_v22 }
 0x512   : > { %v4710_v17 = vadd.f32 1.0, %v4678_v43 }
 0x514   : > { %v4742_v30 = vmul.f32 %v4710_v17, %v3910_v13 }
 0x516   : > { %5755 = vmatprep.mubr.msk.f32.mxu0 %vm535_vm0, %v4742_v30 }
 0x517   : > { %5756 = vmatmul.mubr.msk.f32.gmra.mrb[78].mxu0 %vm535_vm0, %v4743_v57 }
 0x519   : > { %v5721_v39 = vpop.f32.mrb[54].mxu0 }
 0x51a   : > { %v4950_v37 = vadd.f32 %v5721_v39, %v8726_v32  ;;  %v4944_v18 = vpop.f32.mrb[55].mxu0 }
 0x51b   : > { %v4945_v58 = vadd.f32 %v8726_v32, %v4944_v18 }
 0x51c   : > { %5081 = vst.msk [vmem:[%s8745_s30 + $0x38] sm:$0xff] %vm5073_vm15, %v4950_v37 }
 0x51d   : > { %5080 = vst.msk [vmem:[%s8745_s30 + $0x30] sm:$0xff] %vm5073_vm15, %v4945_v58 }
 0x52e   : > { %v5724_v33 = vpop.f32.mrb[56].mxu0 }
 0x52f   : > { %v4960_v63 = vadd.f32 %v5724_v33, %v8726_v32  ;;  %v4954_v50 = vpop.f32.mrb[57].mxu0 }
 0x530   : > { %v4955_v46 = vadd.f32 %v8726_v32, %v4954_v50 }
 0x531   : > { %5083 = vst.msk [vmem:[%s8745_s30 + $0x48] sm:$0xff] %vm5073_vm15, %v4960_v63 }
 0x532   : > { %5082 = vst.msk [vmem:[%s8745_s30 + $0x40] sm:$0xff] %vm5073_vm15, %v4955_v46 }
 0x549   : > { %v5727_v14 = vpop.f32.mrb[58].mxu0 }
 0x54a   : > { %v4970_v61 = vadd.f32 %v5727_v14, %v8726_v32  ;;  %v4964_v62 = vpop.f32.mrb[59].mxu0 }
 0x54b   : > { %v4965_v0 = vadd.f32 %v8726_v32, %v4964_v62 }
 0x54c   : > { %5085 = vst.msk [vmem:[%s8745_s30 + $0x58] sm:$0xff] %vm5073_vm15, %v4970_v61 }
 0x54d   : > { %5084 = vst.msk [vmem:[%s8745_s30 + $0x50] sm:$0xff] %vm5073_vm15, %v4965_v0 }
 0x577   : > { %v5730_v42 = vpop.f32.mrb[60].mxu0 }
 0x578   : > { %v4980_v41 = vadd.f32 %v5730_v42, %v8726_v32  ;;  %v4974_v2 = vpop.f32.mrb[61].mxu0 }
 0x579   : > { %v4975_v4 = vadd.f32 %v8726_v32, %v4974_v2 }
 0x57a   : > { %5087 = vst.msk [vmem:[%s8745_s30 + $0x68] sm:$0xff] %vm5073_vm15, %v4980_v41 }
 0x57b   : > { %5086 = vst.msk [vmem:[%s8745_s30 + $0x60] sm:$0xff] %vm5073_vm15, %v4975_v4 }
 0x57f   : > { %v5733_v34 = vpop.f32.mrb[62].mxu0 }
 0x580   : > { %v4990_v49 = vadd.f32 %v5733_v34, %v8726_v32  ;;  %v4984_v24 = vpop.f32.mrb[63].mxu0 }
 0x581   : > { %v4985_v51 = vadd.f32 %v8726_v32, %v4984_v24 }
 0x582   : > { %5089 = vst.msk [vmem:[%s8745_s30 + $0x78] sm:$0xff] %vm5073_vm15, %v4990_v49 }
 0x583   : > { %5088 = vst.msk [vmem:[%s8745_s30 + $0x70] sm:$0xff] %vm5073_vm15, %v4985_v51 }
 0x58d   : > { %v5736_v54 = vpop.f32.mrb[64].mxu0 }
 0x58e   : > { %v5000_v20 = vadd.f32 %v5736_v54, %v8726_v32  ;;  %v4994_v3 = vpop.f32.mrb[65].mxu0 }
 0x58f   : > { %v4995_v38 = vadd.f32 %v8726_v32, %v4994_v3 }
 0x590   : > { %5091 = vst.msk [vmem:[%s8745_s30 + $0x88] sm:$0xff] %vm5073_vm15, %v5000_v20 }
 0x591   : > { %5090 = vst.msk [vmem:[%s8745_s30 + $0x80] sm:$0xff] %vm5073_vm15, %v4995_v38 }
 0x59d   : > { %v5739_v29 = vpop.f32.mrb[66].mxu0 }
 0x59e   : > { %v5010_v1 = vadd.f32 %v5739_v29, %v8726_v32  ;;  %v5004_v31 = vpop.f32.mrb[67].mxu0 }
 0x59f   : > { %v5005_v8 = vadd.f32 %v8726_v32, %v5004_v31 }
 0x5a0   : > { %5093 = vst.msk [vmem:[%s8745_s30 + $0x98] sm:$0xff] %vm5073_vm15, %v5010_v1 }
 0x5a1   : > { %5092 = vst.msk [vmem:[%s8745_s30 + $0x90] sm:$0xff] %vm5073_vm15, %v5005_v8 }
 0x5a9   : > { %v5742_v6 = vpop.f32.mrb[68].mxu0 }
 0x5aa   : > { %v5020_v36 = vadd.f32 %v5742_v6, %v8726_v32  ;;  %v5014_v56 = vpop.f32.mrb[69].mxu0 }
 0x5ab   : > { %v5015_v12 = vadd.f32 %v8726_v32, %v5014_v56 }
 0x5ac   : > { %5095 = vst.msk [vmem:[%s8745_s30 + $0xa8] sm:$0xff] %vm5073_vm15, %v5020_v36 }
 0x5ad   : > { %5094 = vst.msk [vmem:[%s8745_s30 + $0xa0] sm:$0xff] %vm5073_vm15, %v5015_v12 }
 0x5b7   : > { %v5745_v44 = vpop.f32.mrb[70].mxu0 }
 0x5b8   : > { %v5030_v47 = vadd.f32 %v5745_v44, %v8726_v32  ;;  %v5024_v59 = vpop.f32.mrb[71].mxu0 }
 0x5b9   : > { %v5025_v25 = vadd.f32 %v8726_v32, %v5024_v59 }
 0x5ba   : > { %5097 = vst.msk [vmem:[%s8745_s30 + $0xb8] sm:$0xff] %vm5073_vm15, %v5030_v47 }
 0x5bb   : > { %5096 = vst.msk [vmem:[%s8745_s30 + $0xb0] sm:$0xff] %vm5073_vm15, %v5025_v25 }
 0x5c1   : > { %v5748_v5 = vpop.f32.mrb[72].mxu0 }
 0x5c2   : > { %v5040_v26 = vadd.f32 %v5748_v5, %v8726_v32  ;;  %v5034_v45 = vpop.f32.mrb[73].mxu0 }
 0x5c3   : > { %v5035_v60 = vadd.f32 %v8726_v32, %v5034_v45 }
 0x5c4   : > { %5099 = vst.msk [vmem:[%s8745_s30 + $0xc8] sm:$0xff] %vm5073_vm15, %v5040_v26 }
 0x5c5   : > { %5098 = vst.msk [vmem:[%s8745_s30 + $0xc0] sm:$0xff] %vm5073_vm15, %v5035_v60 }
 0x5d1   : > { %v5751_v11 = vpop.f32.mrb[74].mxu0 }
 0x5d2   : > { %v5050_v48 = vadd.f32 %v5751_v11, %v8726_v32  ;;  %v5044_v21 = vpop.f32.mrb[75].mxu0 }
 0x5d3   : > { %v5045_v52 = vadd.f32 %v8726_v32, %v5044_v21 }
 0x5d4   : > { %5101 = vst.msk [vmem:[%s8745_s30 + $0xd8] sm:$0xff] %vm5073_vm15, %v5050_v48 }
 0x5d5   : > { %5100 = vst.msk [vmem:[%s8745_s30 + $0xd0] sm:$0xff] %vm5073_vm15, %v5045_v52 }
 0x5df   : > { %v5754_v27 = vpop.f32.mrb[76].mxu0 }
 0x5e0   : > { %v5060_v19 = vadd.f32 %v5754_v27, %v8726_v32  ;;  %v5054_v23 = vpop.f32.mrb[77].mxu0 }
 0x5e1   : > { %v5055_v16 = vadd.f32 %v8726_v32, %v5054_v23 }
 0x5e2   : > { %5103 = vst.msk [vmem:[%s8745_s30 + $0xe8] sm:$0xff] %vm5073_vm15, %v5060_v19 }
 0x5e3   : > { %5102 = vst.msk [vmem:[%s8745_s30 + $0xe0] sm:$0xff] %vm5073_vm15, %v5055_v16 }
 0x5ea   : > { %v5757_v7 = vpop.f32.mrb[78].mxu0 }
 0x5eb   : > { %v5070_v40 = vadd.f32 %v5757_v7, %v8726_v32  ;;  %v5064_v10 = vpop.f32.mrb[79].mxu0 }
 0x5ec   : > { %v5065_v28 = vadd.f32 %v8726_v32, %v5064_v10 }
 0x5ed   : > { %5105 = vst.msk [vmem:[%s8745_s30 + $0xf8] sm:$0xff] %vm5073_vm15, %v5070_v40 }
 0x5ee   : > { %5104 = vst.msk [vmem:[%s8745_s30 + $0xf0] sm:$0xff] %vm5073_vm15, %v5065_v28 }
 0x5ef PF: > { %s25_s18 = sadd.s32 1, %s6037_s18  }
 0x5f0   : > { %p22_p4 = scmp.ge.s32.totalorder %s25_s18, 4  }
 0x5f2   :  { %24 = sbr.rel (!%p22_p4) target bundleno = 1 (0x1), region = 112 }

</bundles_post_ra>
